<compile_context>
chip_gen: v5e
topology: v5e:2x2
jax: 0.10.0
libtpu: 0.0.40
codegen_flags: <defaults>
</compile_context>

<pallas_src>
import jax
import jax.numpy as jnp
from jax.experimental import pallas as pl
from jax.experimental.pallas import tpu as pltpu


_IN_CHANNELS = 26        # hardcoded by the module
_IN_LENGTH = 1000        # hardcoded by the module
_VREG_BUDGET = 44        # max vregs allowed for (X_unfold + result) per conv chunk


def _round_up(v, m):
    return ((v + m - 1) // m) * m


def _ceil_div(a, b):
    return (a + b - 1) // b


def _use_blockdiag(c_last, e):
    return c_last * e <= 1024 and c_last <= 64


# ----------------------------------------------------------------------------
# Static geometry (mirrors the module's __init__, including its [-i] quirk)
# ----------------------------------------------------------------------------
def _geometry(cnn_filters, cnn_kernels):
    filters = [_IN_CHANNELS] + list(cnn_filters)
    n = len(filters) - 1
    sizes = [_IN_LENGTH]
    for i in range(n):
        sizes.append(sizes[i] - cnn_kernels[i] + 1)

    enc = []
    for i in range(n):
        enc.append(dict(cin=filters[i], cout=filters[i + 1], K=cnn_kernels[i],
                        lin=sizes[i], lout=sizes[i + 1]))

    C_last, L_last = filters[-1], sizes[-1]

    # decoder: module appends ConvTranspose1d(filters[i+1] -> filters[i],
    # kernel_size=cnn_kernels[-i]) for i in reversed(range(n)).
    # NB: cnn_kernels[-0] == cnn_kernels[0] — module quirk, preserved literally.
    dec = []
    ld = L_last
    for i in reversed(range(n)):
        K = cnn_kernels[-i]
        dec.append(dict(cin=filters[i + 1], cout=filters[i], K=K,
                        lin=ld, lout=ld + K - 1))
        ld += K - 1

    widths = (list(sizes)
              + [d['lin'] + 2 * (d['K'] - 1) for d in dec]
              + [d['lout'] for d in dec])
    Lpad = _round_up(max(widths), 128)
    Cbuf = _round_up(max([C_last, 8]
                         + [d['cout'] for d in dec[:-1]]
                         + [e['cout'] for e in enc[:-1]]), 8)
    return dict(filters=filters, sizes=sizes, enc=enc, dec=dec, n=n,
                C_last=C_last, L_last=L_last, Lpad=Lpad, Cbuf=Cbuf)


# ----------------------------------------------------------------------------
# Parameter construction + layout packing (mirrors the module's __init__)
# ----------------------------------------------------------------------------
def init_params(key, cnn_filters, cnn_kernels, embedding_size):
    g = _geometry(cnn_filters, cnn_kernels)
    E = embedding_size
    C_last, L_last, Lpad, n = g['C_last'], g['L_last'], g['Lpad'], g['n']
    flat_dim = C_last * L_last
    keys = iter(jax.random.split(key, 4 * n + 8))

    def uni(k, shape, fan_in):
        bound = 1.0 / float(fan_in) ** 0.5
        return jax.random.uniform(k, shape, jnp.float32, -bound, bound)

    def pack_unfold(w_valid):                  # (Cout, Cin, K) -> (Cout, K*Cin8)
        Cout, Cin, K = w_valid.shape
        Cin8 = _round_up(Cin, 8)
        wu = jnp.zeros((Cout, K, Cin8), jnp.float32)
        wu = wu.at[:, :, :Cin].set(jnp.transpose(w_valid, (0, 2, 1)))
        return wu.reshape(Cout, K * Cin8)

    # ---- encoder convs (PyTorch Conv1d weight layout (Cout, Cin, K)) ----
    enc_convs = []
    for e in g['enc']:
        fan = e['cin'] * e['K']
        w = uni(next(keys), (e['cout'], e['cin'], e['K']), fan)
        b = uni(next(keys), (e['cout'],), fan)
        enc_convs.append((pack_unfold(w), b.reshape(-1, 1)))

    # ---- encoder Linear (Flatten fused) ----
    w_el = uni(next(keys), (E, flat_dim), flat_dim)
    b_el = uni(next(keys), (E,), flat_dim)
    if _use_blockdiag(C_last, E):
        # block-diagonal packing: wel[l, c*E + e] = W[e, c*L_last + l]
        wel = jnp.transpose(w_el.reshape(E, C_last, L_last),
                            (2, 1, 0)).reshape(L_last, C_last * E)
    else:
        wel = jnp.transpose(w_el.reshape(E, C_last, L_last), (1, 2, 0))
    bel = b_el.reshape(1, E)

    # ---- decoder Linear (Unflatten + first ConvTranspose padding fused) ----
    w_dl = uni(next(keys), (flat_dim, E), E)
    b_dl = uni(next(keys), (flat_dim,), E)
    p0 = g['dec'][0]['K'] - 1
    wdl3 = jnp.zeros((E, C_last, Lpad), jnp.float32).at[:, :, p0:p0 + L_last].set(
        jnp.transpose(w_dl.reshape(C_last, L_last, E), (2, 0, 1)))
    wdl = wdl3.reshape(E, C_last * Lpad)
    bdl = jnp.zeros((C_last, Lpad), jnp.float32).at[:, p0:p0 + L_last].set(
        b_dl.reshape(C_last, L_last)).reshape(1, C_last * Lpad)

    # ---- decoder transpose convs -> equivalent valid-conv weights, tap-folded ----
    dec_convs = []
    for d in g['dec']:
        K, cin, cout = d['K'], d['cin'], d['cout']
        fan = cout * K                           # PyTorch fan_in for ConvTranspose1d
        w_t = uni(next(keys), (cin, cout, K), fan)            # (Cin, Cout, K)
        b_t = uni(next(keys), (cout,), fan)
        w_eq = jnp.flip(jnp.transpose(w_t, (1, 0, 2)), axis=2)  # (Cout, Cin, K)
        dec_convs.append((pack_unfold(w_eq), b_t.reshape(-1, 1)))

    return dict(enc_convs=enc_convs, enc_lin=(wel, bel),
                dec_lin=(wdl, bdl), dec_convs=dec_convs)


# ----------------------------------------------------------------------------
# Fully fused forward pass factory: one pallas_call, grid = (batch,)
# ----------------------------------------------------------------------------
def make_forward(cnn_filters, cnn_kernels, embedding_size):
    g = _geometry(cnn_filters, cnn_kernels)
    E = embedding_size
    enc_cfg, dec_cfg = g['enc'], g['dec']
    C_last, L_last, Lpad, Cbuf = g['C_last'], g['L_last'], g['Lpad'], g['Cbuf']
    n_enc, n_dec = len(enc_cfg), len(dec_cfg)
    C0, L0 = _IN_CHANNELS, _IN_LENGTH
    C0p = _round_up(C0, 8)
    C_out, L_out = dec_cfg[-1]['cout'], dec_cfg[-1]['lout']
    use_blockdiag = _use_blockdiag(C_last, E)

    def chunks_for(cfg):
        """128-aligned L-chunks keeping X_unfold + result under the vreg budget."""
        cin8 = _round_up(cfg['cin'], 8)
        per_tile = (cfg['K'] * cin8) // 8 + _ceil_div(cfg['cout'], 8)
        lane_tiles = max(1, _VREG_BUDGET // per_tile)
        step = min(lane_tiles * 128, _round_up(cfg['lout'], 128))
        out, cs = [], 0
        while cs < cfg['lout']:
            out.append((cs, min(step, cfg['lout'] - cs)))
            cs += step
        return out

    def forward(x, params):
        B = x.shape[0]
        assert x.shape[1:] == (C0, L0), x.shape
        enc_w = params['enc_convs']
        wel, bel = params['enc_lin']
        wdl, bdl = params['dec_lin']
        dec_w = params['dec_convs']

        # pad channels to a multiple of 8 so tap-unfold concats are sublane-aligned
        xp = jnp.pad(x.astype(jnp.float32), ((0, 0), (0, C0p - C0), (0, 0)))

        def kernel(*refs):
            idx = 0
            x_ref = refs[idx]; idx += 1
            enc_refs = [(refs[idx + 2 * i], refs[idx + 2 * i + 1]) for i in range(n_enc)]
            idx += 2 * n_enc
            wel_ref, bel_ref, wdl_ref, bdl_ref = refs[idx:idx + 4]; idx += 4
            dec_refs = [(refs[idx + 2 * i], refs[idx + 2 * i + 1]) for i in range(n_dec)]
            idx += 2 * n_dec
            o_ref, buf = refs[idx], refs[idx + 1]

            def conv_chunk(get_src, w, b, cfg, cs, cl):
                """One tap-folded conv chunk: a single MXU contraction of depth K*Cin8."""
                pieces = [get_src(cs + j, cl) for j in range(cfg['K'])]
                xu = pieces[0] if cfg['K'] == 1 else jnp.concatenate(pieces, axis=0)
                y = jnp.dot(w, xu, preferred_element_type=jnp.float32)
                return jnp.maximum(y + b, 0.0)                       # ReLU

            # ------------------------- encoder convs -------------------------
            h = None
            scratch_slot = 0
            for li, (cfg, (w_ref, b_ref)) in enumerate(zip(enc_cfg, enc_refs)):
                cin8 = _round_up(cfg['cin'], 8)
                if li == 0:
                    get_src = lambda c0, cl: x_ref[0, :, c0:c0 + cl]
                elif cfg['cin'] % 8 == 0:
                    hh = h
                    get_src = lambda c0, cl, hh=hh: hh[:, c0:c0 + cl]
                else:
                    # stage the activation in scratch with zero-padded rows so the
                    # unfold concat stays sublane-aligned
                    s = scratch_slot
                    buf[s, 0:cfg['cin'], 0:cfg['lin']] = h
                    buf[s, cfg['cin']:cin8, 0:cfg['lin']] = jnp.zeros(
                        (cin8 - cfg['cin'], cfg['lin']), jnp.float32)
                    scratch_slot = 1 - scratch_slot
                    get_src = (lambda c0, cl, s=s, cin8=cin8:
                               buf[s, 0:cin8, c0:c0 + cl])
                w = w_ref[...]
                b = b_ref[...]
                outs = [conv_chunk(get_src, w, b, cfg, cs, cl)
                        for cs, cl in chunks_for(cfg)]
                h = outs[0] if len(outs) == 1 else jnp.concatenate(outs, axis=1)

            # --------------- encoder Linear (Flatten fused) ---------------
            if use_blockdiag:
                P = jnp.dot(h, wel_ref[...], preferred_element_type=jnp.float32)
                parts = [P[c:c + 1, c * E:(c + 1) * E] for c in range(C_last)]
            else:
                parts = [jnp.dot(h[c:c + 1, :], wel_ref[c],
                                 preferred_element_type=jnp.float32)
                         for c in range(C_last)]
            while len(parts) > 1:                       # tree-sum (no serial chain)
                nxt = [parts[i] + parts[i + 1] for i in range(0, len(parts) - 1, 2)]
                if len(parts) % 2:
                    nxt.append(parts[-1])
                parts = nxt
            z = parts[0] + bel_ref[...]                                  # (1, E)

            # --- decoder Linear (Unflatten + first ConvTranspose padding fused) ---
            flat = (jnp.dot(z, wdl_ref[...], preferred_element_type=jnp.float32)
                    + bdl_ref[...])                                      # (1, C_last*Lpad)
            ds = scratch_slot
            c1_cin8 = _round_up(dec_cfg[0]['cin'], 8)
            for c in range(C_last):                     # lane-aligned slices -> rows
                buf[ds, c:c + 1, :] = flat[:, c * Lpad:(c + 1) * Lpad]
            if c1_cin8 > C_last:                        # zero padded rows once
                buf[ds, C_last:c1_cin8, :] = jnp.zeros((c1_cin8 - C_last, Lpad),
                                                       jnp.float32)

            # ----------------------- decoder convs -----------------------
            for li, (cfg, (w_ref, b_ref)) in enumerate(zip(dec_cfg, dec_refs)):
                rs = (ds + li) % 2          # read slot
                ws = 1 - rs                 # write slot (ping-pong: no RAW hazard)
                cin8 = _round_up(cfg['cin'], 8)
                get_src = (lambda c0, cl, rs=rs, cin8=cin8:
                           buf[rs, 0:cin8, c0:c0 + cl])
                w = w_ref[...]
                b = b_ref[...]
                last = (li == n_dec - 1)
                if not last:
                    off = dec_cfg[li + 1]['K'] - 1
                    cout8 = _round_up(cfg['cout'], 8)
                    read_w = cfg['lout'] + 2 * off
                    # zero only the border columns / pad rows the next layer reads
                    if off > 0:
                        buf[ws, 0:cfg['cout'], 0:off] = jnp.zeros(
                            (cfg['cout'], off), jnp.float32)
                        buf[ws, 0:cfg['cout'], off + cfg['lout']:read_w] = jnp.zeros(
                            (cfg['cout'], off), jnp.float32)
                    if cout8 > cfg['cout']:
                        buf[ws, cfg['cout']:cout8, 0:read_w] = jnp.zeros(
                            (cout8 - cfg['cout'], read_w), jnp.float32)
                for cs, cl in chunks_for(cfg):
                    y = conv_chunk(get_src, w, b, cfg, cs, cl)   # ReLU (also on last,
                    if last:                                     # as in the module)
                        o_ref[0, :, cs:cs + cl] = jnp.tanh(y).astype(o_ref.dtype)
                    else:
                        buf[ws, 0:cfg['cout'], off + cs:off + cs + cl] = y

        # ---------------------------- specs ----------------------------
        def fullspec(a):
            zeros = (0,) * a.ndim
            return pl.BlockSpec(a.shape, lambda b, zeros=zeros: zeros)

        in_specs = [pl.BlockSpec((1, C0p, L0), lambda b: (b, 0, 0))]
        args = [xp]
        for (wk, bk) in enc_w:
            in_specs += [fullspec(wk), fullspec(bk)]
            args += [wk, bk]
        in_specs += [fullspec(wel), fullspec(bel), fullspec(wdl), fullspec(bdl)]
        args += [wel, bel, wdl, bdl]
        for (wk, bk) in dec_w:
            in_specs += [fullspec(wk), fullspec(bk)]
            args += [wk, bk]

        flops = 0
        for cfg in enc_cfg + dec_cfg:
            flops += 2 * cfg['cin'] * cfg['cout'] * cfg['K'] * cfg['lout']
        flops += 2 * 2 * C_last * L_last * E
        flops *= B
        bytes_accessed = 4 * (int(xp.size) + B * C_out * L_out
                              + sum(int(a.size) for a in args[1:]))
        cost = pl.CostEstimate(flops=flops, transcendentals=B * C_out * L_out,
                               bytes_accessed=bytes_accessed)

        return pl.pallas_call(
            kernel,
            out_shape=jax.ShapeDtypeStruct((B, C_out, L_out), jnp.float32),
            grid_spec=pltpu.PrefetchScalarGridSpec(
                num_scalar_prefetch=0,
                grid=(B,),
                in_specs=in_specs,
                out_specs=pl.BlockSpec((1, C_out, L_out), lambda b: (b, 0, 0)),
                scratch_shapes=[pltpu.VMEM((2, Cbuf, Lpad), jnp.float32)],
            ),
            compiler_params=pltpu.CompilerParams(
                dimension_semantics=("parallel",)),
            cost_estimate=cost,
        )(*args)

    return forward


# ----------------------------------------------------------------------------
if __name__ == "__main__":
    config = dict(cnn_filters=[8, 4], cnn_kernels=[5, 3], embedding_size=32)

    key = jax.random.PRNGKey(0)
    pkey, xkey = jax.random.split(key)
    params = init_params(pkey, **config)
    fwd = jax.jit(make_forward(**config))

    B = 2
    # Input layout matches PyTorch Conv1d: (batch, channels=26, length=1000)
    x = jax.random.uniform(xkey, (B, 26, 1000), jnp.float32, -1.0, 1.0)

    out = jax.block_until_ready(fwd(x, params))

    assert out.shape == (B, 26, 1000), out.shape
    assert bool(jnp.all(jnp.isfinite(out)))
    print("KERNEL_OK")
</pallas_src>

<mosaic_0001>
module attributes {stable_mosaic.version = 11 : i64} {
  func.func @kernel(%arg0: i32, %arg1: memref<1x32x1000xf32, #tpu.memory_space<vmem>>, %arg2: memref<8x160xf32, #tpu.memory_space<vmem>>, %arg3: memref<8x1xf32, #tpu.memory_space<vmem>>, %arg4: memref<4x24xf32, #tpu.memory_space<vmem>>, %arg5: memref<4x1xf32, #tpu.memory_space<vmem>>, %arg6: memref<994x128xf32, #tpu.memory_space<vmem>>, %arg7: memref<1x32xf32, #tpu.memory_space<vmem>>, %arg8: memref<32x4096xf32, #tpu.memory_space<vmem>>, %arg9: memref<1x4096xf32, #tpu.memory_space<vmem>>, %arg10: memref<8x24xf32, #tpu.memory_space<vmem>>, %arg11: memref<8x1xf32, #tpu.memory_space<vmem>>, %arg12: memref<26x40xf32, #tpu.memory_space<vmem>>, %arg13: memref<26x1xf32, #tpu.memory_space<vmem>>, %arg14: memref<1x26x1000xf32, #tpu.memory_space<vmem>>, %arg15: memref<2x8x1024xf32, #tpu.memory_space<vmem>>) attributes {dimension_semantics = [#tpu.dimension_semantics<parallel>], iteration_bounds = array<i64: 2>, scalar_prefetch = 0 : i64, scratch_operands = 1 : i64, tpu.core_type = #tpu.core_type<tc>, window_params = [{transform_indices = @transform_0, window_bounds = array<i64: 1, 32, 1000>}, {pipeline_mode = #tpu.pipeline_mode<synchronous>, transform_indices = @transform_1, window_bounds = array<i64: 8, 160>}, {pipeline_mode = #tpu.pipeline_mode<synchronous>, transform_indices = @transform_2, window_bounds = array<i64: 8, 1>}, {pipeline_mode = #tpu.pipeline_mode<synchronous>, transform_indices = @transform_3, window_bounds = array<i64: 4, 24>}, {pipeline_mode = #tpu.pipeline_mode<synchronous>, transform_indices = @transform_4, window_bounds = array<i64: 4, 1>}, {pipeline_mode = #tpu.pipeline_mode<synchronous>, transform_indices = @transform_5, window_bounds = array<i64: 994, 128>}, {pipeline_mode = #tpu.pipeline_mode<synchronous>, transform_indices = @transform_6, window_bounds = array<i64: 1, 32>}, {pipeline_mode = #tpu.pipeline_mode<synchronous>, transform_indices = @transform_7, window_bounds = array<i64: 32, 4096>}, {pipeline_mode = #tpu.pipeline_mode<synchronous>, transform_indices = @transform_8, window_bounds = array<i64: 1, 4096>}, {pipeline_mode = #tpu.pipeline_mode<synchronous>, transform_indices = @transform_9, window_bounds = array<i64: 8, 24>}, {pipeline_mode = #tpu.pipeline_mode<synchronous>, transform_indices = @transform_10, window_bounds = array<i64: 8, 1>}, {pipeline_mode = #tpu.pipeline_mode<synchronous>, transform_indices = @transform_11, window_bounds = array<i64: 26, 40>}, {pipeline_mode = #tpu.pipeline_mode<synchronous>, transform_indices = @transform_12, window_bounds = array<i64: 26, 1>}, {transform_indices = @transform_13, window_bounds = array<i64: 1, 26, 1000>}]} {
    %c0 = arith.constant 0 : index
    %c0_0 = arith.constant 0 : index
    %0 = vector.load %arg2[%c0, %c0_0] : memref<8x160xf32, #tpu.memory_space<vmem>>, vector<8x160xf32>
    %c0_1 = arith.constant 0 : index
    %c0_2 = arith.constant 0 : index
    %1 = vector.load %arg3[%c0_1, %c0_2] : memref<8x1xf32, #tpu.memory_space<vmem>>, vector<8x1xf32>
    %c0_3 = arith.constant 0 : index
    %c0_4 = arith.constant 0 : index
    %c0_5 = arith.constant 0 : index
    %2 = vector.load %arg1[%c0_3, %c0_4, %c0_5] : memref<1x32x1000xf32, #tpu.memory_space<vmem>>, vector<1x32x256xf32>
    %3 = vector.shape_cast %2 : vector<1x32x256xf32> to vector<32x256xf32>
    %c0_6 = arith.constant 0 : index
    %c0_7 = arith.constant 0 : index
    %c1 = arith.constant 1 : index
    %4 = vector.load %arg1[%c0_6, %c0_7, %c1] : memref<1x32x1000xf32, #tpu.memory_space<vmem>>, vector<1x32x256xf32>
    %5 = vector.shape_cast %4 : vector<1x32x256xf32> to vector<32x256xf32>
    %c0_8 = arith.constant 0 : index
    %c0_9 = arith.constant 0 : index
    %c2 = arith.constant 2 : index
    %6 = vector.load %arg1[%c0_8, %c0_9, %c2] : memref<1x32x1000xf32, #tpu.memory_space<vmem>>, vector<1x32x256xf32>
    %7 = vector.shape_cast %6 : vector<1x32x256xf32> to vector<32x256xf32>
    %c0_10 = arith.constant 0 : index
    %c0_11 = arith.constant 0 : index
    %c3 = arith.constant 3 : index
    %8 = vector.load %arg1[%c0_10, %c0_11, %c3] : memref<1x32x1000xf32, #tpu.memory_space<vmem>>, vector<1x32x256xf32>
    %9 = vector.shape_cast %8 : vector<1x32x256xf32> to vector<32x256xf32>
    %c0_12 = arith.constant 0 : index
    %c0_13 = arith.constant 0 : index
    %c4 = arith.constant 4 : index
    %10 = vector.load %arg1[%c0_12, %c0_13, %c4] : memref<1x32x1000xf32, #tpu.memory_space<vmem>>, vector<1x32x256xf32>
    %11 = vector.shape_cast %10 : vector<1x32x256xf32> to vector<32x256xf32>
    %12 = tpu.concatenate %3, %5, %7, %9, %11 in 0 : vector<32x256xf32>, vector<32x256xf32>, vector<32x256xf32>, vector<32x256xf32>, vector<32x256xf32> -> vector<160x256xf32>
    %cst = arith.constant dense<0.000000e+00> : vector<8x256xf32>
    %13 = tpu.matmul %0, %12, %cst {dimension_numbers = #tpu.dot_dimension_numbers<[1], [0], [0], [1], [0, 0, 1, 1], [], []>} : vector<8x160xf32>, vector<160x256xf32>, vector<8x256xf32> -> vector<8x256xf32>
    %14 = vector.broadcast %1 : vector<8x1xf32> to vector<8x256xf32>
    %15 = arith.addf %13, %14 : vector<8x256xf32>
    %cst_14 = arith.constant 0.000000e+00 : f32
    %16 = vector.broadcast %cst_14 : f32 to vector<8x256xf32>
    %17 = arith.maximumf %15, %16 : vector<8x256xf32>
    %c0_15 = arith.constant 0 : index
    %c0_16 = arith.constant 0 : index
    %c256 = arith.constant 256 : index
    %18 = vector.load %arg1[%c0_15, %c0_16, %c256] : memref<1x32x1000xf32, #tpu.memory_space<vmem>>, vector<1x32x256xf32>
    %19 = vector.shape_cast %18 : vector<1x32x256xf32> to vector<32x256xf32>
    %c0_17 = arith.constant 0 : index
    %c0_18 = arith.constant 0 : index
    %c257 = arith.constant 257 : index
    %20 = vector.load %arg1[%c0_17, %c0_18, %c257] : memref<1x32x1000xf32, #tpu.memory_space<vmem>>, vector<1x32x256xf32>
    %21 = vector.shape_cast %20 : vector<1x32x256xf32> to vector<32x256xf32>
    %c0_19 = arith.constant 0 : index
    %c0_20 = arith.constant 0 : index
    %c258 = arith.constant 258 : index
    %22 = vector.load %arg1[%c0_19, %c0_20, %c258] : memref<1x32x1000xf32, #tpu.memory_space<vmem>>, vector<1x32x256xf32>
    %23 = vector.shape_cast %22 : vector<1x32x256xf32> to vector<32x256xf32>
    %c0_21 = arith.constant 0 : index
    %c0_22 = arith.constant 0 : index
    %c259 = arith.constant 259 : index
    %24 = vector.load %arg1[%c0_21, %c0_22, %c259] : memref<1x32x1000xf32, #tpu.memory_space<vmem>>, vector<1x32x256xf32>
    %25 = vector.shape_cast %24 : vector<1x32x256xf32> to vector<32x256xf32>
    %c0_23 = arith.constant 0 : index
    %c0_24 = arith.constant 0 : index
    %c260 = arith.constant 260 : index
    %26 = vector.load %arg1[%c0_23, %c0_24, %c260] : memref<1x32x1000xf32, #tpu.memory_space<vmem>>, vector<1x32x256xf32>
    %27 = vector.shape_cast %26 : vector<1x32x256xf32> to vector<32x256xf32>
    %28 = tpu.concatenate %19, %21, %23, %25, %27 in 0 : vector<32x256xf32>, vector<32x256xf32>, vector<32x256xf32>, vector<32x256xf32>, vector<32x256xf32> -> vector<160x256xf32>
    %cst_25 = arith.constant dense<0.000000e+00> : vector<8x256xf32>
    %29 = tpu.matmul %0, %28, %cst_25 {dimension_numbers = #tpu.dot_dimension_numbers<[1], [0], [0], [1], [0, 0, 1, 1], [], []>} : vector<8x160xf32>, vector<160x256xf32>, vector<8x256xf32> -> vector<8x256xf32>
    %30 = vector.broadcast %1 : vector<8x1xf32> to vector<8x256xf32>
    %31 = arith.addf %29, %30 : vector<8x256xf32>
    %cst_26 = arith.constant 0.000000e+00 : f32
    %32 = vector.broadcast %cst_26 : f32 to vector<8x256xf32>
    %33 = arith.maximumf %31, %32 : vector<8x256xf32>
    %c0_27 = arith.constant 0 : index
    %c0_28 = arith.constant 0 : index
    %c512 = arith.constant 512 : index
    %34 = vector.load %arg1[%c0_27, %c0_28, %c512] : memref<1x32x1000xf32, #tpu.memory_space<vmem>>, vector<1x32x256xf32>
    %35 = vector.shape_cast %34 : vector<1x32x256xf32> to vector<32x256xf32>
    %c0_29 = arith.constant 0 : index
    %c0_30 = arith.constant 0 : index
    %c513 = arith.constant 513 : index
    %36 = vector.load %arg1[%c0_29, %c0_30, %c513] : memref<1x32x1000xf32, #tpu.memory_space<vmem>>, vector<1x32x256xf32>
    %37 = vector.shape_cast %36 : vector<1x32x256xf32> to vector<32x256xf32>
    %c0_31 = arith.constant 0 : index
    %c0_32 = arith.constant 0 : index
    %c514 = arith.constant 514 : index
    %38 = vector.load %arg1[%c0_31, %c0_32, %c514] : memref<1x32x1000xf32, #tpu.memory_space<vmem>>, vector<1x32x256xf32>
    %39 = vector.shape_cast %38 : vector<1x32x256xf32> to vector<32x256xf32>
    %c0_33 = arith.constant 0 : index
    %c0_34 = arith.constant 0 : index
    %c515 = arith.constant 515 : index
    %40 = vector.load %arg1[%c0_33, %c0_34, %c515] : memref<1x32x1000xf32, #tpu.memory_space<vmem>>, vector<1x32x256xf32>
    %41 = vector.shape_cast %40 : vector<1x32x256xf32> to vector<32x256xf32>
    %c0_35 = arith.constant 0 : index
    %c0_36 = arith.constant 0 : index
    %c516 = arith.constant 516 : index
    %42 = vector.load %arg1[%c0_35, %c0_36, %c516] : memref<1x32x1000xf32, #tpu.memory_space<vmem>>, vector<1x32x256xf32>
    %43 = vector.shape_cast %42 : vector<1x32x256xf32> to vector<32x256xf32>
    %44 = tpu.concatenate %35, %37, %39, %41, %43 in 0 : vector<32x256xf32>, vector<32x256xf32>, vector<32x256xf32>, vector<32x256xf32>, vector<32x256xf32> -> vector<160x256xf32>
    %cst_37 = arith.constant dense<0.000000e+00> : vector<8x256xf32>
    %45 = tpu.matmul %0, %44, %cst_37 {dimension_numbers = #tpu.dot_dimension_numbers<[1], [0], [0], [1], [0, 0, 1, 1], [], []>} : vector<8x160xf32>, vector<160x256xf32>, vector<8x256xf32> -> vector<8x256xf32>
    %46 = vector.broadcast %1 : vector<8x1xf32> to vector<8x256xf32>
    %47 = arith.addf %45, %46 : vector<8x256xf32>
    %cst_38 = arith.constant 0.000000e+00 : f32
    %48 = vector.broadcast %cst_38 : f32 to vector<8x256xf32>
    %49 = arith.maximumf %47, %48 : vector<8x256xf32>
    %c0_39 = arith.constant 0 : index
    %c0_40 = arith.constant 0 : index
    %c768 = arith.constant 768 : index
    %50 = vector.load %arg1[%c0_39, %c0_40, %c768] : memref<1x32x1000xf32, #tpu.memory_space<vmem>>, vector<1x32x228xf32>
    %51 = vector.shape_cast %50 : vector<1x32x228xf32> to vector<32x228xf32>
    %c0_41 = arith.constant 0 : index
    %c0_42 = arith.constant 0 : index
    %c769 = arith.constant 769 : index
    %52 = vector.load %arg1[%c0_41, %c0_42, %c769] : memref<1x32x1000xf32, #tpu.memory_space<vmem>>, vector<1x32x228xf32>
    %53 = vector.shape_cast %52 : vector<1x32x228xf32> to vector<32x228xf32>
    %c0_43 = arith.constant 0 : index
    %c0_44 = arith.constant 0 : index
    %c770 = arith.constant 770 : index
    %54 = vector.load %arg1[%c0_43, %c0_44, %c770] : memref<1x32x1000xf32, #tpu.memory_space<vmem>>, vector<1x32x228xf32>
    %55 = vector.shape_cast %54 : vector<1x32x228xf32> to vector<32x228xf32>
    %c0_45 = arith.constant 0 : index
    %c0_46 = arith.constant 0 : index
    %c771 = arith.constant 771 : index
    %56 = vector.load %arg1[%c0_45, %c0_46, %c771] : memref<1x32x1000xf32, #tpu.memory_space<vmem>>, vector<1x32x228xf32>
    %57 = vector.shape_cast %56 : vector<1x32x228xf32> to vector<32x228xf32>
    %c0_47 = arith.constant 0 : index
    %c0_48 = arith.constant 0 : index
    %c772 = arith.constant 772 : index
    %58 = vector.load %arg1[%c0_47, %c0_48, %c772] : memref<1x32x1000xf32, #tpu.memory_space<vmem>>, vector<1x32x228xf32>
    %59 = vector.shape_cast %58 : vector<1x32x228xf32> to vector<32x228xf32>
    %60 = tpu.concatenate %51, %53, %55, %57, %59 in 0 : vector<32x228xf32>, vector<32x228xf32>, vector<32x228xf32>, vector<32x228xf32>, vector<32x228xf32> -> vector<160x228xf32>
    %cst_49 = arith.constant dense<0.000000e+00> : vector<8x228xf32>
    %61 = tpu.matmul %0, %60, %cst_49 {dimension_numbers = #tpu.dot_dimension_numbers<[1], [0], [0], [1], [0, 0, 1, 1], [], []>} : vector<8x160xf32>, vector<160x228xf32>, vector<8x228xf32> -> vector<8x228xf32>
    %62 = vector.broadcast %1 : vector<8x1xf32> to vector<8x228xf32>
    %63 = arith.addf %61, %62 : vector<8x228xf32>
    %cst_50 = arith.constant 0.000000e+00 : f32
    %64 = vector.broadcast %cst_50 : f32 to vector<8x228xf32>
    %65 = arith.maximumf %63, %64 : vector<8x228xf32>
    %66 = tpu.concatenate %17, %33, %49, %65 in 1 : vector<8x256xf32>, vector<8x256xf32>, vector<8x256xf32>, vector<8x228xf32> -> vector<8x996xf32>
    %c0_51 = arith.constant 0 : index
    %c0_52 = arith.constant 0 : index
    %67 = vector.load %arg4[%c0_51, %c0_52] : memref<4x24xf32, #tpu.memory_space<vmem>>, vector<4x24xf32>
    %c0_53 = arith.constant 0 : index
    %c0_54 = arith.constant 0 : index
    %68 = vector.load %arg5[%c0_53, %c0_54] : memref<4x1xf32, #tpu.memory_space<vmem>>, vector<4x1xf32>
    %69 = vector.extract_strided_slice %66 {offsets = [0, 0], sizes = [8, 994], strides = [1, 1]} : vector<8x996xf32> to vector<8x994xf32>
    %70 = vector.extract_strided_slice %66 {offsets = [0, 1], sizes = [8, 994], strides = [1, 1]} : vector<8x996xf32> to vector<8x994xf32>
    %71 = vector.extract_strided_slice %66 {offsets = [0, 2], sizes = [8, 994], strides = [1, 1]} : vector<8x996xf32> to vector<8x994xf32>
    %72 = tpu.concatenate %69, %70, %71 in 0 : vector<8x994xf32>, vector<8x994xf32>, vector<8x994xf32> -> vector<24x994xf32>
    %cst_55 = arith.constant dense<0.000000e+00> : vector<4x994xf32>
    %73 = tpu.matmul %67, %72, %cst_55 {dimension_numbers = #tpu.dot_dimension_numbers<[1], [0], [0], [1], [0, 0, 1, 1], [], []>} : vector<4x24xf32>, vector<24x994xf32>, vector<4x994xf32> -> vector<4x994xf32>
    %74 = vector.broadcast %68 : vector<4x1xf32> to vector<4x994xf32>
    %75 = arith.addf %73, %74 : vector<4x994xf32>
    %cst_56 = arith.constant 0.000000e+00 : f32
    %76 = vector.broadcast %cst_56 : f32 to vector<4x994xf32>
    %77 = arith.maximumf %75, %76 : vector<4x994xf32>
    %c0_57 = arith.constant 0 : index
    %c0_58 = arith.constant 0 : index
    %78 = vector.load %arg6[%c0_57, %c0_58] : memref<994x128xf32, #tpu.memory_space<vmem>>, vector<994x128xf32>
    %cst_59 = arith.constant dense<0.000000e+00> : vector<4x128xf32>
    %79 = tpu.matmul %77, %78, %cst_59 {dimension_numbers = #tpu.dot_dimension_numbers<[1], [0], [0], [1], [0, 0, 1, 1], [], []>} : vector<4x994xf32>, vector<994x128xf32>, vector<4x128xf32> -> vector<4x128xf32>
    %80 = vector.extract_strided_slice %79 {offsets = [0, 0], sizes = [1, 32], strides = [1, 1]} : vector<4x128xf32> to vector<1x32xf32>
    %81 = vector.extract_strided_slice %79 {offsets = [1, 32], sizes = [1, 32], strides = [1, 1]} : vector<4x128xf32> to vector<1x32xf32>
    %82 = vector.extract_strided_slice %79 {offsets = [2, 64], sizes = [1, 32], strides = [1, 1]} : vector<4x128xf32> to vector<1x32xf32>
    %83 = vector.extract_strided_slice %79 {offsets = [3, 96], sizes = [1, 32], strides = [1, 1]} : vector<4x128xf32> to vector<1x32xf32>
    %84 = arith.addf %80, %81 : vector<1x32xf32>
    %85 = arith.addf %82, %83 : vector<1x32xf32>
    %86 = arith.addf %84, %85 : vector<1x32xf32>
    %c0_60 = arith.constant 0 : index
    %c0_61 = arith.constant 0 : index
    %87 = vector.load %arg7[%c0_60, %c0_61] : memref<1x32xf32, #tpu.memory_space<vmem>>, vector<1x32xf32>
    %88 = arith.addf %86, %87 : vector<1x32xf32>
    %c0_62 = arith.constant 0 : index
    %c0_63 = arith.constant 0 : index
    %89 = vector.load %arg8[%c0_62, %c0_63] : memref<32x4096xf32, #tpu.memory_space<vmem>>, vector<32x4096xf32>
    %cst_64 = arith.constant dense<0.000000e+00> : vector<1x4096xf32>
    %90 = tpu.matmul %88, %89, %cst_64 {dimension_numbers = #tpu.dot_dimension_numbers<[1], [0], [0], [1], [0, 0, 1, 1], [], []>} : vector<1x32xf32>, vector<32x4096xf32>, vector<1x4096xf32> -> vector<1x4096xf32>
    %c0_65 = arith.constant 0 : index
    %c0_66 = arith.constant 0 : index
    %91 = vector.load %arg9[%c0_65, %c0_66] : memref<1x4096xf32, #tpu.memory_space<vmem>>, vector<1x4096xf32>
    %92 = arith.addf %90, %91 : vector<1x4096xf32>
    %93 = vector.extract_strided_slice %92 {offsets = [0, 0], sizes = [1, 1024], strides = [1, 1]} : vector<1x4096xf32> to vector<1x1024xf32>
    %c0_67 = arith.constant 0 : index
    %c0_68 = arith.constant 0 : index
    %c0_69 = arith.constant 0 : index
    %94 = vector.load %arg15[%c0_67, %c0_68, %c0_69] : memref<2x8x1024xf32, #tpu.memory_space<vmem>>, vector<1x1x1024xf32>
    %95 = vector.shape_cast %94 : vector<1x1x1024xf32> to vector<1x1024xf32>
    %96 = vector.shape_cast %93 : vector<1x1024xf32> to vector<1x1x1024xf32>
    tpu.vector_store %arg15[%c0_67, %c0_68, %c0_69], %96 {strides = array<i32>} : memref<2x8x1024xf32, #tpu.memory_space<vmem>>, vector<1x1x1024xf32>,
    %97 = vector.extract_strided_slice %92 {offsets = [0, 1024], sizes = [1, 1024], strides = [1, 1]} : vector<1x4096xf32> to vector<1x1024xf32>
    %c0_70 = arith.constant 0 : index
    %c1_71 = arith.constant 1 : index
    %c0_72 = arith.constant 0 : index
    %98 = vector.load %arg15[%c0_70, %c1_71, %c0_72] : memref<2x8x1024xf32, #tpu.memory_space<vmem>>, vector<1x1x1024xf32>
    %99 = vector.shape_cast %98 : vector<1x1x1024xf32> to vector<1x1024xf32>
    %100 = vector.shape_cast %97 : vector<1x1024xf32> to vector<1x1x1024xf32>
    tpu.vector_store %arg15[%c0_70, %c1_71, %c0_72], %100 {strides = array<i32>} : memref<2x8x1024xf32, #tpu.memory_space<vmem>>, vector<1x1x1024xf32>,
    %101 = vector.extract_strided_slice %92 {offsets = [0, 2048], sizes = [1, 1024], strides = [1, 1]} : vector<1x4096xf32> to vector<1x1024xf32>
    %c0_73 = arith.constant 0 : index
    %c2_74 = arith.constant 2 : index
    %c0_75 = arith.constant 0 : index
    %102 = vector.load %arg15[%c0_73, %c2_74, %c0_75] : memref<2x8x1024xf32, #tpu.memory_space<vmem>>, vector<1x1x1024xf32>
    %103 = vector.shape_cast %102 : vector<1x1x1024xf32> to vector<1x1024xf32>
    %104 = vector.shape_cast %101 : vector<1x1024xf32> to vector<1x1x1024xf32>
    tpu.vector_store %arg15[%c0_73, %c2_74, %c0_75], %104 {strides = array<i32>} : memref<2x8x1024xf32, #tpu.memory_space<vmem>>, vector<1x1x1024xf32>,
    %105 = vector.extract_strided_slice %92 {offsets = [0, 3072], sizes = [1, 1024], strides = [1, 1]} : vector<1x4096xf32> to vector<1x1024xf32>
    %c0_76 = arith.constant 0 : index
    %c3_77 = arith.constant 3 : index
    %c0_78 = arith.constant 0 : index
    %106 = vector.load %arg15[%c0_76, %c3_77, %c0_78] : memref<2x8x1024xf32, #tpu.memory_space<vmem>>, vector<1x1x1024xf32>
    %107 = vector.shape_cast %106 : vector<1x1x1024xf32> to vector<1x1024xf32>
    %108 = vector.shape_cast %105 : vector<1x1024xf32> to vector<1x1x1024xf32>
    tpu.vector_store %arg15[%c0_76, %c3_77, %c0_78], %108 {strides = array<i32>} : memref<2x8x1024xf32, #tpu.memory_space<vmem>>, vector<1x1x1024xf32>,
    %cst_79 = arith.constant 0.000000e+00 : f32
    %109 = vector.broadcast %cst_79 : f32 to vector<4x1024xf32>
    %c0_80 = arith.constant 0 : index
    %c4_81 = arith.constant 4 : index
    %c0_82 = arith.constant 0 : index
    %110 = vector.load %arg15[%c0_80, %c4_81, %c0_82] : memref<2x8x1024xf32, #tpu.memory_space<vmem>>, vector<1x4x1024xf32>
    %111 = vector.shape_cast %110 : vector<1x4x1024xf32> to vector<4x1024xf32>
    %112 = vector.shape_cast %109 : vector<4x1024xf32> to vector<1x4x1024xf32>
    tpu.vector_store %arg15[%c0_80, %c4_81, %c0_82], %112 {strides = array<i32>} : memref<2x8x1024xf32, #tpu.memory_space<vmem>>, vector<1x4x1024xf32>,
    %c0_83 = arith.constant 0 : index
    %c0_84 = arith.constant 0 : index
    %113 = vector.load %arg10[%c0_83, %c0_84] : memref<8x24xf32, #tpu.memory_space<vmem>>, vector<8x24xf32>
    %c0_85 = arith.constant 0 : index
    %c0_86 = arith.constant 0 : index
    %114 = vector.load %arg11[%c0_85, %c0_86] : memref<8x1xf32, #tpu.memory_space<vmem>>, vector<8x1xf32>
    %cst_87 = arith.constant 0.000000e+00 : f32
    %115 = vector.broadcast %cst_87 : f32 to vector<8x4xf32>
    %c1_88 = arith.constant 1 : index
    %c0_89 = arith.constant 0 : index
    %c0_90 = arith.constant 0 : index
    %116 = vector.load %arg15[%c1_88, %c0_89, %c0_90] : memref<2x8x1024xf32, #tpu.memory_space<vmem>>, vector<1x8x4xf32>
    %117 = vector.shape_cast %116 : vector<1x8x4xf32> to vector<8x4xf32>
    %118 = vector.shape_cast %115 : vector<8x4xf32> to vector<1x8x4xf32>
    tpu.vector_store %arg15[%c1_88, %c0_89, %c0_90], %118 {strides = array<i32>} : memref<2x8x1024xf32, #tpu.memory_space<vmem>>, vector<1x8x4xf32>,
    %cst_91 = arith.constant 0.000000e+00 : f32
    %119 = vector.broadcast %cst_91 : f32 to vector<8x4xf32>
    %c1_92 = arith.constant 1 : index
    %c0_93 = arith.constant 0 : index
    %c1000 = arith.constant 1000 : index
    %120 = vector.load %arg15[%c1_92, %c0_93, %c1000] : memref<2x8x1024xf32, #tpu.memory_space<vmem>>, vector<1x8x4xf32>
    %121 = vector.shape_cast %120 : vector<1x8x4xf32> to vector<8x4xf32>
    %122 = vector.shape_cast %119 : vector<8x4xf32> to vector<1x8x4xf32>
    tpu.vector_store %arg15[%c1_92, %c0_93, %c1000], %122 {strides = array<i32>} : memref<2x8x1024xf32, #tpu.memory_space<vmem>>, vector<1x8x4xf32>,
    %c0_94 = arith.constant 0 : index
    %c0_95 = arith.constant 0 : index
    %c0_96 = arith.constant 0 : index
    %123 = vector.load %arg15[%c0_94, %c0_95, %c0_96] : memref<2x8x1024xf32, #tpu.memory_space<vmem>>, vector<1x8x996xf32>
    %124 = vector.shape_cast %123 : vector<1x8x996xf32> to vector<8x996xf32>
    %c0_97 = arith.constant 0 : index
    %c0_98 = arith.constant 0 : index
    %c1_99 = arith.constant 1 : index
    %125 = vector.load %arg15[%c0_97, %c0_98, %c1_99] : memref<2x8x1024xf32, #tpu.memory_space<vmem>>, vector<1x8x996xf32>
    %126 = vector.shape_cast %125 : vector<1x8x996xf32> to vector<8x996xf32>
    %c0_100 = arith.constant 0 : index
    %c0_101 = arith.constant 0 : index
    %c2_102 = arith.constant 2 : index
    %127 = vector.load %arg15[%c0_100, %c0_101, %c2_102] : memref<2x8x1024xf32, #tpu.memory_space<vmem>>, vector<1x8x996xf32>
    %128 = vector.shape_cast %127 : vector<1x8x996xf32> to vector<8x996xf32>
    %129 = tpu.concatenate %124, %126, %128 in 0 : vector<8x996xf32>, vector<8x996xf32>, vector<8x996xf32> -> vector<24x996xf32>
    %cst_103 = arith.constant dense<0.000000e+00> : vector<8x996xf32>
    %130 = tpu.matmul %113, %129, %cst_103 {dimension_numbers = #tpu.dot_dimension_numbers<[1], [0], [0], [1], [0, 0, 1, 1], [], []>} : vector<8x24xf32>, vector<24x996xf32>, vector<8x996xf32> -> vector<8x996xf32>
    %131 = vector.broadcast %114 : vector<8x1xf32> to vector<8x996xf32>
    %132 = arith.addf %130, %131 : vector<8x996xf32>
    %cst_104 = arith.constant 0.000000e+00 : f32
    %133 = vector.broadcast %cst_104 : f32 to vector<8x996xf32>
    %134 = arith.maximumf %132, %133 : vector<8x996xf32>
    %c1_105 = arith.constant 1 : index
    %c0_106 = arith.constant 0 : index
    %c4_107 = arith.constant 4 : index
    %135 = vector.load %arg15[%c1_105, %c0_106, %c4_107] : memref<2x8x1024xf32, #tpu.memory_space<vmem>>, vector<1x8x996xf32>
    %136 = vector.shape_cast %135 : vector<1x8x996xf32> to vector<8x996xf32>
    %137 = vector.shape_cast %134 : vector<8x996xf32> to vector<1x8x996xf32>
    tpu.vector_store %arg15[%c1_105, %c0_106, %c4_107], %137 {strides = array<i32>} : memref<2x8x1024xf32, #tpu.memory_space<vmem>>, vector<1x8x996xf32>,
    %c0_108 = arith.constant 0 : index
    %c0_109 = arith.constant 0 : index
    %138 = vector.load %arg12[%c0_108, %c0_109] : memref<26x40xf32, #tpu.memory_space<vmem>>, vector<26x40xf32>
    %c0_110 = arith.constant 0 : index
    %c0_111 = arith.constant 0 : index
    %139 = vector.load %arg13[%c0_110, %c0_111] : memref<26x1xf32, #tpu.memory_space<vmem>>, vector<26x1xf32>
    %c1_112 = arith.constant 1 : index
    %c0_113 = arith.constant 0 : index
    %c0_114 = arith.constant 0 : index
    %140 = vector.load %arg15[%c1_112, %c0_113, %c0_114] : memref<2x8x1024xf32, #tpu.memory_space<vmem>>, vector<1x8x512xf32>
    %141 = vector.shape_cast %140 : vector<1x8x512xf32> to vector<8x512xf32>
    %c1_115 = arith.constant 1 : index
    %c0_116 = arith.constant 0 : index
    %c1_117 = arith.constant 1 : index
    %142 = vector.load %arg15[%c1_115, %c0_116, %c1_117] : memref<2x8x1024xf32, #tpu.memory_space<vmem>>, vector<1x8x512xf32>
    %143 = vector.shape_cast %142 : vector<1x8x512xf32> to vector<8x512xf32>
    %c1_118 = arith.constant 1 : index
    %c0_119 = arith.constant 0 : index
    %c2_120 = arith.constant 2 : index
    %144 = vector.load %arg15[%c1_118, %c0_119, %c2_120] : memref<2x8x1024xf32, #tpu.memory_space<vmem>>, vector<1x8x512xf32>
    %145 = vector.shape_cast %144 : vector<1x8x512xf32> to vector<8x512xf32>
    %c1_121 = arith.constant 1 : index
    %c0_122 = arith.constant 0 : index
    %c3_123 = arith.constant 3 : index
    %146 = vector.load %arg15[%c1_121, %c0_122, %c3_123] : memref<2x8x1024xf32, #tpu.memory_space<vmem>>, vector<1x8x512xf32>
    %147 = vector.shape_cast %146 : vector<1x8x512xf32> to vector<8x512xf32>
    %c1_124 = arith.constant 1 : index
    %c0_125 = arith.constant 0 : index
    %c4_126 = arith.constant 4 : index
    %148 = vector.load %arg15[%c1_124, %c0_125, %c4_126] : memref<2x8x1024xf32, #tpu.memory_space<vmem>>, vector<1x8x512xf32>
    %149 = vector.shape_cast %148 : vector<1x8x512xf32> to vector<8x512xf32>
    %150 = tpu.concatenate %141, %143, %145, %147, %149 in 0 : vector<8x512xf32>, vector<8x512xf32>, vector<8x512xf32>, vector<8x512xf32>, vector<8x512xf32> -> vector<40x512xf32>
    %cst_127 = arith.constant dense<0.000000e+00> : vector<26x512xf32>
    %151 = tpu.matmul %138, %150, %cst_127 {dimension_numbers = #tpu.dot_dimension_numbers<[1], [0], [0], [1], [0, 0, 1, 1], [], []>} : vector<26x40xf32>, vector<40x512xf32>, vector<26x512xf32> -> vector<26x512xf32>
    %152 = vector.broadcast %139 : vector<26x1xf32> to vector<26x512xf32>
    %153 = arith.addf %151, %152 : vector<26x512xf32>
    %cst_128 = arith.constant 0.000000e+00 : f32
    %154 = vector.broadcast %cst_128 : f32 to vector<26x512xf32>
    %155 = arith.maximumf %153, %154 : vector<26x512xf32>
    %156 = math.tanh %155 : vector<26x512xf32>
    %c0_129 = arith.constant 0 : index
    %c0_130 = arith.constant 0 : index
    %c0_131 = arith.constant 0 : index
    %157 = vector.load %arg14[%c0_129, %c0_130, %c0_131] : memref<1x26x1000xf32, #tpu.memory_space<vmem>>, vector<1x26x512xf32>
    %158 = vector.shape_cast %157 : vector<1x26x512xf32> to vector<26x512xf32>
    %159 = vector.shape_cast %156 : vector<26x512xf32> to vector<1x26x512xf32>
    tpu.vector_store %arg14[%c0_129, %c0_130, %c0_131], %159 {strides = array<i32>} : memref<1x26x1000xf32, #tpu.memory_space<vmem>>, vector<1x26x512xf32>,
    %c1_132 = arith.constant 1 : index
    %c0_133 = arith.constant 0 : index
    %c512_134 = arith.constant 512 : index
    %160 = vector.load %arg15[%c1_132, %c0_133, %c512_134] : memref<2x8x1024xf32, #tpu.memory_space<vmem>>, vector<1x8x488xf32>
    %161 = vector.shape_cast %160 : vector<1x8x488xf32> to vector<8x488xf32>
    %c1_135 = arith.constant 1 : index
    %c0_136 = arith.constant 0 : index
    %c513_137 = arith.constant 513 : index
    %162 = vector.load %arg15[%c1_135, %c0_136, %c513_137] : memref<2x8x1024xf32, #tpu.memory_space<vmem>>, vector<1x8x488xf32>
    %163 = vector.shape_cast %162 : vector<1x8x488xf32> to vector<8x488xf32>
    %c1_138 = arith.constant 1 : index
    %c0_139 = arith.constant 0 : index
    %c514_140 = arith.constant 514 : index
    %164 = vector.load %arg15[%c1_138, %c0_139, %c514_140] : memref<2x8x1024xf32, #tpu.memory_space<vmem>>, vector<1x8x488xf32>
    %165 = vector.shape_cast %164 : vector<1x8x488xf32> to vector<8x488xf32>
    %c1_141 = arith.constant 1 : index
    %c0_142 = arith.constant 0 : index
    %c515_143 = arith.constant 515 : index
    %166 = vector.load %arg15[%c1_141, %c0_142, %c515_143] : memref<2x8x1024xf32, #tpu.memory_space<vmem>>, vector<1x8x488xf32>
    %167 = vector.shape_cast %166 : vector<1x8x488xf32> to vector<8x488xf32>
    %c1_144 = arith.constant 1 : index
    %c0_145 = arith.constant 0 : index
    %c516_146 = arith.constant 516 : index
    %168 = vector.load %arg15[%c1_144, %c0_145, %c516_146] : memref<2x8x1024xf32, #tpu.memory_space<vmem>>, vector<1x8x488xf32>
    %169 = vector.shape_cast %168 : vector<1x8x488xf32> to vector<8x488xf32>
    %170 = tpu.concatenate %161, %163, %165, %167, %169 in 0 : vector<8x488xf32>, vector<8x488xf32>, vector<8x488xf32>, vector<8x488xf32>, vector<8x488xf32> -> vector<40x488xf32>
    %cst_147 = arith.constant dense<0.000000e+00> : vector<26x488xf32>
    %171 = tpu.matmul %138, %170, %cst_147 {dimension_numbers = #tpu.dot_dimension_numbers<[1], [0], [0], [1], [0, 0, 1, 1], [], []>} : vector<26x40xf32>, vector<40x488xf32>, vector<26x488xf32> -> vector<26x488xf32>
    %172 = vector.broadcast %139 : vector<26x1xf32> to vector<26x488xf32>
    %173 = arith.addf %171, %172 : vector<26x488xf32>
    %cst_148 = arith.constant 0.000000e+00 : f32
    %174 = vector.broadcast %cst_148 : f32 to vector<26x488xf32>
    %175 = arith.maximumf %173, %174 : vector<26x488xf32>
    %176 = math.tanh %175 : vector<26x488xf32>
    %c0_149 = arith.constant 0 : index
    %c0_150 = arith.constant 0 : index
    %c512_151 = arith.constant 512 : index
    %177 = vector.load %arg14[%c0_149, %c0_150, %c512_151] : memref<1x26x1000xf32, #tpu.memory_space<vmem>>, vector<1x26x488xf32>
    %178 = vector.shape_cast %177 : vector<1x26x488xf32> to vector<26x488xf32>
    %179 = vector.shape_cast %176 : vector<26x488xf32> to vector<1x26x488xf32>
    tpu.vector_store %arg14[%c0_149, %c0_150, %c512_151], %179 {strides = array<i32>} : memref<1x26x1000xf32, #tpu.memory_space<vmem>>, vector<1x26x488xf32>,
    return
  }
  func.func @transform_0(%arg0: i32) -> (i32, i32, i32) {
    %c0_i32 = arith.constant 0 : i32
    %c0_i32_0 = arith.constant 0 : i32
    %c0_i32_1 = arith.constant 0 : i32
    return %arg0, %c0_i32, %c0_i32_0 : i32, i32, i32
  }
  func.func @transform_1(%arg0: i32) -> (i32, i32) {
    %c0_i32 = arith.constant 0 : i32
    %c0_i32_0 = arith.constant 0 : i32
    %c0_i32_1 = arith.constant 0 : i32
    return %c0_i32, %c0_i32_0 : i32, i32
  }
  func.func @transform_2(%arg0: i32) -> (i32, i32) {
    %c0_i32 = arith.constant 0 : i32
    %c0_i32_0 = arith.constant 0 : i32
    %c0_i32_1 = arith.constant 0 : i32
    return %c0_i32, %c0_i32_0 : i32, i32
  }
  func.func @transform_3(%arg0: i32) -> (i32, i32) {
    %c0_i32 = arith.constant 0 : i32
    %c0_i32_0 = arith.constant 0 : i32
    %c0_i32_1 = arith.constant 0 : i32
    return %c0_i32, %c0_i32_0 : i32, i32
  }
  func.func @transform_4(%arg0: i32) -> (i32, i32) {
    %c0_i32 = arith.constant 0 : i32
    %c0_i32_0 = arith.constant 0 : i32
    %c0_i32_1 = arith.constant 0 : i32
    return %c0_i32, %c0_i32_0 : i32, i32
  }
  func.func @transform_5(%arg0: i32) -> (i32, i32) {
    %c0_i32 = arith.constant 0 : i32
    %c0_i32_0 = arith.constant 0 : i32
    %c0_i32_1 = arith.constant 0 : i32
    return %c0_i32, %c0_i32_0 : i32, i32
  }
  func.func @transform_6(%arg0: i32) -> (i32, i32) {
    %c0_i32 = arith.constant 0 : i32
    %c0_i32_0 = arith.constant 0 : i32
    %c0_i32_1 = arith.constant 0 : i32
    return %c0_i32, %c0_i32_0 : i32, i32
  }
  func.func @transform_7(%arg0: i32) -> (i32, i32) {
    %c0_i32 = arith.constant 0 : i32
    %c0_i32_0 = arith.constant 0 : i32
    %c0_i32_1 = arith.constant 0 : i32
    return %c0_i32, %c0_i32_0 : i32, i32
  }
  func.func @transform_8(%arg0: i32) -> (i32, i32) {
    %c0_i32 = arith.constant 0 : i32
    %c0_i32_0 = arith.constant 0 : i32
    %c0_i32_1 = arith.constant 0 : i32
    return %c0_i32, %c0_i32_0 : i32, i32
  }
  func.func @transform_9(%arg0: i32) -> (i32, i32) {
    %c0_i32 = arith.constant 0 : i32
    %c0_i32_0 = arith.constant 0 : i32
    %c0_i32_1 = arith.constant 0 : i32
    return %c0_i32, %c0_i32_0 : i32, i32
  }
  func.func @transform_10(%arg0: i32) -> (i32, i32) {
    %c0_i32 = arith.constant 0 : i32
    %c0_i32_0 = arith.constant 0 : i32
    %c0_i32_1 = arith.constant 0 : i32
    return %c0_i32, %c0_i32_0 : i32, i32
  }
  func.func @transform_11(%arg0: i32) -> (i32, i32) {
    %c0_i32 = arith.constant 0 : i32
    %c0_i32_0 = arith.constant 0 : i32
    %c0_i32_1 = arith.constant 0 : i32
    return %c0_i32, %c0_i32_0 : i32, i32
  }
  func.func @transform_12(%arg0: i32) -> (i32, i32) {
    %c0_i32 = arith.constant 0 : i32
    %c0_i32_0 = arith.constant 0 : i32
    %c0_i32_1 = arith.constant 0 : i32
    return %c0_i32, %c0_i32_0 : i32, i32
  }
  func.func @transform_13(%arg0: i32) -> (i32, i32, i32) {
    %c0_i32 = arith.constant 0 : i32
    %c0_i32_0 = arith.constant 0 : i32
    %c0_i32_1 = arith.constant 0 : i32
    return %arg0, %c0_i32, %c0_i32_0 : i32, i32, i32
  }
}

</mosaic_0001>

<bundles_post_ra>
// kernel: forward.1
= control target key start
LH: loop header
LB: loop body
LE: loop exit
PB: predicated region body
PF: predicated region fallthrough
CT: control target
= control target key end

     0   :  { %18 = vsyncpa [#allocation4], 0  ;;  %s4812_s25 = smov 0   ;;  %s6722_s0 = inlined_call_operand.vmem [shape: f32[2,32,1000], index: 0, kind: input, shape index: {}]   ;;  %s6723_s1 = inlined_call_operand.vmem [shape: f32[8,160], index: 1, kind: input, shape index: {}]   ;;  %s6724_s2 = inlined_call_operand.vmem [shape: f32[8,1], index: 2, kind: input, shape index: {}]   ;;  %s6725_s3 = inlined_call_operand.vmem [shape: f32[4,24], index: 3, kind: input, shape index: {}]   ;;  %s6726_s4 = inlined_call_operand.vmem [shape: f32[4,1], index: 4, kind: input, shape index: {}]   ;;  %s6727_s5 = inlined_call_operand.hbm [shape: f32[994,128], index: 5, kind: input, shape index: {}]   ;;  %s6728_s6 = inlined_call_operand.vmem [shape: f32[1,32], index: 6, kind: input, shape index: {}]   ;;  %s6729_s7 = inlined_call_operand.vmem [shape: f32[32,4096], index: 7, kind: input, shape index: {}]   ;;  %s6730_s8 = inlined_call_operand.vmem [shape: f32[1,4096], index: 8, kind: input, shape index: {}]   ;;  %s6731_s9 = inlined_call_operand.vmem [shape: f32[8,24], index: 9, kind: input, shape index: {}]   ;;  %s6732_s10 = inlined_call_operand.vmem [shape: f32[8,1], index: 10, kind: input, shape index: {}]   ;;  %s6733_s11 = inlined_call_operand.vmem [shape: f32[26,40], index: 11, kind: input, shape index: {}]   ;;  %s6734_s12 = inlined_call_operand.vmem [shape: f32[26,1], index: 12, kind: input, shape index: {}]   ;;  %s6735_s13 = inlined_call_operand.vmem [shape: f32[2,26,1000], index: 13, kind: output, shape index: {}]  }
   0x1 LB: > { %s356_s28 = sshll.u32 %s6727_s5, 4  ;;  %s3895_s29 = sadd.s32 4294967295, %s4728_s25   ;;  %s4728_s25 = sphi %s4812_s25, %s24_s25   ;;  %s357_s28 = int_to_ptr.hbm [resolvable:$true] %s356_s28 }
   0x2   : > { %p3897_p0 = scmp.ge.s32.totalorder %s4728_s25, 1  ;;  %p333_p1 = scmp.lt.s32.totalorder %s4728_s25, 3 }
   0x3   : > { %p4008_p2 = scmp.eq.s32.totalorder %s3895_s29, 0  ;;  %s4730_s30 = smov [#allocation3]  }
   0x4   : > { %p334_p3 = pnand %p3897_p0, %p333_p1  ;;  %s358_s14 = sshll.u32 %s4730_s30, 4  ;;  %s359_s14 = int_to_ptr.vmem [resolvable:$true] %s358_s14 }
   0x5   : > { %s4731_s15 = smov 128   ;;  %s4732_s16 = smov 8  }
   0x6   : > { %p4004_p4 = pneg %p334_p3  ;;  %403 = sbr.rel (%p334_p3) target bundleno = 2089 (0x829), region = 72 }
   0x8   : > { %p4005_p5 = pnand %p4008_p2, %p4004_p4 }
   0xa   : > { %4007 = dma.hbm_to_vmem [thread:$0]  (!%p4005_p5), %s357_s28, 16000, %s359_s14, [#allocation4], %s4731_s15, %s4731_s15, %s4732_s16  }
   0xb   : > { %4723 = dma.done.wait (%p4008_p2), [#allocation4], 16000  }
   0xc   : > { %4725 = vsyncadd (%p4008_p2), [#allocation4], 4294951296  ;;  %p448_p6 = scmp.lt.s32.totalorder %s3895_s29, 1  ;;  %s4733_s21 = smov 126   ;;  %vm591_vm0 = vcmask 1022976   ;;  %vm632_vm1 = vcmask 1014784  }
   0xd   : > { %s4734_s22 = smov 125   ;;  %s4735_s23 = smov 127   ;;  %vm550_vm2 = vcmask 1031168   ;;  %vm509_vm3 = vcmask 1039360   ;;  %vm654_vm4 = vcmask 261120   ;;  %vm1559_vm5 = vcmask 195584  }
   0xe   : > { %s6759_s29 = smov (!%p448_p6, %s3895_s29), 1  ;;  %s4736_s24 = smov 124   ;;  %vm1860_vm6 = vcmask 1041408   ;;  %vm1856_vm7 = vcmask 801792   ;;  %vm2896_vm8 = vcmask 1040384   ;;  %vm2898_vm9 = vcmask 1042434  }
   0xf   : > { %s3998_s17 = sshll.u32 %s6759_s29, 8  ;;  %s4738_s26 = smov 96   ;;  %vm2901_vm10 = vcmask 1044484   ;;  %vm2903_vm11 = vcmask 1046534   ;;  %vm2905_vm12 = vcmask 1045508   ;;  %vm2907_vm13 = vcmask 1043456  }
  0x10   : > { %s4831_s20 = scalar_lea.vmem %s6722_s0, %s3998_s17  ;;  %s4739_s18 = smov 64   ;;  %vm3001_vm14 = vcmask 31744   ;;  %vm3298_vm15 = vcmask 1047584  }
  0x11   : > { %v4834_v0 = vld [vmem:[%s4831_s20 + $0xc0] sm:$0xff]  ;;  %v4837_v1 = vld [vmem:[%s4831_s20 + $0xc8] sm:$0xff]  ;;  %v747_v12 = vld [vmem:[%s4831_s20 + $0xd8] sm:$0xff]  ;;  %s4741_s28 = smov 4  }
  0x12   : > { %v4840_v2 = vld [vmem:[%s4831_s20 + $0x40] sm:$0xff]  ;;  %v4050_v3 = vpack.i.bf16 %v4837_v1, %v4834_v0  ;;  %v4845_v4 = vld [vmem:[%s4831_s20 + $0x48] sm:$0xff]  ;;  %v472_v14 = vld [vmem:[%s4831_s20 + $0xd0] sm:$0xff] }
  0x13   : > { %v4040_v5 = vpack.i.bf16 %v4845_v4, %v4840_v2  ;;  %v4853_v6 = vld [vmem:[%s4831_s20 + $0x80] sm:$0xff]  ;;  %v4856_v7 = vld [vmem:[%s4831_s20 + $0x88] sm:$0xff]  ;;  %v471_v15 = vld [vmem:[%s4831_s20 + $0x90] sm:$0xff]  ;;  %v4100_v17 = vpack.i.bf16 %v472_v14, %v4837_v1  ;;  %v4917_v36 = vpack.i.bf16 %v747_v12, %v472_v14  ;;  %v4155_v38 = vpack.i.bf16 %v472_v14, %v4834_v0 }
  0x14   : > { %4051 = vrot.lane.b32.xlu2 %v4050_v3, %s4733_s21  ;;  %4031 = vrot.lane.b32.xlu0 %v4050_v3, %s4734_s22  ;;  %v4859_v8 = vld [vmem:[%s4831_s20] sm:$0xff]  ;;  %v4862_v9 = vld [vmem:[%s4831_s20 + $0x8] sm:$0xff]  ;;  %v4055_v10 = vpack.i.bf16 %v4856_v7, %v4853_v6  ;;  %v4882_v18 = vpack.i.bf16 %v471_v15, %v472_v14  ;;  %v4110_v25 = vpack.i.bf16 %v471_v15, %v4856_v7 }
  0x15   : > { %4041 = vrot.lane.b32.xlu1 %v4040_v5, %s4734_s22  ;;  %v4045_v11 = vpack.i.bf16 %v4862_v9, %v4859_v8  ;;  %v751_v13 = vld [vmem:[%s4831_s20 + $0xe0] sm:$0xff]  ;;  %v745_v19 = vld [vmem:[%s4831_s20 + $0x98] sm:$0xff]  ;;  %v4896_v26 = vld [vmem:[%s4831_s20 + $0x10] sm:$0xff]  ;;  %v4180_v43 = vpack.i.bf16 %v471_v15, %v4853_v6 }
  0x16   : > { %v4090_v16 = vpack.i.bf16 %v751_v13, %v747_v12  ;;  %v750_v20 = vld [vmem:[%s4831_s20 + $0xa0] sm:$0xff]  ;;  %v743_v21 = vld [vmem:[%s4831_s20 + $0x58] sm:$0xff]  ;;  %v4900_v27 = vld [vmem:[%s4831_s20 + $0x50] sm:$0xff]  ;;  %v4135_v34 = vpack.i.bf16 %v4896_v26, %v4862_v9  ;;  %v4923_v37 = vpack.i.bf16 %v745_v19, %v471_v15  ;;  %v4932_v40 = vpack.i.bf16 %v751_v13, %v751_v13 }
  0x17   : > { %v749_v22 = vld [vmem:[%s4831_s20 + $0x60] sm:$0xff]  ;;  %v4105_v23 = vpack.i.bf16 %v750_v20, %v745_v19  ;;  %v741_v28 = vld [vmem:[%s4831_s20 + $0x18] sm:$0xff]  ;;  %v4906_v30 = vpack.i.bf16 %v4896_v26, %v4900_v27  ;;  %v4125_v32 = vpack.i.bf16 %v4900_v27, %v4845_v4  ;;  %v1013_v33 = vld [vmem:[%s4831_s20 + $0xe8] sm:$0xff]  ;;  %v4946_v44 = vpack.i.bf16 %v750_v20, %v743_v21 }
  0x18   : > { %v4115_v24 = vpack.i.bf16 %v749_v22, %v743_v21  ;;  %v748_v29 = vld [vmem:[%s4831_s20 + $0x20] sm:$0xff]  ;;  %v4145_v35 = vpack.i.bf16 %v1013_v33, %v751_v13  ;;  %v1011_v39 = vld [vmem:[%s4831_s20 + $0xa8] sm:$0xff]  ;;  %v4937_v42 = vpack.i.bf16 %v4900_v27, %v1013_v33  ;;  %v4205_v47 = vpack.i.bf16 %v4900_v27, %v4840_v2  ;;  %v4990_v57 = vld [vmem:[%s4831_s20 + $0xb0] sm:$0xff] }
  0x19   : > { %v4130_v31 = vpack.i.bf16 %v748_v29, %v741_v28  ;;  %v4934_v41 = vpack.i.bf16 %v1011_v39, %v750_v20  ;;  %v1009_v45 = vld [vmem:[%s4831_s20 + $0x68] sm:$0xff]  ;;  %v4963_v49 = vpack.i.bf16 %v741_v28, %v4896_v26  ;;  %v4967_v51 = vpack.i.bf16 %v749_v22, %v749_v22  ;;  %v4993_v58 = vld [vmem:[%s4831_s20 + $0xf0] sm:$0xff]  ;;  %v5026_v14 = vld [vmem:[%s4831_s20 + $0xf8] sm:$0xff] }
  0x1a   : > { %v4195_v46 = vpack.i.bf16 %v1009_v45, %v749_v22  ;;  %v4965_v50 = vpack.i.bf16 %v748_v29, %v1009_v45  ;;  %v1007_v52 = vld [vmem:[%s4831_s20 + $0x28] sm:$0xff]  ;;  %v4230_v55 = vpack.i.bf16 %v4896_v26, %v4859_v8  ;;  %v4245_v59 = vpack.i.bf16 %v4990_v57, %v4993_v58  ;;  %v1277_v39 = vld [vmem:[%s4831_s20 + $0xb8] sm:$0xff]  ;;  %v5075_v45 = vld [vmem:[%s4831_s20 + $0x70] sm:$0xff] }
  0x1b   : > { %v4978_v54 = vpack.i.bf16 %v1007_v52, %v748_v29  ;;  %v5038_v22 = vpack.i.bf16 %v4993_v58, %v4993_v58 }
  0x1c   : > { %4056 = vrot.lane.b32.xlu2 %v4055_v10, %s4733_s21  ;;  %4036 = vrot.lane.b32.xlu0 %v4055_v10, %s4734_s22 }
  0x1d   : > { %4046 = vrot.lane.b32.xlu1 %v4045_v11, %s4734_s22 }
  0x24   : > { %4071 = vrot.lane.b32.xlu2 %v4050_v3, %s4735_s23  ;;  %4061 = vrot.lane.b32.xlu0 %v4040_v5, %s4733_s21 }
  0x25   : > { %4066 = vrot.lane.b32.xlu1 %v4045_v11, %s4733_s21 }
  0x2c   : > { %4076 = vrot.lane.b32.xlu0 %v4055_v10, %s4735_s23  ;;  %4086 = vrot.lane.b32.xlu2 %v4045_v11, %s4735_s23 }
  0x2d   : > { %4081 = vrot.lane.b32.xlu1 %v4040_v5, %s4735_s23 }
  0x34   : > { %4091 = vrot.lane.b32.xlu0 %v4090_v16, %s4736_s24  ;;  %4101 = vrot.lane.b32.xlu2 %v4100_v17, %s4736_s24 }
  0x35   : > { %4096 = vrot.lane.b32.xlu1 %v4882_v18, %s4734_s22 }
  0x3c   : > { %4106 = vrot.lane.b32.xlu0 %v4105_v23, %s4736_s24  ;;  %4116 = vrot.lane.b32.xlu2 %v4115_v24, %s4736_s24  ;;  %v5045_v24 = vpack.i.bf16 %v4990_v57, %v5026_v14 }
  0x3d   : > { %4111 = vrot.lane.b32.xlu1 %v4110_v25, %s4736_s24 }
  0x44   : > { %4121 = vrot.lane.b32.xlu0 %v4906_v30, %s4734_s22  ;;  %4131 = vrot.lane.b32.xlu2 %v4130_v31, %s4736_s24 }
  0x45   : > { %4126 = vrot.lane.b32.xlu1 %v4125_v32, %s4736_s24 }
  0x4c   : > { %4136 = vrot.lane.b32.xlu0 %v4135_v34, %s4736_s24  ;;  %4146 = vrot.lane.b32.xlu2 %v4145_v35, %s4736_s24 }
  0x4d   : > { %4141 = vrot.lane.b32.xlu1 %v4917_v36, %s4734_s22 }
  0x54   : > { %4151 = vrot.lane.b32.xlu0 %v4882_v18, %s4733_s21  ;;  %4161 = vrot.lane.b32.xlu2 %v4923_v37, %s4734_s22 }
  0x55   : > { %4156 = vrot.lane.b32.xlu1 %v4155_v38, %s4736_s24 }
  0x5c   : > { %4166 = vrot.lane.b32.xlu0 %v4932_v40, %s4734_s22  ;;  %4176 = vrot.lane.b32.xlu2 %v4934_v41, %s4736_s24 }
  0x5d   : > { %4171 = vrot.lane.b32.xlu1 %v4937_v42, %s4734_s22 }
  0x64   : > { %4181 = vrot.lane.b32.xlu0 %v4180_v43, %s4736_s24  ;;  %4191 = vrot.lane.b32.xlu2 %v4934_v41, %s4734_s22  ;;  %v5072_v43 = vld [vmem:[%s4831_s20 + $0x30] sm:$0xff] }
  0x65   : > { %4186 = vrot.lane.b32.xlu1 %v4946_v44, %s4734_s22 }
  0x6c   : > { %4196 = vrot.lane.b32.xlu0 %v4195_v46, %s4736_s24  ;;  %4206 = vrot.lane.b32.xlu2 %v4205_v47, %s4736_s24 }
  0x6d   : > { %4201 = vrot.lane.b32.xlu1 %v4906_v30, %s4733_s21 }
  0x6e   : > { %v4960_v48 = vpop.permute.xlu2 %4051 }
  0x6f   : > { %v4054_v28 = vunpack.i.h.bf16 %v4960_v48  ;;  %v4053_v29 = vunpack.i.l.bf16 %v4960_v48 }
  0x74   : > { %4211 = vrot.lane.b32.xlu0 %v4963_v49, %s4734_s22  ;;  %4221 = vrot.lane.b32.xlu2 %v4965_v50, %s4734_s22 }
  0x75   : > { %4216 = vrot.lane.b32.xlu1 %v4967_v51, %s4734_s22 }
  0x76   : > { %v4976_v53 = vpop.permute.xlu2 %4056 }
  0x77   : > { %v6742_v33 = vunpack.i.h.bf16 %v4976_v53  ;;  %v4058_v34 = vunpack.i.l.bf16 %v4976_v53 }
  0x7c   : > { %4226 = vrot.lane.b32.xlu0 %v4978_v54, %s4736_s24  ;;  %4236 = vrot.lane.b32.xlu2 %v4917_v36, %s4733_s21 }
  0x7d   : > { %4231 = vrot.lane.b32.xlu1 %v4230_v55, %s4736_s24  ;;  %v557_v55 = vsel %vm550_vm2, %v4053_v29, %v4054_v28 }
  0x7e   : > { %v4987_v56 = vpop.permute.xlu2 %4071 }
  0x84   : > { %4241 = vrot.lane.b32.xlu0 %v4978_v54, %s4734_s22  ;;  %4251 = vrot.lane.b32.xlu2 %v4882_v18, %s4735_s23 }
  0x85   : > { %4246 = vrot.lane.b32.xlu1 %v4245_v59, %s4736_s24 }
  0x86   : > { %v5002_v60 = vpop.permute.xlu0 %4031  ;;  %v5004_v61 = vpop.permute.xlu2 %4086 }
  0x87   : > { %v4034_v62 = vunpack.i.h.bf16 %v5002_v60  ;;  %v4033_v63 = vunpack.i.l.bf16 %v5002_v60  ;;  %v5008_v3 = vpop.permute.xlu1 %4041  ;;  %v5174_v60 = vld [vmem:[%s6723_s1] sm:$0xff] }
  0x88   : > { %v4044_v10 = vunpack.i.h.bf16 %v5008_v3  ;;  %v4043_v11 = vunpack.i.l.bf16 %v5008_v3 }
  0x89   : > { %v598_v5 = vsel %vm591_vm0, %v4033_v63, %v4034_v62 }
  0x8a   : > { %658 = vmatpush.msra.mxu0 %v598_v5  ;;  %v594_v31 = vsel %vm591_vm0, %v4043_v11, %v4044_v10  ;;  %v555_v5 = vsel %vm550_vm2, %v4058_v34, %v6742_v33  ;;  %v6739_v11 = vunpack.i.h.bf16 %v4987_v56  ;;  %v4088_v34 = vunpack.i.l.bf16 %v5004_v61 }
  0x8c   : > { %4256 = vrot.lane.b32.xlu0 %v4923_v37, %s4733_s21  ;;  %4266 = vrot.lane.b32.xlu2 %v4937_v42, %s4733_s21 }
  0x8d   : > { %4261 = vrot.lane.b32.xlu1 %v4932_v40, %s4733_s21 }
  0x8e   : > { %v5021_v12 = vpop.permute.xlu0 %4036  ;;  %v5023_v13 = vpop.permute.xlu2 %4101 }
  0x8f   : > { %v4039_v15 = vunpack.i.h.bf16 %v5021_v12  ;;  %v4038_v16 = vunpack.i.l.bf16 %v5021_v12  ;;  %v4104_v17 = vunpack.i.h.bf16 %v5023_v13  ;;  %v6744_v18 = vunpack.i.l.bf16 %v5023_v13  ;;  %v5032_v19 = vpop.permute.xlu1 %4046 }
  0x90   : > { %v4049_v20 = vunpack.i.h.bf16 %v5032_v19  ;;  %v4048_v21 = vunpack.i.l.bf16 %v5032_v19 }
  0x91   : > { %v596_v23 = vsel %vm591_vm0, %v4038_v16, %v4039_v15  ;;  %v640_v25 = vsel %vm632_vm1, %v6744_v18, %v4104_v17  ;;  %v4073_v16 = vunpack.i.l.bf16 %v4987_v56  ;;  %v5092_v17 = vpack.i.bf16 %v1277_v39, %v4990_v57 }
  0x92   : > { %659 = vmatpush.msra.mxu0 %v596_v23  ;;  %730 = vmatpush.msra.mxu3 %v640_v25  ;;  %v592_v32 = vsel %vm591_vm0, %v4048_v21, %v4049_v20  ;;  %v4290_v21 = vpack.i.bf16 %v5072_v43, %v5075_v45 }
  0x93   : > { %v516_v57 = vsel %vm509_vm3, %v4073_v16, %v6739_v11 }
  0x94   : > { %660 = vmatpush.msra.mxu0 %v594_v31  ;;  %4271 = vrot.lane.b32.xlu0 %v5038_v22, %s4734_s22 }
  0x95   : > { %4281 = vrot.lane.b32.xlu2 %v4946_v44, %s4733_s21  ;;  %4276 = vrot.lane.b32.xlu1 %v5045_v24, %s4734_s22 }
  0x96   : > { %v5066_v35 = vpop.permute.xlu0 %4061  ;;  %v5068_v38 = vpop.permute.xlu2 %4116  ;;  %661 = vmatpush.msra.mxu0 %v592_v32  ;;  %v6736_v32 = vunpack.i.h.bf16 %v5004_v61 }
  0x97   : > { %v6741_v46 = vunpack.i.h.bf16 %v5066_v35  ;;  %v4063_v47 = vunpack.i.l.bf16 %v5066_v35  ;;  %v5079_v52 = vpop.permute.xlu1 %4066 }
  0x98   : > { %v6740_v59 = vunpack.i.h.bf16 %v5079_v52  ;;  %v4068_v63 = vunpack.i.l.bf16 %v5079_v52  ;;  %662 = vmatpush.msra.mxu0 %v557_v55 }
  0x99   : > { %v553_v23 = vsel %vm550_vm2, %v4063_v47, %v6741_v46 }
  0x9a   : > { %663 = vmatpush.msra.mxu0 %v555_v5  ;;  %v551_v25 = vsel %vm550_vm2, %v4068_v63, %v6740_v59 }
  0x9c   : > { %4286 = vrot.lane.b32.xlu0 %v4934_v41, %s4733_s21  ;;  %664 = vmatpush.msra.mxu0 %v553_v23  ;;  %v510_v23 = vsel %vm509_vm3, %v4088_v34, %v6736_v32 }
  0x9d   : > { %4296 = vrot.lane.b32.xlu2 %v5092_v17, %s4734_s22  ;;  %4291 = vrot.lane.b32.xlu1 %v4290_v21, %s4736_s24 }
  0x9e   : > { %v5110_v29 = vpop.permute.xlu0 %4076  ;;  %v5112_v31 = vpop.permute.xlu2 %4131  ;;  %665 = vmatpush.msra.mxu0 %v551_v25 }
  0x9f   : > { %v6738_v39 = vunpack.i.h.bf16 %v5110_v29  ;;  %v4078_v47 = vunpack.i.l.bf16 %v5110_v29  ;;  %v5118_v55 = vpop.permute.xlu1 %4081  ;;  %v4134_v12 = vunpack.i.h.bf16 %v5112_v31 }
  0xa0   : > { %v6737_v63 = vunpack.i.h.bf16 %v5118_v55  ;;  %v4083_v5 = vunpack.i.l.bf16 %v5118_v55  ;;  %666 = vmatpush.msra.mxu0 %v516_v57 }
  0xa1   : > { %v514_v16 = vsel %vm509_vm3, %v4078_v47, %v6738_v39  ;;  %v5142_v47 = vld [vmem:[%s4831_s20 + $0x78] sm:$0xff] }
  0xa2   : > { %667 = vmatpush.msra.mxu0 %v514_v16  ;;  %v512_v21 = vsel %vm509_vm3, %v4083_v5, %v6737_v63 }
  0xa4   : > { %4301 = vrot.lane.b32.xlu0 %v4906_v30, %s4735_s23  ;;  %668 = vmatpush.msra.mxu0 %v512_v21  ;;  %v5147_v30 = vpack.i.bf16 %v5072_v43, %v5142_v47  ;;  %v5151_v21 = vpack.i.bf16 %v5075_v45, %v5075_v45 }
  0xa5   : > { %4311 = vrot.lane.b32.xlu2 %v4967_v51, %s4733_s21  ;;  %4306 = vrot.lane.b32.xlu1 %v4963_v49, %s4733_s21 }
  0xa6   : > { %v5137_v25 = vpop.permute.xlu0 %4091  ;;  %v5139_v57 = vpop.permute.xlu2 %4146  ;;  %669 = vmatpush.msra.mxu0 %v510_v23  ;;  %v4119_v23 = vunpack.i.h.bf16 %v5068_v38 }
  0xa7   : > { %v4097_v5 = vpop.permute.xlu1 %4096  ;;  %v4094_v32 = vunpack.i.h.bf16 %v5137_v25  ;;  %v6743_v63 = vunpack.i.l.bf16 %v5137_v25  ;;  %v6745_v11 = vunpack.i.h.bf16 %v5139_v57 }
  0xa8   : > { %v4098_v16 = vunpack.i.l.bf16 %v4097_v5  ;;  %670 = vmatpush.msra.mxu0 %v4834_v0  ;;  %v4099_v34 = vunpack.i.h.bf16 %v4097_v5  ;;  %v4118_v5 = vunpack.i.l.bf16 %v5068_v38 }
  0xaa   : > { %671 = vmatpush.msra.mxu0 %v4853_v6  ;;  %v599_v0 = vsel %vm591_vm0, %v4034_v62, %v4098_v16  ;;  %v597_v6 = vsel %vm591_vm0, %v4039_v15, %v4099_v34  ;;  %v915_v16 = vsel %vm632_vm1, %v6743_v63, %v4094_v32  ;;  %v4133_v15 = vunpack.i.l.bf16 %v5112_v31 }
  0xab   : > { %698 = vmatpush.msra.mxu2 %v599_v0  ;;  %v5185_v0 = vld [vmem:[%s4831_s20 + $0x38] sm:$0xff] }
  0xac   : > { %4316 = vrot.lane.b32.xlu0 %v4965_v50, %s4733_s21  ;;  %672 = vmatpush.msra.mxu0 %v4840_v2  ;;  %v5203_v33 = vpack.i.bf16 %v5185_v0, %v5072_v43  ;;  %v909_v18 = vsel %vm632_vm1, %v4133_v15, %v4134_v12 }
  0xad   : > { %4326 = vrot.lane.b32.xlu2 %v5147_v30, %s4734_s22  ;;  %4321 = vrot.lane.b32.xlu1 %v5151_v21, %s4734_s22 }
  0xae   : > { %699 = vmatpush.msra.mxu2 %v597_v6  ;;  %v5176_v2 = vpop.permute.xlu0 %4106  ;;  %v5178_v62 = vpop.permute.xlu2 %4161  ;;  %673 = vmatpush.msra.mxu0 %v4859_v8  ;;  %v4148_v8 = vunpack.i.l.bf16 %v5139_v57 }
  0xaf   : > { %v4109_v34 = vunpack.i.h.bf16 %v5176_v2  ;;  %v4108_v6 = vunpack.i.l.bf16 %v5176_v2  ;;  %v5191_v39 = vpop.permute.xlu1 %4111  ;;  %674 = vmatmul.f32.vlgmr.msra.gmra.mxu0 %v5174_v60 }
  0xb0   : > { %996 = vmatpush.msrb.mxu0 %v915_v16  ;;  %v4114_v59 = vunpack.i.h.bf16 %v5191_v39  ;;  %v4113_v32 = vunpack.i.l.bf16 %v5191_v39  ;;  %v911_v16 = vsel %vm632_vm1, %v4118_v5, %v4119_v23  ;;  %v1180_v43 = vsel %vm632_vm1, %v4148_v8, %v6745_v11 }
  0xb1   : > { %v913_v46 = vsel %vm632_vm1, %v4108_v6, %v4109_v34 }
  0xb2   : > { %997 = vmatpush.msrb.mxu0 %v913_v46  ;;  %v638_v63 = vsel %vm632_vm1, %v4113_v32, %v4114_v59 }
  0xb3   : > { %731 = vmatpush.msra.mxu3 %v638_v63 }
  0xb4   : > { %4331 = vrot.lane.b32.xlu0 %v4917_v36, %s4735_s23  ;;  %998 = vmatpush.msrb.mxu0 %v911_v16 }
  0xb5   : > { %4341 = vrot.lane.b32.xlu2 %v5203_v33, %s4734_s22  ;;  %4336 = vrot.lane.b32.xlu1 %v4978_v54, %s4733_s21 }
  0xb6   : > { %v4122_v46 = vpop.permute.xlu0 %4121  ;;  %v5223_v59 = vpop.permute.xlu2 %4176  ;;  %999 = vmatpush.msrb.mxu0 %v909_v18 }
  0xb7   : > { %v4124_v63 = vunpack.i.h.bf16 %v4122_v46  ;;  %v4123_v23 = vunpack.i.l.bf16 %v4122_v46  ;;  %v6746_v12 = vunpack.i.h.bf16 %v5223_v59  ;;  %v4178_v36 = vunpack.i.l.bf16 %v5223_v59  ;;  %v5227_v34 = vpop.permute.xlu1 %4126 }
  0xb8   : > { %1222 = vmatpush.msra.mxu0 %v1180_v43  ;;  %v4129_v8 = vunpack.i.h.bf16 %v5227_v34  ;;  %v4128_v16 = vunpack.i.l.bf16 %v5227_v34 }
  0xb9   : > { %v595_v11 = vsel %vm591_vm0, %v4044_v10, %v4123_v23  ;;  %v1178_v18 = vsel %vm632_vm1, %v4178_v36, %v6746_v12  ;;  %v593_v43 = vsel %vm591_vm0, %v4049_v20, %v4124_v63 }
  0xba   : > { %700 = vmatpush.msra.mxu2 %v595_v11  ;;  %v636_v46 = vsel %vm632_vm1, %v4128_v16, %v4129_v8  ;;  %1223 = vmatpush.msra.mxu0 %v1178_v18 }
  0xbb   : > { %732 = vmatpush.msra.mxu3 %v636_v46 }
  0xbc   : > { %4346 = vrot.lane.b32.xlu0 %v4923_v37, %s4735_s23  ;;  %701 = vmatpush.msra.mxu2 %v593_v43  ;;  %v6747_v43 = vunpack.i.l.bf16 %v5023_v13 }
  0xbd   : > { %4356 = vrot.lane.b32.xlu2 %v4937_v42, %s4735_s23  ;;  %4351 = vrot.lane.b32.xlu1 %v4932_v40, %s4735_s23 }
  0xbe   : > { %v5249_v3 = vpop.permute.xlu0 %4136  ;;  %v5251_v10 = vpop.permute.xlu2 %4191 }
  0xbf   : > { %v4139_v11 = vunpack.i.h.bf16 %v5249_v3  ;;  %v4138_v19 = vunpack.i.l.bf16 %v5249_v3  ;;  %v5255_v20 = vpop.permute.xlu1 %4141 }
  0xc1   : > { %v634_v37 = vsel %vm632_vm1, %v4138_v19, %v4139_v11 }
  0xc2   : > { %733 = vmatpush.msra.mxu3 %v634_v37 }
  0xc4   : > { %4361 = vrot.lane.b32.xlu0 %v5038_v22, %s4733_s21 }
  0xc5   : > { %4371 = vrot.lane.b32.xlu2 %v4946_v44, %s4735_s23  ;;  %4366 = vrot.lane.b32.xlu1 %v5045_v24, %s4733_s21  ;;  %v6748_v44 = vunpack.i.l.bf16 %v5137_v25 }
  0xc6   : > { %v4152_v40 = vpop.permute.xlu0 %4151  ;;  %v4207_v42 = vpop.permute.xlu2 %4206 }
  0xc7   : > { %v4154_v63 = vunpack.i.h.bf16 %v4152_v40  ;;  %v4153_v23 = vunpack.i.l.bf16 %v4152_v40  ;;  %v4157_v36 = vpop.permute.xlu1 %4156  ;;  %v6749_v40 = vunpack.i.h.bf16 %v4976_v53 }
  0xc8   : > { %v4159_v8 = vunpack.i.h.bf16 %v4157_v36  ;;  %v4158_v18 = vunpack.i.l.bf16 %v4157_v36 }
  0xc9   : > { %v558_v46 = vsel %vm550_vm2, %v4054_v28, %v4153_v23  ;;  %v556_v12 = vsel %vm550_vm2, %v6749_v40, %v4154_v63  ;;  %v4208_v23 = vunpack.i.l.bf16 %v4207_v42  ;;  %v6751_v40 = vunpack.i.h.bf16 %v5079_v52 }
  0xca   : > { %v639_v11 = vsel %vm632_vm1, %v4158_v18, %v6747_v43  ;;  %702 = vmatpush.msra.mxu2 %v558_v46  ;;  %v914_v37 = vsel %vm632_vm1, %v4159_v8, %v6748_v44  ;;  %v6753_v52 = vunpack.i.h.bf16 %v5110_v29 }
  0xcb   : > { %690 = vmatpush.msra.mxu1 %v639_v11  ;;  %956 = vmatpush.msrb.mxu3 %v914_v37  ;;  %v635_v43 = vsel %vm632_vm1, %v4208_v23, %v4128_v16 }
  0xcc   : > { %4376 = vrot.lane.b32.xlu0 %v4934_v41, %s4735_s23  ;;  %703 = vmatpush.msra.mxu2 %v556_v12 }
  0xcd   : > { %4386 = vrot.lane.b32.xlu2 %v4963_v49, %s4735_s23  ;;  %4381 = vrot.lane.b32.xlu1 %v5092_v17, %s4733_s21  ;;  %v5300_v49 = vld [vmem:[%s6723_s1 + $0x8] sm:$0xff] }
  0xce   : > { %v5284_v48 = vpop.permute.xlu0 %4166  ;;  %v5286_v13 = vpop.permute.xlu2 %4221  ;;  %3907 = vmatmul.msk.f32.vlgmr.msra.gmra.mxu3 %vm654_vm4, %v5300_v49  ;;  %3909 = vmatmul.msk.f32.vlgmr.msrb.gmra.mxu0 %vm654_vm4, %v5300_v49 }
  0xcf   : > { %v4169_v28 = vunpack.i.h.bf16 %v5284_v48  ;;  %v5289_v25 = vpop.permute.xlu1 %4171  ;;  %v4168_v29 = vunpack.i.l.bf16 %v5284_v48  ;;  %v4450_v48 = vpack.i.bf16 %v5026_v14, %v4993_v58  ;;  %v4460_v58 = vpack.i.bf16 %v5142_v47, %v5075_v45 }
  0xd0   : > { %v4173_v53 = vunpack.i.l.bf16 %v5289_v25  ;;  %v4224_v14 = vunpack.i.h.bf16 %v5286_v13 }
  0xd2   : > { %v5295_v41 = vsel %vm591_vm0, %v4169_v28, %v4173_v53 }
  0xd4   : > { %4391 = vrot.lane.b32.xlu0 %v4967_v51, %s4735_s23  ;;  %v4209_v51 = vunpack.i.h.bf16 %v4207_v42 }
  0xd5   : > { %4401 = vrot.lane.b32.xlu2 %v5151_v21, %s4733_s21  ;;  %4396 = vrot.lane.b32.xlu1 %v4965_v50, %s4735_s23 }
  0xd6   : > { %v4182_v12 = vpop.permute.xlu0 %4181  ;;  %v5310_v63 = vpop.permute.xlu2 %4236  ;;  %v910_v39 = vsel %vm632_vm1, %v4209_v51, %v4118_v5 }
  0xd7   : > { %v4184_v36 = vunpack.i.h.bf16 %v4182_v12  ;;  %v4183_v8 = vunpack.i.l.bf16 %v4182_v12  ;;  %v5314_v18 = vpop.permute.xlu1 %4186  ;;  %v4239_v47 = vunpack.i.h.bf16 %v5310_v63 }
  0xd9   : > { %v637_v46 = vsel %vm632_vm1, %v4183_v8, %v4113_v32  ;;  %v912_v50 = vsel %vm632_vm1, %v4184_v36, %v4108_v6 }
  0xda   : > { %691 = vmatpush.msra.mxu1 %v637_v46  ;;  %957 = vmatpush.msrb.mxu3 %v912_v50 }
  0xdc   : > { %4406 = vrot.lane.b32.xlu0 %v5147_v30, %s4733_s21  ;;  %692 = vmatpush.msra.mxu1 %v635_v43 }
  0xdd   : > { %4411 = vrot.lane.b32.xlu1 %v4978_v54, %s4735_s23  ;;  %958 = vmatpush.msrb.mxu3 %v910_v39  ;;  %v6750_v54 = vunpack.i.h.bf16 %v5066_v35  ;;  %v6752_v35 = vunpack.i.h.bf16 %v4987_v56  ;;  %v4144_v56 = vunpack.i.h.bf16 %v5255_v20  ;;  %v4163_v39 = vunpack.i.l.bf16 %v5178_v62 }
  0xde   : > { %v5332_v2 = vpop.permute.xlu0 %4196  ;;  %v4252_v6 = vpop.permute.xlu2 %4251  ;;  %4416 = vrot.lane.b32.xlu2 %v5203_v33, %s4733_s21 }
  0xdf   : > { %v4199_v32 = vunpack.i.h.bf16 %v5332_v2  ;;  %v4198_v34 = vunpack.i.l.bf16 %v5332_v2  ;;  %v4202_v16 = vpop.permute.xlu1 %4201  ;;  %v4253_v5 = vunpack.i.l.bf16 %v4252_v6  ;;  %v4254_v37 = vunpack.i.h.bf16 %v4252_v6 }
  0xe0   : > { %v4204_v42 = vunpack.i.h.bf16 %v4202_v16  ;;  %v4203_v11 = vunpack.i.l.bf16 %v4202_v16 }
  0xe1   : > { %v1176_v38 = vsel %vm632_vm1, %v4198_v34, %v4199_v32  ;;  %v517_v36 = vsel %vm509_vm3, %v6752_v35, %v4253_v5  ;;  %v515_v8 = vsel %vm509_vm3, %v6753_v52, %v4254_v37  ;;  %v4189_v34 = vunpack.i.h.bf16 %v5314_v18 }
  0xe2   : > { %v554_v44 = vsel %vm550_vm2, %v6750_v54, %v4203_v11  ;;  %1224 = vmatpush.msra.mxu0 %v1176_v38  ;;  %v552_v28 = vsel %vm550_vm2, %v6751_v40, %v4204_v42  ;;  %v4188_v38 = vunpack.i.l.bf16 %v5314_v18  ;;  %v875_v54 = vsel %vm591_vm0, %v4144_v56, %v4168_v29 }
  0xe3   : > { %704 = vmatpush.msra.mxu2 %v554_v44  ;;  %v4238_v44 = vunpack.i.l.bf16 %v5310_v63  ;;  %v6754_v52 = vunpack.i.h.bf16 %v5139_v57 }
  0xe4   : > { %4421 = vrot.lane.b32.xlu0 %v5038_v22, %s4735_s23 }
  0xe5   : > { %4426 = vrot.lane.b32.xlu1 %v5045_v24, %s4735_s23  ;;  %705 = vmatpush.msra.mxu2 %v552_v28  ;;  %v4143_v24 = vunpack.i.l.bf16 %v5255_v20 }
  0xe6   : > { %v5351_v12 = vpop.permute.xlu0 %4211  ;;  %v5353_v23 = vpop.permute.xlu2 %4266  ;;  %4431 = vrot.lane.b32.xlu2 %v5092_v17, %s4735_s23 }
  0xe7   : > { %v5360_v22 = vpop.permute.xlu1 %4216  ;;  %706 = vmatpush.msra.mxu2 %v517_v36  ;;  %v4214_v3 = vunpack.i.h.bf16 %v5351_v12 }
  0xe8   : > { %v4218_v5 = vunpack.i.l.bf16 %v5360_v22 }
  0xe9   : > { %707 = vmatpush.msra.mxu2 %v515_v8  ;;  %v869_v63 = vsel %vm591_vm0, %v4214_v3, %v4224_v14 }
  0xec   : > { %4436 = vrot.lane.b32.xlu0 %v5151_v21, %s4735_s23 }
  0xed   : > { %4441 = vrot.lane.b32.xlu1 %v5147_v30, %s4735_s23  ;;  %v4164_v30 = vunpack.i.h.bf16 %v5178_v62  ;;  %v874_v62 = vsel %vm591_vm0, %v4143_v24, %v4144_v56  ;;  %v834_v56 = vsel %vm550_vm2, %v4238_v44, %v4239_v47  ;;  %v6755_v24 = vunpack.i.h.bf16 %v5223_v59 }
  0xee   : > { %v5371_v51 = vpop.permute.xlu0 %4226  ;;  %4446 = vrot.lane.b32.xlu2 %v5203_v33, %s4735_s23 }
  0xef   : > { %v4229_v46 = vunpack.i.h.bf16 %v5371_v51  ;;  %v4228_v50 = vunpack.i.l.bf16 %v5371_v51  ;;  %v5378_v43 = vpop.permute.xlu2 %4281  ;;  %v4232_v21 = vpop.permute.xlu1 %4231  ;;  %v872_v31 = vsel %vm591_vm0, %v4163_v39, %v4164_v30  ;;  %v873_v18 = vsel %vm591_vm0, %v4164_v30, %v4189_v34 }
  0xf0   : > { %v4234_v6 = vunpack.i.h.bf16 %v4232_v21  ;;  %v4233_v20 = vunpack.i.l.bf16 %v4232_v21  ;;  %v4283_v21 = vunpack.i.l.bf16 %v5378_v43  ;;  %v4284_v34 = vunpack.i.h.bf16 %v5378_v43 }
  0xf1   : > { %v1174_v16 = vsel %vm632_vm1, %v4228_v50, %v4229_v46  ;;  %v4269_v50 = vunpack.i.h.bf16 %v5353_v23 }
  0xf2   : > { %v633_v42 = vsel %vm632_vm1, %v4233_v20, %v4138_v19  ;;  %v908_v11 = vsel %vm632_vm1, %v4234_v6, %v4133_v15  ;;  %1225 = vmatpush.msra.mxu0 %v1174_v16  ;;  %v4174_v15 = vunpack.i.h.bf16 %v5289_v25  ;;  %v4213_v19 = vunpack.i.l.bf16 %v5351_v12 }
  0xf3   : > { %693 = vmatpush.msra.mxu1 %v633_v42  ;;  %959 = vmatpush.msrb.mxu3 %v908_v11  ;;  %v871_v12 = vsel %vm591_vm0, %v4188_v38, %v4218_v5  ;;  %v830_v42 = vsel %vm550_vm2, %v4269_v50, %v4283_v21  ;;  %v4223_v50 = vunpack.i.l.bf16 %v5286_v13 }
  0xf4   : > { %4451 = vrot.lane.b32.xlu0 %v4450_v48, %s4736_s24  ;;  %v870_v28 = vsel %vm591_vm0, %v4174_v15, %v4188_v38  ;;  %3906 = vmatmul.msk.f32.vlgmr.msra.gmra.mxu1 %vm654_vm4, %v5300_v49  ;;  %v868_v36 = vsel %vm591_vm0, %v4213_v19, %v4214_v3 }
  0xf5   : > { %924 = vmatpush.msrb.mxu1 %v874_v62  ;;  %964 = vmatpush.msra.mxu3 %v875_v54 }
  0xf6   : > { %4456 = vrot.lane.b32.xlu1 %v5092_v17, %s4736_s24  ;;  %v5409_v45 = vpop.permute.xlu0 %4241  ;;  %4461 = vrot.lane.b32.xlu2 %v4460_v58, %s4736_s24 }
  0xf7   : > { %925 = vmatpush.msrb.mxu1 %v872_v31  ;;  %965 = vmatpush.msra.mxu3 %v873_v18  ;;  %v5413_v37 = vpop.permute.xlu2 %4296  ;;  %v4247_v40 = vpop.permute.xlu1 %4246 }
  0xf8   : > { %v4249_v17 = vunpack.i.h.bf16 %v4247_v40  ;;  %v4248_v35 = vunpack.i.l.bf16 %v4247_v40  ;;  %3908 = vmatmul.msk.f32.vlgmr.msrb.gmra.mxu3 %vm654_vm4, %v5300_v49  ;;  %3910 = vmatmul.msk.f32.vlgmr.msra.gmra.mxu0 %vm654_vm4, %v5300_v49 }
  0xf9   : > { %926 = vmatpush.msrb.mxu1 %v870_v28  ;;  %966 = vmatpush.msra.mxu3 %v871_v12 }
  0xfa   : > { %v1181_v8 = vsel %vm632_vm1, %v6754_v52, %v4248_v35  ;;  %v1179_v29 = vsel %vm632_vm1, %v6755_v24, %v4249_v17 }
  0xfb   : > { %927 = vmatpush.msrb.mxu1 %v868_v36  ;;  %967 = vmatpush.msra.mxu3 %v869_v63  ;;  %v6756_v63 = vunpack.i.h.bf16 %v5118_v55 }
  0xfc   : > { %1262 = vmatpush.msrb.mxu0 %v1181_v8  ;;  %4466 = vrot.lane.b32.xlu0 %v5203_v33, %s4736_s24 }
  0xfd   : > { %928 = vmatpush.msrb.mxu1 %v834_v56 }
  0xfe   : > { %1263 = vmatpush.msrb.mxu0 %v1179_v29  ;;  %v4257_v30 = vpop.permute.xlu0 %4256  ;;  %v4194_v29 = vunpack.i.h.bf16 %v5251_v10 }
  0xff   : > { %v4259_v57 = vunpack.i.h.bf16 %v4257_v30  ;;  %v4258_v39 = vunpack.i.l.bf16 %v4257_v30  ;;  %v5437_v6 = vpop.permute.xlu2 %4311  ;;  %v5439_v20 = vpop.permute.xlu1 %4261  ;;  %v4243_v30 = vunpack.i.l.bf16 %v5409_v45 }
 0x100   : > { %v4313_v59 = vunpack.i.l.bf16 %v5437_v6  ;;  %v4263_v16 = vunpack.i.l.bf16 %v5439_v20 }
 0x101   : > { %v832_v48 = vsel %vm550_vm2, %v4258_v39, %v4259_v57  ;;  %v833_v11 = vsel %vm550_vm2, %v4259_v57, %v4284_v34 }
 0x102   : > { %929 = vmatpush.msrb.mxu1 %v832_v48  ;;  %v835_v33 = vsel %vm550_vm2, %v4239_v47, %v4263_v16  ;;  %v831_v62 = vsel %vm550_vm2, %v4283_v21, %v4313_v59  ;;  %v4219_v21 = vunpack.i.h.bf16 %v5360_v22 }
 0x103   : > { %968 = vmatpush.msra.mxu3 %v835_v33 }
 0x104   : > { %930 = vmatpush.msrb.mxu1 %v830_v42  ;;  %v1136_v59 = vsel %vm591_vm0, %v4219_v21, %v4223_v50 }
 0x105   : > { %969 = vmatpush.msra.mxu3 %v833_v11  ;;  %v4737_v11 = vmov 0  }
 0x106   : > { %v5449_v38 = vpop.permute.xlu0 %4271  ;;  %4470 = vset.pattern.permute.xlu1 %v4737_v11  ;;  %4602 = vset.pattern.permute.xlu0 %v4737_v11 }
 0x107   : > { %v4274_v43 = vunpack.i.h.bf16 %v5449_v38  ;;  %v5452_v5 = vpop.permute.xlu2 %4326  ;;  %v5454_v54 = vpop.permute.xlu1 %4276  ;;  %970 = vmatpush.msra.mxu3 %v831_v62  ;;  %4601 = vset.pattern.permute.xlu2 %v4737_v11 }
 0x108   : > { %v4278_v58 = vunpack.i.l.bf16 %v5454_v54 }
 0x10a   : > { %v5460_v14 = vsel %vm591_vm0, %v4274_v43, %v4278_v58 }
 0x10e   : > { %v5462_v31 = vpop.permute.xlu0 %4286 }
 0x10f   : > { %v4292_v15 = vpop.permute.xlu1 %4291  ;;  %v5464_v3 = vpop.permute.xlu2 %4341  ;;  %v4289_v48 = vunpack.i.h.bf16 %v5462_v31  ;;  %v4288_v42 = vunpack.i.l.bf16 %v5462_v31 }
 0x110   : > { %v4294_v19 = vunpack.i.h.bf16 %v4292_v15  ;;  %v4293_v18 = vunpack.i.l.bf16 %v4292_v15  ;;  %v4314_v15 = vunpack.i.h.bf16 %v5437_v6 }
 0x112   : > { %v1177_v47 = vsel %vm632_vm1, %v4199_v32, %v4293_v18  ;;  %v1175_v44 = vsel %vm632_vm1, %v4229_v46, %v4294_v19  ;;  %v6757_v46 = vunpack.i.h.bf16 %v5004_v61  ;;  %v4193_v61 = vunpack.i.l.bf16 %v5251_v10 }
 0x113   : > { %1264 = vmatpush.msrb.mxu0 %v1177_v47 }
 0x115   : > { %1265 = vmatpush.msrb.mxu0 %v1175_v44 }
 0x116   : > { %v4302_v40 = vpop.permute.xlu0 %4301  ;;  %3911 = vmatmul.msk.f32.vlgmr.msrb.gmra.mxu0 %vm654_vm4, %v5300_v49 }
 0x117   : > { %v4304_v28 = vunpack.i.h.bf16 %v4302_v40  ;;  %v4303_v12 = vunpack.i.l.bf16 %v4302_v40  ;;  %v4307_v17 = vpop.permute.xlu1 %4306  ;;  %v5477_v32 = vpop.permute.xlu2 %4356 }
 0x118   : > { %v4309_v35 = vunpack.i.h.bf16 %v4307_v17  ;;  %v4308_v36 = vunpack.i.l.bf16 %v4307_v17  ;;  %v4359_v19 = vunpack.i.h.bf16 %v5477_v32  ;;  %v4358_v47 = vunpack.i.l.bf16 %v5477_v32 }
 0x119   : > { %v513_v2 = vsel %vm509_vm3, %v6756_v63, %v4303_v12  ;;  %v511_v52 = vsel %vm509_vm3, %v6757_v46, %v4304_v28  ;;  %v1098_v17 = vsel %vm550_vm2, %v4288_v42, %v4289_v48  ;;  %v4273_v42 = vunpack.i.l.bf16 %v5449_v38 }
 0x11a   : > { %708 = vmatpush.msra.mxu2 %v513_v2  ;;  %v828_v51 = vsel %vm550_vm2, %v4308_v36, %v4309_v35  ;;  %v4329_v38 = vunpack.i.h.bf16 %v5452_v5 }
 0x11b   : > { %931 = vmatpush.msrb.mxu1 %v828_v51 }
 0x11c   : > { %709 = vmatpush.msra.mxu2 %v511_v52 }
 0x11e   : > { %v5483_v8 = vpop.permute.xlu0 %4316  ;;  %710 = vmatpush.msra.mxu2 %v4837_v1 }
 0x11f   : > { %v4319_v56 = vunpack.i.h.bf16 %v5483_v8  ;;  %v5487_v55 = vpop.permute.xlu1 %4321  ;;  %v5496_v1 = vpop.permute.xlu2 %4371  ;;  %v4318_v62 = vunpack.i.l.bf16 %v5483_v8 }
 0x120   : > { %711 = vmatpush.msra.mxu2 %v4856_v7  ;;  %v4244_v7 = vunpack.i.h.bf16 %v5409_v45  ;;  %v4373_v18 = vunpack.i.l.bf16 %v5496_v1  ;;  %v4374_v51 = vunpack.i.h.bf16 %v5496_v1 }
 0x121   : > { %v829_v24 = vsel %vm550_vm2, %v4309_v35, %v4319_v56  ;;  %v1096_v56 = vsel %vm550_vm2, %v4314_v15, %v4318_v62 }
 0x122   : > { %712 = vmatpush.msra.mxu2 %v4845_v4  ;;  %971 = vmatpush.msra.mxu3 %v829_v24  ;;  %v1138_v4 = vsel %vm591_vm0, %v4193_v61, %v4194_v29  ;;  %v1134_v33 = vsel %vm591_vm0, %v4243_v30, %v4244_v7  ;;  %v790_v61 = vsel %vm509_vm3, %v4359_v19, %v4373_v18 }
 0x123   : > { %v1135_v10 = vsel %vm591_vm0, %v4244_v7, %v4329_v38 }
 0x124   : > { %713 = vmatpush.msra.mxu2 %v4862_v9  ;;  %v4268_v9 = vunpack.i.l.bf16 %v5353_v23 }
 0x125   : > { %714 = vmatmul.f32.vlgmr.msra.gmra.mxu2 %v5174_v60 }
 0x126   : > { %1190 = vmatpush.msrb.mxu2 %v5295_v41  ;;  %v4332_v57 = vpop.permute.xlu0 %4331  ;;  %v4264_v41 = vunpack.i.h.bf16 %v5439_v20  ;;  %v460_v20 = vld [vmem:[%s6724_s2] sm:$0xff] }
 0x127   : > { %v4334_v39 = vunpack.i.h.bf16 %v4332_v57  ;;  %v4333_v34 = vunpack.i.l.bf16 %v4332_v57  ;;  %v5506_v22 = vpop.permute.xlu1 %4336  ;;  %651 = vperm.xlu1 %4470, %v460_v20   ;;  %v5530_v44 = vpop.permute.xlu2 %4386 }
 0x128   : > { %1191 = vmatpush.msrb.mxu2 %v1138_v4  ;;  %v1100_v43 = vsel %vm550_vm2, %v4264_v41, %v4268_v9  ;;  %v4339_v40 = vunpack.i.h.bf16 %v5506_v22  ;;  %v4338_v28 = vunpack.i.l.bf16 %v5506_v22  ;;  %v4389_v6 = vunpack.i.h.bf16 %v5530_v44 }
 0x129   : > { %v794_v16 = vsel %vm509_vm3, %v4333_v34, %v4334_v39  ;;  %v4388_v35 = vunpack.i.l.bf16 %v5530_v44  ;;  %v4324_v22 = vunpack.i.h.bf16 %v5487_v55 }
 0x12a   : > { %1192 = vmatpush.msrb.mxu2 %v1136_v59  ;;  %932 = vmatpush.msrb.mxu1 %v794_v16  ;;  %v1094_v30 = vsel %vm550_vm2, %v4338_v28, %v4339_v40  ;;  %v4667_v59 = vld [vmem:[%s4831_s20 + $0xd0] sm:$0xff] }
 0x12b   : > { %v788_v4 = vsel %vm509_vm3, %v4388_v35, %v4389_v6  ;;  %v4668_v16 = vld [vmem:[%s4831_s20 + $0x90] sm:$0xff] }
 0x12c   : > { %1193 = vmatpush.msrb.mxu2 %v1134_v33  ;;  %v4279_v33 = vunpack.i.h.bf16 %v5454_v54 }
 0x12e   : > { %1194 = vmatpush.msrb.mxu2 %v1100_v43  ;;  %v4347_v12 = vpop.permute.xlu0 %4346  ;;  %v4323_v43 = vunpack.i.l.bf16 %v5487_v55  ;;  %v4674_v55 = vld [vmem:[%s4831_s20 + $0xa0] sm:$0xff] }
 0x12f   : > { %v4349_v36 = vunpack.i.h.bf16 %v4347_v12  ;;  %v4348_v63 = vunpack.i.l.bf16 %v4347_v12  ;;  %v4352_v2 = vpop.permute.xlu1 %4351  ;;  %v5567_v11 = vpop.permute.xlu2 %4401 }
 0x130   : > { %1195 = vmatpush.msrb.mxu2 %v1098_v17  ;;  %v4354_v46 = vunpack.i.h.bf16 %v4352_v2  ;;  %v4353_v52 = vunpack.i.l.bf16 %v4352_v2  ;;  %v1137_v25 = vsel %vm591_vm0, %v4223_v50, %v4323_v43 }
 0x131   : > { %v792_v24 = vsel %vm509_vm3, %v4348_v63, %v4349_v36  ;;  %v793_v34 = vsel %vm509_vm3, %v4349_v36, %v4374_v51  ;;  %v4403_v36 = vunpack.i.l.bf16 %v5567_v11 }
 0x132   : > { %1196 = vmatpush.msrb.mxu2 %v1096_v56  ;;  %933 = vmatpush.msrb.mxu1 %v792_v24  ;;  %v795_v21 = vsel %vm509_vm3, %v4334_v39, %v4353_v52  ;;  %v1060_v57 = vsel %vm509_vm3, %v4354_v46, %v4358_v47  ;;  %v4671_v24 = vld [vmem:[%s4831_s20 + $0x58] sm:$0xff] }
 0x133   : > { %972 = vmatpush.msra.mxu3 %v795_v21  ;;  %v4299_v21 = vunpack.i.h.bf16 %v5413_v37 }
 0x134   : > { %1197 = vmatpush.msrb.mxu2 %v1094_v30  ;;  %934 = vmatpush.msrb.mxu1 %v790_v61  ;;  %v4298_v30 = vunpack.i.l.bf16 %v5413_v37  ;;  %v4686_v37 = vld [vmem:[%s4831_s20 + $0xb8] sm:$0xff] }
 0x135   : > { %973 = vmatpush.msra.mxu3 %v793_v34 }
 0x136   : > { %1198 = vmatpush.msrb.mxu2 %v1060_v57  ;;  %v5558_v39 = vpop.permute.xlu0 %4361  ;;  %935 = vmatpush.msrb.mxu1 %v788_v4  ;;  %v4672_v57 = vld [vmem:[%s4831_s20 + $0x18] sm:$0xff]  ;;  %v4328_v4 = vunpack.i.l.bf16 %v5452_v5  ;;  %v1362_v43 = vsel %vm591_vm0, %v4298_v30, %v4299_v21 }
 0x137   : > { %v5560_v41 = vpop.permute.xlu1 %4366  ;;  %v4363_v17 = vunpack.i.l.bf16 %v5558_v39  ;;  %v4687_v5 = vld [vmem:[%s4831_s20 + $0x78] sm:$0xff] }
 0x138   : > { %936 = vmatpush.msrb.mxu1 %v4667_v59  ;;  %v5596_v35 = vpop.permute.xlu2 %4416  ;;  %v4344_v59 = vunpack.i.h.bf16 %v5464_v3  ;;  %v1361_v38 = vsel %vm591_vm0, %v4324_v22, %v4328_v4 }
 0x139   : > { %v1101_v13 = vsel %vm550_vm2, %v4268_v9, %v4363_v17  ;;  %v1097_v9 = vsel %vm550_vm2, %v4318_v62, %v4403_v36  ;;  %v4670_v62 = vld [vmem:[%s4831_s20 + $0x98] sm:$0xff]  ;;  %v4404_v36 = vunpack.i.h.bf16 %v5567_v11 }
 0x13a   : > { %937 = vmatpush.msrb.mxu1 %v4668_v16  ;;  %v4343_v16 = vunpack.i.l.bf16 %v5464_v3 }
 0x13c   : > { %938 = vmatpush.msrb.mxu1 %v4900_v27  ;;  %v1141_v27 = vsel %vm591_vm0, %v4173_v53, %v4273_v42  ;;  %v4369_v53 = vunpack.i.h.bf16 %v5560_v41 }
 0x13e   : > { %v5569_v20 = vpop.permute.xlu0 %4376  ;;  %939 = vmatpush.msrb.mxu1 %v4896_v26  ;;  %v1139_v26 = vsel %vm591_vm0, %v4194_v29, %v4279_v33  ;;  %v1099_v7 = vsel %vm550_vm2, %v4289_v48, %v4369_v53  ;;  %v4669_v48 = vld [vmem:[%s4831_s20 + $0xd8] sm:$0xff]  ;;  %v1360_v53 = vsel %vm591_vm0, %v4343_v16, %v4344_v59 }
 0x13f   : > { %v4379_v15 = vunpack.i.h.bf16 %v5569_v20  ;;  %v4378_v19 = vunpack.i.l.bf16 %v5569_v20  ;;  %v5575_v28 = vpop.permute.xlu1 %4381  ;;  %940 = vmatmul.f32.vlgmr.msrb.gmra.mxu1 %v5174_v60  ;;  %v4419_v20 = vunpack.i.h.bf16 %v5596_v35 }
 0x140   : > { %1230 = vmatpush.msra.mxu1 %v1141_v27  ;;  %v5630_v44 = vpop.permute.xlu2 %4431  ;;  %v4368_v27 = vunpack.i.l.bf16 %v5560_v41 }
 0x141   : > { %v1058_v12 = vsel %vm509_vm3, %v4378_v19, %v4379_v15 }
 0x142   : > { %1231 = vmatpush.msra.mxu1 %v1139_v26  ;;  %1199 = vmatpush.msrb.mxu2 %v1058_v12  ;;  %v4675_v12 = vld [vmem:[%s4831_s20 + $0x60] sm:$0xff] }
 0x144   : > { %1232 = vmatpush.msra.mxu1 %v1137_v25  ;;  %v4384_v25 = vunpack.i.h.bf16 %v5575_v28 }
 0x146   : > { %1233 = vmatpush.msra.mxu1 %v1135_v10  ;;  %v4392_v29 = vpop.permute.xlu0 %4391  ;;  %v4676_v10 = vld [vmem:[%s4831_s20 + $0x20] sm:$0xff] }
 0x147   : > { %v4394_v63 = vunpack.i.h.bf16 %v4392_v29  ;;  %v4393_v2 = vunpack.i.l.bf16 %v4392_v29  ;;  %v5599_v51 = vpop.permute.xlu1 %4396 }
 0x148   : > { %v4399_v50 = vunpack.i.h.bf16 %v5599_v51  ;;  %v4398_v45 = vunpack.i.l.bf16 %v5599_v51  ;;  %1234 = vmatpush.msra.mxu1 %v1101_v13  ;;  %v5665_v17 = vpop.permute.xlu2 %4446 }
 0x149   : > { %v791_v46 = vsel %vm509_vm3, %v4373_v18, %v4393_v2 }
 0x14a   : > { %1235 = vmatpush.msra.mxu1 %v1099_v7  ;;  %v1056_v23 = vsel %vm509_vm3, %v4394_v63, %v4398_v45  ;;  %974 = vmatpush.msra.mxu3 %v791_v46  ;;  %v789_v31 = vsel %vm509_vm3, %v4389_v6, %v4399_v50 }
 0x14b   : > { %1200 = vmatpush.msrb.mxu2 %v1056_v23 }
 0x14c   : > { %1236 = vmatpush.msra.mxu1 %v1097_v9  ;;  %975 = vmatpush.msra.mxu3 %v789_v31  ;;  %v4434_v31 = vunpack.i.h.bf16 %v5630_v44 }
 0x14e   : > { %v5621_v1 = vpop.permute.xlu0 %4406  ;;  %976 = vmatpush.msra.mxu3 %v4669_v48  ;;  %v4433_v48 = vunpack.i.l.bf16 %v5630_v44 }
 0x14f   : > { %v4409_v18 = vunpack.i.h.bf16 %v5621_v1  ;;  %v5625_v52 = vpop.permute.xlu1 %4411 }
 0x150   : > { %v4414_v8 = vunpack.i.h.bf16 %v5625_v52  ;;  %v4413_v56 = vunpack.i.l.bf16 %v5625_v52  ;;  %977 = vmatpush.msra.mxu3 %v4670_v62  ;;  %v4462_v62 = vpop.permute.xlu2 %4461  ;;  %v1306_v52 = vsel %vm509_vm3, %v4433_v48, %v4434_v31 }
 0x151   : > { %v1095_v6 = vsel %vm550_vm2, %v4339_v40, %v4409_v18  ;;  %v4673_v40 = vld [vmem:[%s4831_s20 + $0xe0] sm:$0xff]  ;;  %v4464_v22 = vunpack.i.h.bf16 %v4462_v62 }
 0x152   : > { %978 = vmatpush.msra.mxu3 %v4671_v24  ;;  %1237 = vmatpush.msra.mxu1 %v1095_v6  ;;  %v1054_v61 = vsel %vm509_vm3, %v4413_v56, %v4414_v8  ;;  %v4677_v24 = vld [vmem:[%s4831_s20 + $0xe8] sm:$0xff] }
 0x153   : > { %1201 = vmatpush.msrb.mxu2 %v1054_v61  ;;  %v4448_v61 = vunpack.i.l.bf16 %v5665_v17 }
 0x154   : > { %979 = vmatpush.msra.mxu3 %v4672_v57 }
 0x155   : > { %980 = vmatmul.f32.vlgmr.msra.gmra.mxu3 %v5174_v60  ;;  %1202 = vmatpush.msrb.mxu2 %v4673_v40  ;;  %v4463_v40 = vunpack.i.l.bf16 %v4462_v62 }
 0x156   : > { %1400 = vmatpush.msrb.mxu3 %v5460_v14  ;;  %v4422_v34 = vpop.permute.xlu0 %4421  ;;  %v4364_v14 = vunpack.i.h.bf16 %v5558_v39  ;;  %v4383_v39 = vunpack.i.l.bf16 %v5575_v28 }
 0x157   : > { %v4423_v42 = vunpack.i.l.bf16 %v4422_v34  ;;  %v5649_v33 = vpop.permute.xlu1 %4426  ;;  %1203 = vmatpush.msrb.mxu2 %v4674_v55  ;;  %v4424_v46 = vunpack.i.h.bf16 %v4422_v34 }
 0x158   : > { %v4429_v19 = vunpack.i.h.bf16 %v5649_v33  ;;  %1401 = vmatpush.msrb.mxu3 %v1362_v43  ;;  %v1335_v29 = vsel %vm550_vm2, %v4364_v14, %v4368_v27  ;;  %v1334_v50 = vsel %vm550_vm2, %v4383_v39, %v4384_v25  ;;  %v4428_v23 = vunpack.i.l.bf16 %v5649_v33  ;;  %v4680_v39 = vld [vmem:[%s4831_s20 + $0x28] sm:$0xff] }
 0x159   : > { %v1061_v26 = vsel %vm509_vm3, %v4358_v47, %v4423_v42  ;;  %1204 = vmatpush.msrb.mxu2 %v4675_v12  ;;  %v4408_v47 = vunpack.i.l.bf16 %v5621_v1  ;;  %v4678_v42 = vld [vmem:[%s4831_s20 + $0xa8] sm:$0xff] }
 0x15a   : > { %1402 = vmatpush.msrb.mxu3 %v1361_v38  ;;  %1238 = vmatpush.msra.mxu1 %v1061_v26  ;;  %v1059_v32 = vsel %vm509_vm3, %v4379_v15, %v4429_v19  ;;  %v4418_v15 = vunpack.i.l.bf16 %v5596_v35  ;;  %v1307_v6 = vsel %vm509_vm3, %v4424_v46, %v4428_v23  ;;  %v4679_v26 = vld [vmem:[%s4831_s20 + $0x68] sm:$0xff] }
 0x15b   : > { %1205 = vmatpush.msrb.mxu2 %v4676_v10  ;;  %v1333_v11 = vsel %vm550_vm2, %v4404_v36, %v4408_v47  ;;  %v4682_v36 = vld [vmem:[%s4831_s20 + $0xb0] sm:$0xff] }
 0x15c   : > { %1403 = vmatpush.msrb.mxu3 %v1360_v53  ;;  %1239 = vmatpush.msra.mxu1 %v1059_v32  ;;  %v1332_v18 = vsel %vm550_vm2, %v4418_v15, %v4419_v20  ;;  %v4681_v32 = vld [vmem:[%s4831_s20 + $0xf0] sm:$0xff] }
 0x15d   : > { %1206 = vmatmul.f32.vlgmr.msrb.gmra.mxu2 %v5174_v60  ;;  %v4683_v15 = vld [vmem:[%s4831_s20 + $0x70] sm:$0xff] }
 0x15e   : > { %1404 = vmatpush.msrb.mxu3 %v1335_v29  ;;  %v4437_v63 = vpop.permute.xlu0 %4436 }
 0x15f   : > { %v4438_v2 = vunpack.i.l.bf16 %v4437_v63  ;;  %v5684_v13 = vpop.permute.xlu1 %4441  ;;  %v4439_v51 = vunpack.i.h.bf16 %v4437_v63 }
 0x160   : > { %v4444_v7 = vunpack.i.h.bf16 %v5684_v13  ;;  %1405 = vmatpush.msrb.mxu3 %v1334_v50 }
 0x161   : > { %v1057_v9 = vsel %vm509_vm3, %v4398_v45, %v4438_v2  ;;  %v4443_v45 = vunpack.i.l.bf16 %v5684_v13  ;;  %v4684_v2 = vld [vmem:[%s4831_s20 + $0x30] sm:$0xff] }
 0x162   : > { %1406 = vmatpush.msrb.mxu3 %v1333_v11  ;;  %1240 = vmatpush.msra.mxu1 %v1057_v9  ;;  %v1055_v56 = vsel %vm509_vm3, %v4414_v8, %v4444_v7  ;;  %v4449_v8 = vunpack.i.h.bf16 %v5665_v17  ;;  %v1389_v17 = vsel %vm632_vm1, %v4463_v40, %v4464_v22 }
 0x163   : > { %v1305_v19 = vsel %vm509_vm3, %v4439_v51, %v4443_v45 }
 0x164   : > { %1407 = vmatpush.msrb.mxu3 %v1332_v18  ;;  %1241 = vmatpush.msra.mxu1 %v1055_v56  ;;  %v1304_v12 = vsel %vm509_vm3, %v4448_v61, %v4449_v8 }
 0x166   : > { %1408 = vmatpush.msrb.mxu3 %v1307_v6  ;;  %1242 = vmatpush.msra.mxu1 %v4677_v24  ;;  %v4452_v30 = vpop.permute.xlu0 %4451 }
 0x167   : > { %v4454_v34 = vunpack.i.h.bf16 %v4452_v30  ;;  %v4453_v16 = vunpack.i.l.bf16 %v4452_v30 }
 0x168   : > { %v4457_v57 = vpop.permute.xlu1 %4456  ;;  %1409 = vmatpush.msrb.mxu3 %v1306_v52  ;;  %1243 = vmatpush.msra.mxu1 %v4678_v42  ;;  %v1483_v52 = vld [vmem:[%s6726_s4] sm:$0xf] }
 0x169   : > { %v4459_v43 = vunpack.i.h.bf16 %v4457_v57  ;;  %v4458_v55 = vunpack.i.l.bf16 %v4457_v57  ;;  %1472 = vmatpush.msra.mxu2 %v4454_v34  ;;  %v1391_v14 = vsel %vm632_vm1, %v4453_v16, %v4454_v34 }
 0x16a   : > { %1410 = vmatpush.msrb.mxu3 %v1305_v19  ;;  %1244 = vmatpush.msra.mxu1 %v4679_v26 }
 0x16b   : > { %v1390_v38 = vsel %vm632_vm1, %v4458_v55, %v4459_v43  ;;  %1432 = vmatpush.msra.mxu0 %v1391_v14  ;;  %1473 = vmatpush.msra.mxu2 %v4459_v43 }
 0x16c   : > { %1411 = vmatpush.msrb.mxu3 %v1304_v12  ;;  %1245 = vmatpush.msra.mxu1 %v4680_v39 }
 0x16d   : > { %1433 = vmatpush.msra.mxu0 %v1390_v38  ;;  %1246 = vmatmul.f32.vlgmr.msra.gmra.mxu1 %v5174_v60 }
 0x16e   : > { %1474 = vmatpush.msra.mxu2 %v4464_v22  ;;  %v4467_v53 = vpop.permute.xlu0 %4466  ;;  %1412 = vmatpush.msrb.mxu3 %v4681_v32  ;;  %v5809_v32 = vld [vmem:[%s6725_s3] sm:$0xf] }
 0x16f   : > { %1434 = vmatpush.msra.mxu0 %v1389_v17  ;;  %v4469_v10 = vunpack.i.h.bf16 %v4467_v53  ;;  %v4468_v29 = vunpack.i.l.bf16 %v4467_v53 }
 0x170   : > { %1413 = vmatpush.msrb.mxu3 %v4682_v36 }
 0x171   : > { %1475 = vmatpush.msra.mxu2 %v4469_v10  ;;  %v1388_v63 = vsel %vm632_vm1, %v4468_v29, %v4469_v10  ;;  %v695_v54 = vpop.f32.mrf.mxu1 }
 0x172   : > { %1435 = vmatpush.msra.mxu0 %v1388_v63  ;;  %1414 = vmatpush.msrb.mxu3 %v4683_v15 }
 0x173   : > { %3913 = vmatmul.msk.f32.vlgmr.msra.gmra.mxu2 %vm654_vm4, %v5300_v49  ;;  %3912 = vmatmul.msk.f32.vlgmr.msra.gmra.mxu0 %vm654_vm4, %v5300_v49  ;;  %v4685_v49 = vld [vmem:[%s4831_s20 + $0xf8] sm:$0xff] }
 0x174   : > { %1440 = vmatpush.msrb.mxu0 %v4278_v58  ;;  %1415 = vmatpush.msrb.mxu3 %v4684_v2  ;;  %v735_v58 = vpop.f32.mrf.mxu3 }
 0x175   : > { %1416 = vmatmul.f32.vlgmr.msrb.gmra.mxu3 %v5174_v60 }
 0x176   : > { %1441 = vmatpush.msrb.mxu0 %v4299_v21 }
 0x178   : > { %1442 = vmatpush.msrb.mxu0 %v4328_v4 }
 0x17a   : > { %1443 = vmatpush.msrb.mxu0 %v4344_v59 }
 0x17c   : > { %1444 = vmatpush.msrb.mxu0 %v4368_v27  ;;  %v961_v44 = vpop.f32.mrf.mxu3 }
 0x17e   : > { %1445 = vmatpush.msrb.mxu0 %v4384_v25 }
 0x180   : > { %1446 = vmatpush.msrb.mxu0 %v4408_v47 }
 0x182   : > { %1447 = vmatpush.msrb.mxu0 %v4419_v20 }
 0x184   : > { %1448 = vmatpush.msrb.mxu0 %v4428_v23 }
 0x186   : > { %1449 = vmatpush.msrb.mxu0 %v4434_v31 }
 0x188   : > { %1450 = vmatpush.msrb.mxu0 %v4443_v45 }
 0x18a   : > { %1451 = vmatpush.msrb.mxu0 %v4449_v8 }
 0x18c   : > { %1452 = vmatpush.msrb.mxu0 %v4685_v49 }
 0x18e   : > { %1453 = vmatpush.msrb.mxu0 %v4686_v37 }
 0x190   : > { %1454 = vmatpush.msrb.mxu0 %v4687_v5 }
 0x192   : > { %1455 = vmatpush.msrb.mxu0 %v5185_v0 }
 0x193   : > { %1456 = vmatmul.f32.vlgmr.msrb.gmra.mxu0 %v5174_v60  ;;  %v675_v60 = vpop.f32.mrf.mxu0 }
 0x199   : > { %v652_v3 = vpop.permute.xlu1 %651 }
 0x19a   : > { %v676_v0 = vadd.f32 %v675_v60, %v652_v3 }
 0x19b   : > { %v1001_v20 = vpop.f32.mrf.mxu0 }
 0x19c   : > { %v696_v25 = vadd.f32 %v695_v54, %v676_v0 }
 0x19e   : > { %v738_v50 = vmax.f32 %v696_v25, 0.0 }
 0x1a3   : > { %v1227_v11 = vpop.f32.mrf.mxu0 }
 0x1a8   : > { %v715_v41 = vpop.f32.mrf.mxu2 }
 0x1a9   : > { %v716_v28 = vadd.f32 %v715_v41, %v652_v3 }
 0x1ab   : > { %v736_v35 = vadd.f32 %v735_v58, %v716_v28  ;;  %v1267_v18 = vpop.f32.mrf.mxu0 }
 0x1ad   : > { %v739_v4 = vmax.f32 %v736_v35, 0.0 }
 0x1bc   : > { %v941_v1 = vpop.f32.mrf.mxu1 }
 0x1bd   : > { %v942_v21 = vadd.f32 %v941_v1, %v652_v3 }
 0x1bf   : > { %v5763_v59 = vadd.f32 %v961_v44, %v942_v21 }
 0x1c1   : > { %v1004_v33 = vmax.f32 %v5763_v59, 0.0 }
 0x1c3   : > { %v4476_v27 = vpack.i.bf16 %v1004_v33, %v739_v4 }
 0x1c5   : > { %4477 = vrot.lane.b32.xlu0 %v4476_v27, %s4735_s23  ;;  %4472 = vrot.lane.b32.xlu2 %v4476_v27, %s4733_s21 }
 0x1d8   : > { %v981_v47 = vpop.f32.mrf.mxu3 }
 0x1d9   : > { %v982_v13 = vadd.f32 %v981_v47, %v652_v3  ;;  %v1746_v47 = vld [vmem:[#allocation3 + $0x78] sm:$0xff] }
 0x1da   : > { %1864 = vmatpush.msra.mxu0 %v1746_v47  ;;  %v1789_v47 = vld [vmem:[#allocation3 + $0x1d0] sm:$0xff] }
 0x1db   : > { %v5770_v7 = vadd.f32 %v1001_v20, %v982_v13  ;;  %v1745_v20 = vld [vmem:[#allocation3 + $0x70] sm:$0xff]  ;;  %v1744_v13 = vld [vmem:[#allocation3 + $0x68] sm:$0xff] }
 0x1dc   : > { %1865 = vmatpush.msra.mxu0 %v1745_v20  ;;  %v1805_v20 = vld [vmem:[#allocation3 + $0x250] sm:$0xff] }
 0x1dd   : > { %v1005_v46 = vmax.f32 %v5770_v7, 0.0 }
 0x1de   : > { %1866 = vmatpush.msra.mxu0 %v1744_v13 }
 0x1df   : > { %v4486_v23 = vpack.i.bf16 %v1005_v46, %v738_v50 }
 0x1e0   : > { %v1207_v9 = vpop.f32.mrf.mxu2 }
 0x1e1   : > { %4487 = vrot.lane.b32.xlu2 %v4486_v23, %s4735_s23  ;;  %4482 = vrot.lane.b32.xlu1 %v4486_v23, %s4733_s21  ;;  %v1208_v31 = vadd.f32 %v1207_v9, %v652_v3 }
 0x1e3   : > { %v5777_v56 = vadd.f32 %v1227_v11, %v1208_v31 }
 0x1e5   : > { %v1270_v45 = vmax.f32 %v5777_v56, 0.0  ;;  %v1760_v56 = vld [vmem:[#allocation3 + $0xe8] sm:$0xff] }
 0x1ea   : > { %v1247_v48 = vpop.f32.mrf.mxu1 }
 0x1eb   : > { %v1248_v62 = vadd.f32 %v1247_v48, %v652_v3  ;;  %v1762_v48 = vld [vmem:[#allocation3 + $0xf8] sm:$0xff] }
 0x1ed   : > { %v5779_v51 = vadd.f32 %v1267_v18, %v1248_v62  ;;  %v1761_v18 = vld [vmem:[#allocation3 + $0xf0] sm:$0xff]  ;;  %v1759_v62 = vld [vmem:[#allocation3 + $0xe0] sm:$0xff] }
 0x1ef   : > { %v1271_v6 = vmax.f32 %v5779_v51, 0.0  ;;  %v1758_v51 = vld [vmem:[#allocation3 + $0xd8] sm:$0xff] }
 0x1f0   : > { %v1437_v8 = vpop.f32.mrf.mxu0 }
 0x1f1   : > { %v4491_v24 = vpack.i.bf16 %v1271_v6, %v1270_v45 }
 0x1f3   : > { %4492 = vrot.lane.b32.xlu0 %v4491_v24, %s4733_s21  ;;  %4497 = vrot.lane.b32.xlu1 %v4491_v24, %s4735_s23  ;;  %v1755_v24 = vld [vmem:[#allocation3 + $0xc0] sm:$0xff] }
 0x1f6   : > { %v1477_v22 = vpop.f32.mrf.mxu2 }
 0x1f8   : > { %v1417_v61 = vpop.f32.mrf.mxu3 }
 0x1f9   : > { %v1418_v30 = vadd.f32 %v1417_v61, %v652_v3  ;;  %v1741_v61 = vld [vmem:[#allocation3 + $0x50] sm:$0xff] }
 0x1fb   : > { %1556 = vperm.xlu1 %4470, %v1483_v52   ;;  %v5792_v40 = vadd.f32 %v1437_v8, %v1418_v30  ;;  %v1754_v52 = vld [vmem:[#allocation3 + $0xb8] sm:$0xff]  ;;  %v1753_v8 = vld [vmem:[#allocation3 + $0xb0] sm:$0xff]  ;;  %v1752_v30 = vld [vmem:[#allocation3 + $0xa8] sm:$0xff] }
 0x1fd   : > { %v1480_v42 = vmax.f32 %v5792_v40, 0.0  ;;  %v1751_v40 = vld [vmem:[#allocation3 + $0xa0] sm:$0xff] }
 0x210   : > { %v1457_v57 = vpop.f32.mrf.mxu0 }
 0x211   : > { %v1458_v34 = vadd.f32 %v1457_v57, %v652_v3  ;;  %v1740_v57 = vld [vmem:[#allocation3 + $0x48] sm:$0xff] }
 0x213   : > { %v5794_v16 = vadd.f32 %v1477_v22, %v1458_v34  ;;  %v1739_v22 = vld [vmem:[#allocation3 + $0x40] sm:$0xff]  ;;  %v1778_v34 = vld [vmem:[#allocation3 + $0x178] sm:$0xff] }
 0x215   : > { %v1481_v43 = vmax.f32 %v5794_v16, 0.0  ;;  %v1777_v16 = vld [vmem:[#allocation3 + $0x170] sm:$0xff] }
 0x217   : > { %v4506_v55 = vpack.i.bf16 %v1481_v43, %v1480_v42 }
 0x219   : > { %4507 = vrot.lane.b32.xlu0 %v4506_v55, %s4735_s23  ;;  %4502 = vrot.lane.b32.xlu2 %v4506_v55, %s4733_s21  ;;  %v1776_v55 = vld [vmem:[#allocation3 + $0x168] sm:$0xff] }
 0x21f   : > { %v4473_v19 = vpop.permute.xlu2 %4472 }
 0x220   : > { %v4475_v14 = vunpack.i.h.bf16 %v4473_v19  ;;  %v4474_v38 = vunpack.i.l.bf16 %v4473_v19  ;;  %v1737_v19 = vld [vmem:[#allocation3 + $0x30] sm:$0xff] }
 0x222   : > { %v1540_v26 = vsel %vm550_vm2, %v4474_v38, %v4475_v14 }
 0x223   : > { %1596 = vmatpush.msrb.mxu2 %v1540_v26  ;;  %v1736_v26 = vld [vmem:[#allocation3 + $0x28] sm:$0xff] }
 0x237   : > { %v4478_v12 = vpop.permute.xlu0 %4477 }
 0x238   : > { %v4480_v17 = vunpack.i.h.bf16 %v4478_v12  ;;  %v4479_v39 = vunpack.i.l.bf16 %v4478_v12  ;;  %v1794_v12 = vld [vmem:[#allocation3 + $0x1f8] sm:$0xff] }
 0x23a   : > { %v1509_v53 = vsel %vm509_vm3, %v4479_v39, %v4480_v17 }
 0x23b   : > { %1597 = vmatpush.msrb.mxu2 %v1509_v53  ;;  %v4488_v10 = vpop.permute.xlu2 %4487  ;;  %v1735_v53 = vld [vmem:[#allocation3 + $0x20] sm:$0xff] }
 0x23c   : > { %v4489_v36 = vunpack.i.l.bf16 %v4488_v10  ;;  %v4490_v37 = vunpack.i.h.bf16 %v4488_v10  ;;  %v1773_v10 = vld [vmem:[#allocation3 + $0x150] sm:$0xff] }
 0x23d   : > { %1598 = vmatpush.msrb.mxu2 %v739_v4 }
 0x23e   : > { %3915 = vmatmul.msk.f32.vlgmr.msrb.gmra.mxu2 %vm1559_vm5, %v5809_v32  ;;  %v1508_v49 = vsel %vm509_vm3, %v4489_v36, %v4479_v39  ;;  %v1510_v54 = vsel %vm509_vm3, %v4480_v17, %v4490_v37  ;;  %v1748_v17 = vld [vmem:[#allocation3 + $0x88] sm:$0xff]  ;;  %v1774_v39 = vld [vmem:[#allocation3 + $0x158] sm:$0xff] }
 0x23f   : > { %v1772_v36 = vld [vmem:[#allocation3 + $0x148] sm:$0xff] }
 0x253   : > { %v4483_v29 = vpop.permute.xlu1 %4482 }
 0x254   : > { %v4484_v63 = vunpack.i.l.bf16 %v4483_v29  ;;  %v4485_v2 = vunpack.i.h.bf16 %v4483_v29  ;;  %v1734_v29 = vld [vmem:[#allocation3 + $0x18] sm:$0xff] }
 0x256   : > { %v1539_v15 = vsel %vm550_vm2, %v4484_v63, %v4474_v38  ;;  %v1541_v5 = vsel %vm550_vm2, %v4475_v14, %v4485_v2  ;;  %v1749_v14 = vld [vmem:[#allocation3 + $0x90] sm:$0xff]  ;;  %v1775_v38 = vld [vmem:[#allocation3 + $0x160] sm:$0xff] }
 0x257   : > { %1576 = vmatpush.msrb.mxu1 %v1539_v15  ;;  %v1733_v63 = vld [vmem:[#allocation3 + $0x10] sm:$0xff]  ;;  %v1771_v15 = vld [vmem:[#allocation3 + $0x140] sm:$0xff] }
 0x259   : > { %1577 = vmatpush.msrb.mxu1 %v1508_v49  ;;  %v1770_v49 = vld [vmem:[#allocation3 + $0x138] sm:$0xff] }
 0x25b   : > { %1578 = vmatpush.msrb.mxu1 %v738_v50  ;;  %v1743_v50 = vld [vmem:[#allocation3 + $0x60] sm:$0xff] }
 0x25c   : > { %3914 = vmatmul.msk.f32.vlgmr.msrb.gmra.mxu1 %vm1559_vm5, %v5809_v32  ;;  %1867 = vmatpush.msra.mxu0 %v1743_v50  ;;  %v1764_v50 = vld [vmem:[#allocation3 + $0x108] sm:$0xff] }
 0x25d   : > { %1616 = vmatpush.msra.mxu1 %v1541_v5  ;;  %v1810_v5 = vld [vmem:[#allocation3 + $0x278] sm:$0xff] }
 0x25f   : > { %1617 = vmatpush.msra.mxu1 %v1510_v54  ;;  %v1769_v54 = vld [vmem:[#allocation3 + $0x130] sm:$0xff] }
 0x261   : > { %1618 = vmatpush.msra.mxu1 %v1004_v33 }
 0x264   : > { %3916 = vmatmul.msk.f32.vlgmr.msra.gmra.mxu1 %vm1559_vm5, %v5809_v32 }
 0x265   : > { %v4493_v58 = vpop.permute.xlu0 %4492  ;;  %v4498_v3 = vpop.permute.xlu1 %4497 }
 0x266   : > { %v4495_v41 = vunpack.i.h.bf16 %v4493_v58  ;;  %v4494_v28 = vunpack.i.l.bf16 %v4493_v58  ;;  %v4500_v35 = vunpack.i.h.bf16 %v4498_v3  ;;  %v4499_v1 = vunpack.i.l.bf16 %v4498_v3  ;;  %v1793_v58 = vld [vmem:[#allocation3 + $0x1f0] sm:$0xff] }
 0x267   : > { %v1809_v3 = vld [vmem:[#allocation3 + $0x270] sm:$0xff] }
 0x268   : > { %v1542_v44 = vsel %vm550_vm2, %v4485_v2, %v4494_v28  ;;  %v1543_v21 = vsel %vm550_vm2, %v4494_v28, %v4495_v41  ;;  %v1511_v4 = vsel %vm509_vm3, %v4490_v37, %v4499_v1  ;;  %v1512_v59 = vsel %vm509_vm3, %v4499_v1, %v4500_v35  ;;  %v1732_v2 = vld [vmem:[#allocation3 + $0x8] sm:$0xff]  ;;  %v1731_v37 = vld [vmem:[#allocation3] sm:$0xff] }
 0x269   : > { %1636 = vmatpush.msra.mxu2 %v1542_v44  ;;  %1656 = vmatpush.msra.mxu3 %v1543_v21  ;;  %v1792_v28 = vld [vmem:[#allocation3 + $0x1e8] sm:$0xff]  ;;  %v1767_v1 = vld [vmem:[#allocation3 + $0x120] sm:$0xff] }
 0x26a   : > { %v1791_v44 = vld [vmem:[#allocation3 + $0x1e0] sm:$0xff] }
 0x26b   : > { %1637 = vmatpush.msra.mxu2 %v1511_v4  ;;  %1657 = vmatpush.msra.mxu3 %v1512_v59  ;;  %v1807_v21 = vld [vmem:[#allocation3 + $0x260] sm:$0xff]  ;;  %v1766_v4 = vld [vmem:[#allocation3 + $0x118] sm:$0xff] }
 0x26c   : > { %v1790_v59 = vld [vmem:[#allocation3 + $0x1d8] sm:$0xff] }
 0x26d   : > { %1638 = vmatpush.msra.mxu2 %v1005_v46  ;;  %1658 = vmatpush.msra.mxu3 %v1270_v45  ;;  %v1742_v46 = vld [vmem:[#allocation3 + $0x58] sm:$0xff]  ;;  %v1757_v45 = vld [vmem:[#allocation3 + $0xd0] sm:$0xff] }
 0x26e   : > { %3917 = vmatmul.msk.f32.vlgmr.msra.gmra.mxu2 %vm1559_vm5, %v5809_v32  ;;  %3918 = vmatmul.msk.f32.vlgmr.msra.gmra.mxu3 %vm1559_vm5, %v5809_v32 }
 0x26f   : > { %1868 = vmatpush.msra.mxu0 %v1742_v46  ;;  %v1804_v46 = vld [vmem:[#allocation3 + $0x248] sm:$0xff] }
 0x271   : > { %1869 = vmatpush.msra.mxu0 %v1741_v61  ;;  %v1797_v61 = vld [vmem:[#allocation3 + $0x210] sm:$0xff] }
 0x273   : > { %v4503_v33 = vpop.permute.xlu2 %4502  ;;  %1870 = vmatpush.msra.mxu0 %v1740_v57  ;;  %v1796_v57 = vld [vmem:[#allocation3 + $0x208] sm:$0xff] }
 0x274   : > { %v4505_v27 = vunpack.i.h.bf16 %v4503_v33  ;;  %v4504_v60 = vunpack.i.l.bf16 %v4503_v33  ;;  %v1806_v33 = vld [vmem:[#allocation3 + $0x258] sm:$0xff] }
 0x275   : > { %1871 = vmatpush.msra.mxu0 %v1739_v22  ;;  %v1826_v22 = vld [vmem:[#allocation3 + $0x2f8] sm:$0xff] }
 0x276   : > { %1716 = vmatpush.msrb.mxu3 %v4505_v27  ;;  %v1544_v0 = vsel %vm550_vm2, %v4495_v41, %v4504_v60  ;;  %v1545_v25 = vsel %vm550_vm2, %v4504_v60, %v4505_v27  ;;  %v1768_v41 = vld [vmem:[#allocation3 + $0x128] sm:$0xff]  ;;  %v5851_v27 = vpop.permute.xlu1 %1556 }
 0x277   : > { %1676 = vmatpush.msrb.mxu1 %v1544_v0  ;;  %1696 = vmatpush.msrb.mxu2 %v1545_v25  ;;  %v1765_v25 = vld [vmem:[#allocation3 + $0x110] sm:$0xff] }
 0x28b   : > { %v4508_v7 = vpop.permute.xlu0 %4507 }
 0x28c   : > { %v4510_v23 = vunpack.i.h.bf16 %v4508_v7  ;;  %v4509_v11 = vunpack.i.l.bf16 %v4508_v7  ;;  %v1788_v7 = vld [vmem:[#allocation3 + $0x1c8] sm:$0xff] }
 0x28e   : > { %1717 = vmatpush.msrb.mxu3 %v4510_v23  ;;  %v1513_v9 = vsel %vm509_vm3, %v4500_v35, %v4509_v11  ;;  %v1514_v31 = vsel %vm509_vm3, %v4509_v11, %v4510_v23  ;;  %v1808_v35 = vld [vmem:[#allocation3 + $0x268] sm:$0xff]  ;;  %v1763_v23 = vld [vmem:[#allocation3 + $0x100] sm:$0xff] }
 0x28f   : > { %1677 = vmatpush.msrb.mxu1 %v1513_v9  ;;  %1697 = vmatpush.msrb.mxu2 %v1514_v31  ;;  %v1787_v11 = vld [vmem:[#allocation3 + $0x1c0] sm:$0xff]  ;;  %v1786_v31 = vld [vmem:[#allocation3 + $0x1b8] sm:$0xff] }
 0x290   : > { %1718 = vmatpush.msrb.mxu3 %v1481_v43  ;;  %v1750_v43 = vld [vmem:[#allocation3 + $0x98] sm:$0xff]  ;;  %v1803_v9 = vld [vmem:[#allocation3 + $0x240] sm:$0xff] }
 0x291   : > { %1678 = vmatpush.msrb.mxu1 %v1271_v6  ;;  %1698 = vmatpush.msrb.mxu2 %v1480_v42  ;;  %v1756_v6 = vld [vmem:[#allocation3 + $0xc8] sm:$0xff]  ;;  %v1738_v42 = vld [vmem:[#allocation3 + $0x38] sm:$0xff] }
 0x292   : > { %3921 = vmatmul.msk.f32.vlgmr.msrb.gmra.mxu3 %vm1559_vm5, %v5809_v32  ;;  %3919 = vmatmul.msk.f32.vlgmr.msrb.gmra.mxu1 %vm1559_vm5, %v5809_v32 }
 0x293   : > { %3920 = vmatmul.msk.f32.vlgmr.msrb.gmra.mxu2 %vm1559_vm5, %v5809_v32  ;;  %1884 = vmatpush.msra.mxu1 %v1762_v48  ;;  %v1747_v32 = vld [vmem:[#allocation3 + $0x80] sm:$0xff]  ;;  %v1802_v48 = vld [vmem:[#allocation3 + $0x238] sm:$0xff] }
 0x294   : > { %1904 = vmatpush.msra.mxu2 %v1778_v34  ;;  %1872 = vmatpush.msra.mxu0 %v1738_v42  ;;  %v1795_v34 = vld [vmem:[#allocation3 + $0x200] sm:$0xff]  ;;  %v1824_v42 = vld [vmem:[#allocation3 + $0x2e8] sm:$0xff] }
 0x295   : > { %1885 = vmatpush.msra.mxu1 %v1761_v18  ;;  %1924 = vmatpush.msra.mxu3 %v1794_v12  ;;  %v1785_v18 = vld [vmem:[#allocation3 + $0x1b0] sm:$0xff]  ;;  %v1840_v12 = vld [vmem:[#allocation3 + $0x368] sm:$0xff] }
 0x296   : > { %1905 = vmatpush.msra.mxu2 %v1777_v16  ;;  %1873 = vmatpush.msra.mxu0 %v1737_v19  ;;  %v1825_v16 = vld [vmem:[#allocation3 + $0x2f0] sm:$0xff] }
 0x297   : > { %1886 = vmatpush.msra.mxu1 %v1760_v56  ;;  %1925 = vmatpush.msra.mxu3 %v1793_v58  ;;  %v1801_v56 = vld [vmem:[#allocation3 + $0x230] sm:$0xff]  ;;  %v1836_v58 = vld [vmem:[#allocation3 + $0x348] sm:$0xff] }
 0x298   : > { %1906 = vmatpush.msra.mxu2 %v1776_v55  ;;  %1874 = vmatpush.msra.mxu0 %v1736_v26  ;;  %v1841_v55 = vld [vmem:[#allocation3 + $0x370] sm:$0xff] }
 0x299   : > { %1887 = vmatpush.msra.mxu1 %v1759_v62  ;;  %1926 = vmatpush.msra.mxu3 %v1792_v28  ;;  %v1784_v62 = vld [vmem:[#allocation3 + $0x1a8] sm:$0xff] }
 0x29a   : > { %1907 = vmatpush.msra.mxu2 %v1775_v38  ;;  %1875 = vmatpush.msra.mxu0 %v1735_v53  ;;  %v1855_v38 = vld [vmem:[#allocation3 + $0x3e0] sm:$0x3] }
 0x29b   : > { %1888 = vmatpush.msra.mxu1 %v1758_v51  ;;  %1927 = vmatpush.msra.mxu3 %v1791_v44  ;;  %v1800_v51 = vld [vmem:[#allocation3 + $0x228] sm:$0xff]  ;;  %v1817_v44 = vld [vmem:[#allocation3 + $0x2b0] sm:$0xff] }
 0x29c   : > { %1908 = vmatpush.msra.mxu2 %v1774_v39  ;;  %1876 = vmatpush.msra.mxu0 %v1734_v29  ;;  %v1822_v39 = vld [vmem:[#allocation3 + $0x2d8] sm:$0xff]  ;;  %v1821_v29 = vld [vmem:[#allocation3 + $0x2d0] sm:$0xff] }
 0x29d   : > { %1889 = vmatpush.msra.mxu1 %v1757_v45  ;;  %1928 = vmatpush.msra.mxu3 %v1790_v59  ;;  %v1783_v45 = vld [vmem:[#allocation3 + $0x1a0] sm:$0xff]  ;;  %v1816_v59 = vld [vmem:[#allocation3 + $0x2a8] sm:$0xff] }
 0x29e   : > { %1909 = vmatpush.msra.mxu2 %v1773_v10  ;;  %1877 = vmatpush.msra.mxu0 %v1733_v63  ;;  %v1853_v10 = vld [vmem:[#allocation3 + $0x3d0] sm:$0xff]  ;;  %v1852_v63 = vld [vmem:[#allocation3 + $0x3c8] sm:$0xff] }
 0x29f   : > { %1890 = vmatpush.msra.mxu1 %v1756_v6  ;;  %1929 = vmatpush.msra.mxu3 %v1789_v47  ;;  %v1799_v6 = vld [vmem:[#allocation3 + $0x220] sm:$0xff]  ;;  %v1832_v47 = vld [vmem:[#allocation3 + $0x328] sm:$0xff] }
 0x2a0   : > { %1910 = vmatpush.msra.mxu2 %v1772_v36  ;;  %1878 = vmatpush.msra.mxu0 %v1732_v2  ;;  %v1838_v36 = vld [vmem:[#allocation3 + $0x358] sm:$0xff]  ;;  %v1837_v2 = vld [vmem:[#allocation3 + $0x350] sm:$0xff] }
 0x2a1   : > { %1891 = vmatpush.msra.mxu1 %v1755_v24  ;;  %1930 = vmatpush.msra.mxu3 %v1788_v7  ;;  %v1782_v24 = vld [vmem:[#allocation3 + $0x198] sm:$0xff] }
 0x2a2   : > { %1911 = vmatpush.msra.mxu2 %v1771_v15  ;;  %1879 = vmatpush.msra.mxu0 %v1731_v37  ;;  %v1820_v15 = vld [vmem:[#allocation3 + $0x2c8] sm:$0xff] }
 0x2a3   : > { %1892 = vmatpush.msra.mxu1 %v1754_v52  ;;  %1931 = vmatpush.msra.mxu3 %v1787_v11  ;;  %v1798_v52 = vld [vmem:[#allocation3 + $0x218] sm:$0xff]  ;;  %v1811_v11 = vld [vmem:[#allocation3 + $0x280] sm:$0xff] }
 0x2a4   : > { %1912 = vmatpush.msra.mxu2 %v1770_v49  ;;  %1944 = vmatpush.msrb.mxu0 %v1810_v5  ;;  %v1851_v49 = vld [vmem:[#allocation3 + $0x3c0] sm:$0xff] }
 0x2a5   : > { %1893 = vmatpush.msra.mxu1 %v1753_v8  ;;  %1932 = vmatpush.msra.mxu3 %v1786_v31  ;;  %v1781_v8 = vld [vmem:[#allocation3 + $0x190] sm:$0xff]  ;;  %v1819_v5 = vld [vmem:[#allocation3 + $0x2c0] sm:$0xff] }
 0x2a6   : > { %1913 = vmatpush.msra.mxu2 %v1769_v54  ;;  %1945 = vmatpush.msrb.mxu0 %v1809_v3  ;;  %v1850_v3 = vld [vmem:[#allocation3 + $0x3b8] sm:$0xff] }
 0x2a7   : > { %1894 = vmatpush.msra.mxu1 %v1752_v30  ;;  %1933 = vmatpush.msra.mxu3 %v1785_v18  ;;  %v1780_v30 = vld [vmem:[#allocation3 + $0x188] sm:$0xff]  ;;  %v1845_v18 = vld [vmem:[#allocation3 + $0x390] sm:$0xff] }
 0x2a8   : > { %1914 = vmatpush.msra.mxu2 %v1768_v41  ;;  %1946 = vmatpush.msrb.mxu0 %v1808_v35  ;;  %v1818_v41 = vld [vmem:[#allocation3 + $0x2b8] sm:$0xff]  ;;  %v1835_v35 = vld [vmem:[#allocation3 + $0x340] sm:$0xff] }
 0x2a9   : > { %1895 = vmatpush.msra.mxu1 %v1751_v40  ;;  %1934 = vmatpush.msra.mxu3 %v1784_v62  ;;  %v1779_v40 = vld [vmem:[#allocation3 + $0x180] sm:$0xff] }
 0x2aa   : > { %1915 = vmatpush.msra.mxu2 %v1767_v1  ;;  %1947 = vmatpush.msrb.mxu0 %v1807_v21  ;;  %v1849_v1 = vld [vmem:[#allocation3 + $0x3b0] sm:$0xff]  ;;  %v1834_v21 = vld [vmem:[#allocation3 + $0x338] sm:$0xff] }
 0x2ab   : > { %1896 = vmatpush.msra.mxu1 %v1750_v43  ;;  %1935 = vmatpush.msra.mxu3 %v1783_v45  ;;  %v1842_v43 = vld [vmem:[#allocation3 + $0x378] sm:$0xff]  ;;  %v1844_v45 = vld [vmem:[#allocation3 + $0x388] sm:$0xff] }
 0x2ac   : > { %1916 = vmatpush.msra.mxu2 %v1766_v4  ;;  %1948 = vmatpush.msrb.mxu0 %v1806_v33  ;;  %v1848_v4 = vld [vmem:[#allocation3 + $0x3a8] sm:$0xff]  ;;  %v1833_v33 = vld [vmem:[#allocation3 + $0x330] sm:$0xff] }
 0x2ad   : > { %1897 = vmatpush.msra.mxu1 %v1749_v14  ;;  %1936 = vmatpush.msra.mxu3 %v1782_v24  ;;  %v1823_v14 = vld [vmem:[#allocation3 + $0x2e0] sm:$0xff] }
 0x2ae   : > { %1917 = vmatpush.msra.mxu2 %v1765_v25  ;;  %1949 = vmatpush.msrb.mxu0 %v1805_v20  ;;  %v1813_v25 = vld [vmem:[#allocation3 + $0x290] sm:$0xff]  ;;  %v1847_v20 = vld [vmem:[#allocation3 + $0x3a0] sm:$0xff] }
 0x2af   : > { %1898 = vmatpush.msra.mxu1 %v1748_v17  ;;  %1937 = vmatpush.msra.mxu3 %v1781_v8  ;;  %v1854_v17 = vld [vmem:[#allocation3 + $0x3d8] sm:$0xff]  ;;  %v1843_v24 = vld [vmem:[#allocation3 + $0x380] sm:$0xff] }
 0x2b0   : > { %1918 = vmatpush.msra.mxu2 %v1764_v50  ;;  %1950 = vmatpush.msrb.mxu0 %v1804_v46  ;;  %v1831_v50 = vld [vmem:[#allocation3 + $0x320] sm:$0xff] }
 0x2b1   : > { %1899 = vmatpush.msra.mxu1 %v1747_v32  ;;  %1938 = vmatpush.msra.mxu3 %v1780_v30  ;;  %v1839_v32 = vld [vmem:[#allocation3 + $0x360] sm:$0xff] }
 0x2b2   : > { %1919 = vmatpush.msra.mxu2 %v1763_v23  ;;  %1951 = vmatpush.msrb.mxu0 %v1803_v9  ;;  %v1846_v23 = vld [vmem:[#allocation3 + $0x398] sm:$0xff] }
 0x2b3   : > { %1964 = vmatpush.msrb.mxu1 %v1826_v22  ;;  %1939 = vmatpush.msra.mxu3 %v1779_v40  ;;  %v1830_v9 = vld [vmem:[#allocation3 + $0x318] sm:$0xff] }
 0x2b4   : > { %1952 = vmatpush.msrb.mxu0 %v1802_v48  ;;  %1984 = vmatpush.msrb.mxu2 %v1842_v43 }
 0x2b5   : > { %1965 = vmatpush.msrb.mxu1 %v1825_v16  ;;  %3922 = vmatpush.msk.msrb.mxu3 %vm1860_vm6, %v1855_v38 }
 0x2b6   : > { %1953 = vmatpush.msrb.mxu0 %v1801_v56  ;;  %1985 = vmatpush.msrb.mxu2 %v1841_v55 }
 0x2b7   : > { %1966 = vmatpush.msrb.mxu1 %v1824_v42  ;;  %2008 = vmatpush.msrb.mxu3 %v1854_v17 }
 0x2b8   : > { %1954 = vmatpush.msrb.mxu0 %v1800_v51  ;;  %1986 = vmatpush.msrb.mxu2 %v1840_v12  ;;  %v1829_v51 = vld [vmem:[#allocation3 + $0x310] sm:$0xff] }
 0x2b9   : > { %1967 = vmatpush.msrb.mxu1 %v1823_v14  ;;  %2009 = vmatpush.msrb.mxu3 %v1853_v10 }
 0x2ba   : > { %1955 = vmatpush.msrb.mxu0 %v1799_v6  ;;  %1987 = vmatpush.msrb.mxu2 %v1839_v32  ;;  %v1828_v6 = vld [vmem:[#allocation3 + $0x308] sm:$0xff] }
 0x2bb   : > { %1968 = vmatpush.msrb.mxu1 %v1822_v39  ;;  %2010 = vmatpush.msrb.mxu3 %v1852_v63 }
 0x2bc   : > { %1956 = vmatpush.msrb.mxu0 %v1798_v52  ;;  %1988 = vmatpush.msrb.mxu2 %v1838_v36  ;;  %v1827_v52 = vld [vmem:[#allocation3 + $0x300] sm:$0xff] }
 0x2bd   : > { %1969 = vmatpush.msrb.mxu1 %v1821_v29  ;;  %2011 = vmatpush.msrb.mxu3 %v1851_v49  ;;  %v2136_v49 = vld [vmem:[%s6729_s7 + $0x310] sm:$0xff] }
 0x2be   : > { %1957 = vmatpush.msrb.mxu0 %v1797_v61  ;;  %1989 = vmatpush.msrb.mxu2 %v1837_v2  ;;  %v2135_v2 = vld [vmem:[%s6729_s7 + $0x308] sm:$0xff] }
 0x2bf   : > { %1970 = vmatpush.msrb.mxu1 %v1820_v15  ;;  %2012 = vmatpush.msrb.mxu3 %v1850_v3  ;;  %v2134_v15 = vld [vmem:[%s6729_s7 + $0x300] sm:$0xff]  ;;  %v2105_v3 = vld [vmem:[%s6729_s7 + $0x218] sm:$0xff] }
 0x2c0   : > { %1958 = vmatpush.msrb.mxu0 %v1796_v57  ;;  %1990 = vmatpush.msrb.mxu2 %v1836_v58  ;;  %v2104_v58 = vld [vmem:[%s6729_s7 + $0x210] sm:$0xff] }
 0x2c1   : > { %v1600_v60 = vpop.f32.mrf.mxu2  ;;  %1971 = vmatpush.msrb.mxu1 %v1819_v5  ;;  %2013 = vmatpush.msrb.mxu3 %v1849_v1  ;;  %v2102_v5 = vld [vmem:[%s6729_s7 + $0x200] sm:$0xff] }
 0x2c2   : > { %v1601_v0 = vadd.f32 %v1600_v60, %v5851_v27  ;;  %1959 = vmatpush.msrb.mxu0 %v1795_v34  ;;  %1991 = vmatpush.msrb.mxu2 %v1835_v35  ;;  %v1815_v60 = vld [vmem:[#allocation3 + $0x2a0] sm:$0xff] }
 0x2c3   : > { %1972 = vmatpush.msrb.mxu1 %v1818_v41  ;;  %2014 = vmatpush.msrb.mxu3 %v1848_v4  ;;  %v2070_v1 = vld [vmem:[%s6729_s7 + $0x100] sm:$0xff]  ;;  %v2073_v4 = vld [vmem:[%s6729_s7 + $0x118] sm:$0xff] }
 0x2c4   : > { %v1724_v13 = vmax.f32 %v1601_v0, 0.0  ;;  %1992 = vmatpush.msrb.mxu2 %v1834_v21  ;;  %v1814_v0 = vld [vmem:[#allocation3 + $0x298] sm:$0xff]  ;;  %v2072_v21 = vld [vmem:[%s6729_s7 + $0x110] sm:$0xff] }
 0x2c5   : > { %1973 = vmatpush.msrb.mxu1 %v1817_v44  ;;  %2015 = vmatpush.msrb.mxu3 %v1847_v20  ;;  %v2071_v44 = vld [vmem:[%s6729_s7 + $0x108] sm:$0xff]  ;;  %v2140_v20 = vld [vmem:[%s6729_s7 + $0x330] sm:$0xff] }
 0x2c6   : > { %1900 = vmatmul.f32.vlgmr.msra.gmra.mxu1 %v1724_v13  ;;  %1993 = vmatpush.msrb.mxu2 %v1833_v33  ;;  %v1812_v13 = vld [vmem:[#allocation3 + $0x288] sm:$0xff] }
 0x2c7   : > { %1974 = vmatpush.msrb.mxu1 %v1816_v59  ;;  %2016 = vmatpush.msrb.mxu3 %v1846_v23  ;;  %v2038_v59 = vld [vmem:[%s6729_s7] sm:$0xff]  ;;  %v2039_v33 = vld [vmem:[%s6729_s7 + $0x8] sm:$0xff]  ;;  %v2109_v23 = vld [vmem:[%s6729_s7 + $0x238] sm:$0xff] }
 0x2c8   : > { %1994 = vmatpush.msrb.mxu2 %v1832_v47  ;;  %v2139_v47 = vld [vmem:[%s6729_s7 + $0x328] sm:$0xff] }
 0x2c9   : > { %1975 = vmatpush.msrb.mxu1 %v1815_v60  ;;  %2017 = vmatpush.msrb.mxu3 %v1845_v18  ;;  %v2040_v60 = vld [vmem:[%s6729_s7 + $0x10] sm:$0xff]  ;;  %v2042_v18 = vld [vmem:[%s6729_s7 + $0x20] sm:$0xff] }
 0x2ca   : > { %1995 = vmatpush.msrb.mxu2 %v1831_v50  ;;  %v2106_v50 = vld [vmem:[%s6729_s7 + $0x220] sm:$0xff] }
 0x2cb   : > { %1976 = vmatpush.msrb.mxu1 %v1814_v0  ;;  %2018 = vmatpush.msrb.mxu3 %v1844_v45  ;;  %v2041_v0 = vld [vmem:[%s6729_s7 + $0x18] sm:$0xff]  ;;  %v2036_v45 = vld [vmem:[%s6728_s6] sm:$0x1] }
 0x2cc   : > { %1996 = vmatpush.msrb.mxu2 %v1830_v9  ;;  %v2075_v9 = vld [vmem:[%s6729_s7 + $0x128] sm:$0xff] }
 0x2cd   : > { %1977 = vmatpush.msrb.mxu1 %v1813_v25  ;;  %2019 = vmatpush.msrb.mxu3 %v1843_v24  ;;  %v2138_v25 = vld [vmem:[%s6729_s7 + $0x320] sm:$0xff] }
 0x2ce   : > { %1997 = vmatpush.msrb.mxu2 %v1829_v51  ;;  %v2045_v51 = vld [vmem:[%s6729_s7 + $0x38] sm:$0xff] }
 0x2cf   : > { %1978 = vmatpush.msrb.mxu1 %v1812_v13  ;;  %v2141_v13 = vld [vmem:[%s6729_s7 + $0x338] sm:$0xff] }
 0x2d0   : > { %1998 = vmatpush.msrb.mxu2 %v1828_v6 }
 0x2d1   : > { %1979 = vmatpush.msrb.mxu1 %v1811_v11  ;;  %v2074_v11 = vld [vmem:[%s6729_s7 + $0x120] sm:$0xff] }
 0x2d2   : > { %1999 = vmatpush.msrb.mxu2 %v1827_v52 }
 0x2d3   : > { %2293 = vmatpush.msra.mxu1 %v2136_v49  ;;  %v2085_v49 = vld [vmem:[%s6729_s7 + $0x178] sm:$0xff] }
 0x2d5   : > { %2294 = vmatpush.msra.mxu1 %v2104_v58  ;;  %v2053_v58 = vld [vmem:[%s6729_s7 + $0x78] sm:$0xff] }
 0x2d7   : > { %2295 = vmatpush.msra.mxu1 %v2072_v21  ;;  %v2120_v21 = vld [vmem:[%s6729_s7 + $0x290] sm:$0xff] }
 0x2d9   : > { %v1580_v19 = vpop.f32.mrf.mxu1  ;;  %2296 = vmatpush.msra.mxu1 %v2040_v60  ;;  %v2088_v60 = vld [vmem:[%s6729_s7 + $0x190] sm:$0xff] }
 0x2da   : > { %v1581_v26 = vadd.f32 %v1580_v19, %v5851_v27 }
 0x2dc   : > { %v1723_v53 = vmax.f32 %v1581_v26, 0.0 }
 0x2de   : > { %1880 = vmatmul.f32.vlgmr.msra.gmra.mxu0 %v1723_v53 }
 0x2df   : > { %2273 = vmatpush.msra.mxu0 %v2135_v2  ;;  %v2084_v2 = vld [vmem:[%s6729_s7 + $0x170] sm:$0xff] }
 0x2e1   : > { %v1620_v37 = vpop.f32.mrf.mxu1 }
 0x2e2   : > { %v1621_v54 = vadd.f32 %v1620_v37, %v5851_v27  ;;  %v2137_v37 = vld [vmem:[%s6729_s7 + $0x318] sm:$0xff] }
 0x2e4   : > { %v1725_v28 = vmax.f32 %v1621_v54, 0.0  ;;  %v2103_v54 = vld [vmem:[%s6729_s7 + $0x208] sm:$0xff] }
 0x2e5   : > { %2274 = vmatpush.msra.mxu0 %v2103_v54  ;;  %v2052_v54 = vld [vmem:[%s6729_s7 + $0x70] sm:$0xff] }
 0x2e6   : > { %1920 = vmatmul.f32.vlgmr.msra.gmra.mxu2 %v1725_v28 }
 0x2e7   : > { %2313 = vmatpush.msra.mxu2 %v2137_v37  ;;  %2275 = vmatpush.msra.mxu0 %v2071_v44  ;;  %v2050_v37 = vld [vmem:[%s6729_s7 + $0x60] sm:$0xff]  ;;  %v2119_v44 = vld [vmem:[%s6729_s7 + $0x288] sm:$0xff] }
 0x2e9   : > { %2314 = vmatpush.msra.mxu2 %v2105_v3  ;;  %2276 = vmatpush.msra.mxu0 %v2039_v33  ;;  %v2150_v3 = vld [vmem:[%s6729_s7 + $0x380] sm:$0xff]  ;;  %v2087_v33 = vld [vmem:[%s6729_s7 + $0x188] sm:$0xff] }
 0x2eb   : > { %2315 = vmatpush.msra.mxu2 %v2073_v4  ;;  %v2121_v4 = vld [vmem:[%s6729_s7 + $0x298] sm:$0xff] }
 0x2ed   : > { %2316 = vmatpush.msra.mxu2 %v2041_v0  ;;  %v2089_v0 = vld [vmem:[%s6729_s7 + $0x198] sm:$0xff] }
 0x2f1   : > { %v1640_v7 = vpop.f32.mrf.mxu2  ;;  %v1660_v46 = vpop.f32.mrf.mxu3 }
 0x2f2   : > { %v1641_v31 = vadd.f32 %v1640_v7, %v5851_v27  ;;  %v1661_v48 = vadd.f32 %v1660_v46, %v5851_v27  ;;  %v2107_v7 = vld [vmem:[%s6729_s7 + $0x228] sm:$0xff]  ;;  %v2108_v46 = vld [vmem:[%s6729_s7 + $0x230] sm:$0xff] }
 0x2f4   : > { %v1726_v56 = vmax.f32 %v1641_v31, 0.0  ;;  %v1727_v62 = vmax.f32 %v1661_v48, 0.0  ;;  %v2076_v31 = vld [vmem:[%s6729_s7 + $0x130] sm:$0xff]  ;;  %v2077_v48 = vld [vmem:[%s6729_s7 + $0x138] sm:$0xff] }
 0x2f6   : > { %1940 = vmatmul.f32.vlgmr.msra.gmra.mxu3 %v1726_v56  ;;  %1960 = vmatmul.f32.vlgmr.msrb.gmra.mxu0 %v1727_v62  ;;  %v2043_v56 = vld [vmem:[%s6729_s7 + $0x28] sm:$0xff]  ;;  %v2044_v62 = vld [vmem:[%s6729_s7 + $0x30] sm:$0xff] }
 0x2f7   : > { %2253 = vmatpush.msra.mxu3 %v2134_v15  ;;  %2353 = vmatpush.msrb.mxu0 %v2139_v47  ;;  %v2083_v15 = vld [vmem:[%s6729_s7 + $0x168] sm:$0xff] }
 0x2f8   : > { %v2055_v47 = vld [vmem:[%s6729_s7 + $0x88] sm:$0xff] }
 0x2f9   : > { %2254 = vmatpush.msra.mxu3 %v2102_v5  ;;  %2354 = vmatpush.msrb.mxu0 %v2107_v7  ;;  %v2051_v5 = vld [vmem:[%s6729_s7 + $0x68] sm:$0xff] }
 0x2fa   : > { %v2155_v7 = vld [vmem:[%s6729_s7 + $0x3a8] sm:$0xff] }
 0x2fb   : > { %2255 = vmatpush.msra.mxu3 %v2070_v1  ;;  %2355 = vmatpush.msrb.mxu0 %v2075_v9  ;;  %v2118_v1 = vld [vmem:[%s6729_s7 + $0x280] sm:$0xff]  ;;  %v2123_v9 = vld [vmem:[%s6729_s7 + $0x2a8] sm:$0xff] }
 0x2fd   : > { %2256 = vmatpush.msra.mxu3 %v2038_v59  ;;  %2356 = vmatpush.msrb.mxu0 %v2043_v56  ;;  %v2086_v59 = vld [vmem:[%s6729_s7 + $0x180] sm:$0xff]  ;;  %v2091_v56 = vld [vmem:[%s6729_s7 + $0x1a8] sm:$0xff] }
 0x30f   : > { %v1680_v8 = vpop.f32.mrf.mxu1 }
 0x310   : > { %v1681_v61 = vadd.f32 %v1680_v8, %v5851_v27  ;;  %v2142_v8 = vld [vmem:[%s6729_s7 + $0x340] sm:$0xff] }
 0x312   : > { %v1728_v30 = vmax.f32 %v1681_v61, 0.0  ;;  %v2143_v61 = vld [vmem:[%s6729_s7 + $0x348] sm:$0xff] }
 0x314   : > { %1980 = vmatmul.f32.vlgmr.msrb.gmra.mxu1 %v1728_v30  ;;  %v2144_v30 = vld [vmem:[%s6729_s7 + $0x350] sm:$0xff] }
 0x315   : > { %v1720_v57 = vpop.f32.mrf.mxu3  ;;  %2373 = vmatpush.msrb.mxu1 %v2140_v20  ;;  %v2056_v20 = vld [vmem:[%s6729_s7 + $0x90] sm:$0xff] }
 0x316   : > { %v1721_v22 = vadd.f32 %v1720_v57, %v5851_v27  ;;  %v1700_v40 = vpop.f32.mrf.mxu2  ;;  %v2145_v57 = vld [vmem:[%s6729_s7 + $0x358] sm:$0xff] }
 0x317   : > { %v1701_v34 = vadd.f32 %v1700_v40, %v5851_v27  ;;  %2374 = vmatpush.msrb.mxu1 %v2108_v46  ;;  %v2111_v40 = vld [vmem:[%s6729_s7 + $0x248] sm:$0xff]  ;;  %v2156_v46 = vld [vmem:[%s6729_s7 + $0x3b0] sm:$0xff] }
 0x318   : > { %v1730_v16 = vmax.f32 %v1721_v22, 0.0  ;;  %v2110_v22 = vld [vmem:[%s6729_s7 + $0x240] sm:$0xff] }
 0x319   : > { %v1729_v42 = vmax.f32 %v1701_v34, 0.0  ;;  %2375 = vmatpush.msrb.mxu1 %v2076_v31  ;;  %v2112_v34 = vld [vmem:[%s6729_s7 + $0x250] sm:$0xff] }
 0x31a   : > { %3923 = vmatmul.msk.f32.vlgmr.msrb.gmra.mxu3 %vm1856_vm7, %v1730_v16  ;;  %v2113_v16 = vld [vmem:[%s6729_s7 + $0x258] sm:$0xff]  ;;  %v2124_v31 = vld [vmem:[%s6729_s7 + $0x2b0] sm:$0xff] }
 0x31b   : > { %2000 = vmatmul.f32.vlgmr.msrb.gmra.mxu2 %v1729_v42  ;;  %2333 = vmatpush.msrb.mxu3 %v2138_v25  ;;  %v2078_v42 = vld [vmem:[%s6729_s7 + $0x140] sm:$0xff] }
 0x31c   : > { %2393 = vmatpush.msrb.mxu2 %v2141_v13  ;;  %2376 = vmatpush.msrb.mxu1 %v2044_v62  ;;  %v2054_v25 = vld [vmem:[%s6729_s7 + $0x80] sm:$0xff]  ;;  %v2057_v13 = vld [vmem:[%s6729_s7 + $0x98] sm:$0xff]  ;;  %v2092_v62 = vld [vmem:[%s6729_s7 + $0x1b0] sm:$0xff] }
 0x31d   : > { %2334 = vmatpush.msrb.mxu3 %v2106_v50  ;;  %v2154_v50 = vld [vmem:[%s6729_s7 + $0x3a0] sm:$0xff] }
 0x31e   : > { %2394 = vmatpush.msrb.mxu2 %v2109_v23  ;;  %v2157_v23 = vld [vmem:[%s6729_s7 + $0x3b8] sm:$0xff] }
 0x31f   : > { %2335 = vmatpush.msrb.mxu3 %v2074_v11  ;;  %v2122_v11 = vld [vmem:[%s6729_s7 + $0x2a0] sm:$0xff] }
 0x320   : > { %2395 = vmatpush.msrb.mxu2 %v2077_v48  ;;  %v2125_v48 = vld [vmem:[%s6729_s7 + $0x2b8] sm:$0xff] }
 0x321   : > { %2336 = vmatpush.msrb.mxu3 %v2042_v18  ;;  %v2090_v18 = vld [vmem:[%s6729_s7 + $0x1a0] sm:$0xff] }
 0x322   : > { %2396 = vmatpush.msrb.mxu2 %v2045_v51  ;;  %v2093_v51 = vld [vmem:[%s6729_s7 + $0x1b8] sm:$0xff] }
 0x343   : > { %v1901_v55 = vpop.f32.mrf.mxu1 }
 0x35b   : > { %v1881_v43 = vpop.f32.mrf.mxu0 }
 0x35c   : > { %v1902_v14 = vadd.f32 %v1901_v55, %v1881_v43  ;;  %v2079_v43 = vld [vmem:[%s6729_s7 + $0x148] sm:$0xff]  ;;  %v2080_v55 = vld [vmem:[%s6729_s7 + $0x150] sm:$0xff] }
 0x369   : > { %v1921_v19 = vpop.f32.mrf.mxu2 }
 0x36a   : > { %v1922_v26 = vadd.f32 %v1921_v19, %v1902_v14  ;;  %v2081_v19 = vld [vmem:[%s6729_s7 + $0x158] sm:$0xff]  ;;  %v2046_v14 = vld [vmem:[%s6729_s7 + $0x40] sm:$0xff] }
 0x373   : > { %v1961_v17 = vpop.f32.mrf.mxu0 }
 0x379   : > { %v1941_v38 = vpop.f32.mrf.mxu3 }
 0x37a   : > { %v1942_v12 = vadd.f32 %v1941_v38, %v1922_v26  ;;  %v2047_v38 = vld [vmem:[%s6729_s7 + $0x48] sm:$0xff]  ;;  %v2048_v26 = vld [vmem:[%s6729_s7 + $0x50] sm:$0xff] }
 0x37c   : > { %v1962_v53 = vadd.f32 %v1961_v17, %v1942_v12  ;;  %v2049_v12 = vld [vmem:[%s6729_s7 + $0x58] sm:$0xff]  ;;  %v2146_v17 = vld [vmem:[%s6729_s7 + $0x360] sm:$0xff] }
 0x391   : > { %v1981_v39 = vpop.f32.mrf.mxu1 }
 0x392   : > { %v1982_v32 = vadd.f32 %v1981_v39, %v1962_v53  ;;  %v2147_v39 = vld [vmem:[%s6729_s7 + $0x368] sm:$0xff]  ;;  %v2148_v53 = vld [vmem:[%s6729_s7 + $0x370] sm:$0xff] }
 0x39d   : > { %v2021_v36 = vpop.f32.mrf.mxu3 }
 0x39e   : > { %v2001_v10 = vpop.f32.mrf.mxu2 }
 0x39f   : > { %v2002_v29 = vadd.f32 %v2001_v10, %v1982_v32  ;;  %v2149_v32 = vld [vmem:[%s6729_s7 + $0x378] sm:$0xff]  ;;  %v2114_v10 = vld [vmem:[%s6729_s7 + $0x260] sm:$0xff] }
 0x3a1   : > { %v2022_v27 = vadd.f32 %v2021_v36, %v2002_v29  ;;  %v2115_v29 = vld [vmem:[%s6729_s7 + $0x268] sm:$0xff]  ;;  %v2116_v36 = vld [vmem:[%s6729_s7 + $0x270] sm:$0xff] }
 0x3a3   : > { %v2025_v63 = vrot.slane %v2022_v27, 1 }
 0x3a5   : > { %2026 = vrot.lane.b32.xlu2 %v2025_v63, %s4738_s26  ;;  %v2082_v63 = vld [vmem:[%s6729_s7 + $0x160] sm:$0xff] }
 0x3ff   : > { %v2027_v41 = vpop.permute.xlu2 %2026 }
 0x400   : > { %v2029_v28 = vadd.f32 %v2027_v41, %v2022_v27  ;;  %v2117_v27 = vld [vmem:[%s6729_s7 + $0x278] sm:$0xff]  ;;  %v2151_v41 = vld [vmem:[%s6729_s7 + $0x388] sm:$0xff] }
 0x402   : > { %v2031_v35 = vrot.slane %v2029_v28, 2 }
 0x404   : > { %2032 = vrot.lane.b32.xlu0 %v2031_v35, %s4739_s18  ;;  %v2153_v35 = vld [vmem:[%s6729_s7 + $0x398] sm:$0xff] }
 0x476   : > { %v2033_v6 = vpop.permute.xlu0 %2032 }
 0x477   : > { %v2035_v24 = vadd.f32 %v2033_v6, %v2029_v28  ;;  %v2152_v28 = vld [vmem:[%s6729_s7 + $0x390] sm:$0xff]  ;;  %v2059_v6 = vld [vmem:[%s6729_s7 + $0xa8] sm:$0xff] }
 0x479   : > { %v5961_v52 = vadd.f32 %v2036_v45, %v2035_v24  ;;  %v2058_v45 = vld [vmem:[%s6729_s7 + $0xa0] sm:$0xff]  ;;  %v2060_v24 = vld [vmem:[%s6729_s7 + $0xb0] sm:$0xff] }
 0x47b   : > { %3924 = vmatmul.msk.f32.vlgmr.msra.gmra.mxu3 %vm654_vm4, %v5961_v52  ;;  %3925 = vmatmul.msk.f32.vlgmr.msra.gmra.mxu0 %vm654_vm4, %v5961_v52 }
 0x47c   : > { %3926 = vmatmul.msk.f32.vlgmr.msra.gmra.mxu1 %vm654_vm4, %v5961_v52  ;;  %3927 = vmatmul.msk.f32.vlgmr.msra.gmra.mxu2 %vm654_vm4, %v5961_v52 }
 0x47d   : > { %2413 = vmatpush.msra.mxu3 %v2142_v8  ;;  %2433 = vmatpush.msra.mxu0 %v2143_v61  ;;  %v2061_v8 = vld [vmem:[%s6729_s7 + $0xb8] sm:$0xff]  ;;  %v2158_v61 = vld [vmem:[%s6729_s7 + $0x3c0] sm:$0xff] }
 0x47e   : > { %2453 = vmatpush.msra.mxu1 %v2144_v30  ;;  %2473 = vmatpush.msra.mxu2 %v2145_v57  ;;  %v2159_v30 = vld [vmem:[%s6729_s7 + $0x3c8] sm:$0xff]  ;;  %v2160_v57 = vld [vmem:[%s6729_s7 + $0x3d0] sm:$0xff] }
 0x47f   : > { %2414 = vmatpush.msra.mxu3 %v2110_v22  ;;  %2434 = vmatpush.msra.mxu0 %v2111_v40  ;;  %v2161_v22 = vld [vmem:[%s6729_s7 + $0x3d8] sm:$0xff]  ;;  %v2126_v40 = vld [vmem:[%s6729_s7 + $0x2c0] sm:$0xff] }
 0x480   : > { %2454 = vmatpush.msra.mxu1 %v2112_v34  ;;  %2474 = vmatpush.msra.mxu2 %v2113_v16  ;;  %v2127_v34 = vld [vmem:[%s6729_s7 + $0x2c8] sm:$0xff]  ;;  %v2128_v16 = vld [vmem:[%s6729_s7 + $0x2d0] sm:$0xff] }
 0x481   : > { %2415 = vmatpush.msra.mxu3 %v2078_v42  ;;  %2435 = vmatpush.msra.mxu0 %v2079_v43  ;;  %v2129_v42 = vld [vmem:[%s6729_s7 + $0x2d8] sm:$0xff]  ;;  %v2094_v43 = vld [vmem:[%s6729_s7 + $0x1c0] sm:$0xff] }
 0x482   : > { %2455 = vmatpush.msra.mxu1 %v2080_v55  ;;  %2475 = vmatpush.msra.mxu2 %v2081_v19  ;;  %v2095_v55 = vld [vmem:[%s6729_s7 + $0x1c8] sm:$0xff]  ;;  %v2096_v19 = vld [vmem:[%s6729_s7 + $0x1d0] sm:$0xff] }
 0x483   : > { %3928 = vmatmul.msk.f32.vlgmr.msrb.gmra.mxu3 %vm654_vm4, %v5961_v52  ;;  %3929 = vmatmul.msk.f32.vlgmr.msrb.gmra.mxu0 %vm654_vm4, %v5961_v52 }
 0x484   : > { %3930 = vmatmul.msk.f32.vlgmr.msrb.gmra.mxu1 %vm654_vm4, %v5961_v52  ;;  %3931 = vmatmul.msk.f32.vlgmr.msrb.gmra.mxu2 %vm654_vm4, %v5961_v52 }
 0x485   : > { %2416 = vmatpush.msra.mxu3 %v2046_v14  ;;  %2436 = vmatpush.msra.mxu0 %v2047_v38  ;;  %v2097_v14 = vld [vmem:[%s6729_s7 + $0x1d8] sm:$0xff]  ;;  %v2062_v38 = vld [vmem:[%s6729_s7 + $0xc0] sm:$0xff] }
 0x486   : > { %2456 = vmatpush.msra.mxu1 %v2048_v26  ;;  %2476 = vmatpush.msra.mxu2 %v2049_v12  ;;  %v2063_v26 = vld [vmem:[%s6729_s7 + $0xc8] sm:$0xff]  ;;  %v2064_v12 = vld [vmem:[%s6729_s7 + $0xd0] sm:$0xff] }
 0x487   : > { %2493 = vmatpush.msrb.mxu3 %v2146_v17  ;;  %2513 = vmatpush.msrb.mxu0 %v2147_v39  ;;  %v2065_v17 = vld [vmem:[%s6729_s7 + $0xd8] sm:$0xff]  ;;  %v2162_v39 = vld [vmem:[%s6729_s7 + $0x3e0] sm:$0xff] }
 0x488   : > { %2533 = vmatpush.msrb.mxu1 %v2148_v53  ;;  %2553 = vmatpush.msrb.mxu2 %v2149_v32  ;;  %v2163_v53 = vld [vmem:[%s6729_s7 + $0x3e8] sm:$0xff]  ;;  %v2164_v32 = vld [vmem:[%s6729_s7 + $0x3f0] sm:$0xff] }
 0x489   : > { %2494 = vmatpush.msrb.mxu3 %v2114_v10  ;;  %2514 = vmatpush.msrb.mxu0 %v2115_v29  ;;  %v2165_v10 = vld [vmem:[%s6729_s7 + $0x3f8] sm:$0xff]  ;;  %v2130_v29 = vld [vmem:[%s6729_s7 + $0x2e0] sm:$0xff] }
 0x48a   : > { %2534 = vmatpush.msrb.mxu1 %v2116_v36  ;;  %2554 = vmatpush.msrb.mxu2 %v2117_v27  ;;  %v2131_v36 = vld [vmem:[%s6729_s7 + $0x2e8] sm:$0xff]  ;;  %v2132_v27 = vld [vmem:[%s6729_s7 + $0x2f0] sm:$0xff] }
 0x48b   : > { %3932 = vmatmul.msk.f32.vlgmr.msra.gmra.mxu3 %vm654_vm4, %v5961_v52  ;;  %3933 = vmatmul.msk.f32.vlgmr.msra.gmra.mxu0 %vm654_vm4, %v5961_v52 }
 0x48c   : > { %3934 = vmatmul.msk.f32.vlgmr.msra.gmra.mxu1 %vm654_vm4, %v5961_v52  ;;  %3935 = vmatmul.msk.f32.vlgmr.msra.gmra.mxu2 %vm654_vm4, %v5961_v52 }
 0x48d   : > { %2495 = vmatpush.msrb.mxu3 %v2082_v63  ;;  %2515 = vmatpush.msrb.mxu0 %v2083_v15  ;;  %v2133_v63 = vld [vmem:[%s6729_s7 + $0x2f8] sm:$0xff]  ;;  %v2098_v15 = vld [vmem:[%s6729_s7 + $0x1e0] sm:$0xff] }
 0x48e   : > { %2535 = vmatpush.msrb.mxu1 %v2084_v2  ;;  %2555 = vmatpush.msrb.mxu2 %v2085_v49  ;;  %v2099_v2 = vld [vmem:[%s6729_s7 + $0x1e8] sm:$0xff]  ;;  %v2100_v49 = vld [vmem:[%s6729_s7 + $0x1f0] sm:$0xff] }
 0x48f   : > { %2496 = vmatpush.msrb.mxu3 %v2050_v37  ;;  %2516 = vmatpush.msrb.mxu0 %v2051_v5  ;;  %v2101_v37 = vld [vmem:[%s6729_s7 + $0x1f8] sm:$0xff]  ;;  %v2066_v5 = vld [vmem:[%s6729_s7 + $0xe0] sm:$0xff] }
 0x490   : > { %2536 = vmatpush.msrb.mxu1 %v2052_v54  ;;  %2556 = vmatpush.msrb.mxu2 %v2053_v58  ;;  %v2067_v54 = vld [vmem:[%s6729_s7 + $0xe8] sm:$0xff]  ;;  %v2068_v58 = vld [vmem:[%s6729_s7 + $0xf0] sm:$0xff] }
 0x491   : > { %2573 = vmatpush.msra.mxu3 %v2150_v3  ;;  %2593 = vmatpush.msra.mxu0 %v2151_v41  ;;  %v2069_v3 = vld [vmem:[%s6729_s7 + $0xf8] sm:$0xff] }
 0x492   : > { %2613 = vmatpush.msra.mxu1 %v2152_v28  ;;  %2633 = vmatpush.msra.mxu2 %v2153_v35  ;;  %v2166_v35 = vld [vmem:[%s6730_s8] sm:$0xff] }
 0x493   : > { %3936 = vmatmul.msk.f32.vlgmr.msrb.gmra.mxu3 %vm654_vm4, %v5961_v52  ;;  %3937 = vmatmul.msk.f32.vlgmr.msrb.gmra.mxu0 %vm654_vm4, %v5961_v52 }
 0x494   : > { %3938 = vmatmul.msk.f32.vlgmr.msrb.gmra.mxu1 %vm654_vm4, %v5961_v52  ;;  %3939 = vmatmul.msk.f32.vlgmr.msrb.gmra.mxu2 %vm654_vm4, %v5961_v52 }
 0x495   : > { %2574 = vmatpush.msra.mxu3 %v2118_v1  ;;  %2594 = vmatpush.msra.mxu0 %v2119_v44  ;;  %v2177_v44 = vperm.slane %v2166_v35, 3 }
 0x496   : > { %2614 = vmatpush.msra.mxu1 %v2120_v21  ;;  %2634 = vmatpush.msra.mxu2 %v2121_v4  ;;  %v2176_v4 = vperm.slane %v2166_v35, 2 }
 0x497   : > { %2575 = vmatpush.msra.mxu3 %v2086_v59  ;;  %2595 = vmatpush.msra.mxu0 %v2087_v33  ;;  %v2179_v33 = vperm.slane %v2166_v35, 5 }
 0x498   : > { %2615 = vmatpush.msra.mxu1 %v2088_v60  ;;  %2635 = vmatpush.msra.mxu2 %v2089_v0  ;;  %v2175_v0 = vperm.slane %v2166_v35, 1 }
 0x499   : > { %2576 = vmatpush.msra.mxu3 %v2054_v25  ;;  %2596 = vmatpush.msra.mxu0 %v2055_v47  ;;  %v2180_v47 = vperm.slane %v2166_v35, 6 }
 0x49a   : > { %2616 = vmatpush.msra.mxu1 %v2056_v20  ;;  %2636 = vmatpush.msra.mxu2 %v2057_v13  ;;  %v2178_v20 = vperm.slane %v2166_v35, 4 }
 0x49b   : > { %3940 = vmatmul.msk.f32.vlgmr.msra.gmra.mxu3 %vm654_vm4, %v5961_v52  ;;  %3941 = vmatmul.msk.f32.vlgmr.msra.gmra.mxu0 %vm654_vm4, %v5961_v52 }
 0x49c   : > { %3942 = vmatmul.msk.f32.vlgmr.msra.gmra.mxu1 %vm654_vm4, %v5961_v52  ;;  %3943 = vmatmul.msk.f32.vlgmr.msra.gmra.mxu2 %vm654_vm4, %v5961_v52 }
 0x49d   : > { %2653 = vmatpush.msrb.mxu3 %v2154_v50  ;;  %2673 = vmatpush.msrb.mxu0 %v2155_v7  ;;  %v2174_v50 = vperm.slane %v2166_v35, 0 }
 0x49e   : > { %2693 = vmatpush.msrb.mxu1 %v2156_v46  ;;  %2713 = vmatpush.msrb.mxu2 %v2157_v23 }
 0x49f   : > { %2654 = vmatpush.msrb.mxu3 %v2122_v11  ;;  %2674 = vmatpush.msrb.mxu0 %v2123_v9 }
 0x4a0   : > { %2694 = vmatpush.msrb.mxu1 %v2124_v31  ;;  %2714 = vmatpush.msrb.mxu2 %v2125_v48 }
 0x4a1   : > { %2655 = vmatpush.msrb.mxu3 %v2090_v18  ;;  %2675 = vmatpush.msrb.mxu0 %v2091_v56 }
 0x4a2   : > { %2695 = vmatpush.msrb.mxu1 %v2092_v62  ;;  %2715 = vmatpush.msrb.mxu2 %v2093_v51 }
 0x4a3   : > { %2656 = vmatpush.msrb.mxu3 %v2058_v45  ;;  %2676 = vmatpush.msrb.mxu0 %v2059_v6 }
 0x4a4   : > { %2696 = vmatpush.msrb.mxu1 %v2060_v24  ;;  %2716 = vmatpush.msrb.mxu2 %v2061_v8 }
 0x4a5   : > { %3944 = vmatmul.msk.f32.vlgmr.msrb.gmra.mxu3 %vm654_vm4, %v5961_v52  ;;  %3945 = vmatmul.msk.f32.vlgmr.msrb.gmra.mxu0 %vm654_vm4, %v5961_v52 }
 0x4a6   : > { %3946 = vmatmul.msk.f32.vlgmr.msrb.gmra.mxu1 %vm654_vm4, %v5961_v52  ;;  %3947 = vmatmul.msk.f32.vlgmr.msrb.gmra.mxu2 %vm654_vm4, %v5961_v52 }
 0x4a7   : > { %2733 = vmatpush.msra.mxu3 %v2158_v61  ;;  %2753 = vmatpush.msra.mxu0 %v2159_v30 }
 0x4a8   : > { %2773 = vmatpush.msra.mxu1 %v2160_v57  ;;  %2793 = vmatpush.msra.mxu2 %v2161_v22 }
 0x4a9   : > { %2734 = vmatpush.msra.mxu3 %v2126_v40  ;;  %2754 = vmatpush.msra.mxu0 %v2127_v34 }
 0x4aa   : > { %2774 = vmatpush.msra.mxu1 %v2128_v16  ;;  %2794 = vmatpush.msra.mxu2 %v2129_v42 }
 0x4ab   : > { %2735 = vmatpush.msra.mxu3 %v2094_v43  ;;  %2755 = vmatpush.msra.mxu0 %v2095_v55  ;;  %v2167_v43 = vld [vmem:[%s6730_s8 + $0x8] sm:$0xff] }
 0x4ac   : > { %2775 = vmatpush.msra.mxu1 %v2096_v19  ;;  %2795 = vmatpush.msra.mxu2 %v2097_v14  ;;  %v2185_v14 = vperm.slane %v2167_v43, 3 }
 0x4ad   : > { %2736 = vmatpush.msra.mxu3 %v2062_v38  ;;  %2756 = vmatpush.msra.mxu0 %v2063_v26  ;;  %v2184_v26 = vperm.slane %v2167_v43, 2 }
 0x4ae   : > { %2776 = vmatpush.msra.mxu1 %v2064_v12  ;;  %2796 = vmatpush.msra.mxu2 %v2065_v17  ;;  %v2187_v17 = vperm.slane %v2167_v43, 5 }
 0x4af   : > { %3948 = vmatmul.msk.f32.vlgmr.msra.gmra.mxu3 %vm654_vm4, %v5961_v52  ;;  %3949 = vmatmul.msk.f32.vlgmr.msra.gmra.mxu0 %vm654_vm4, %v5961_v52 }
 0x4b0   : > { %3950 = vmatmul.msk.f32.vlgmr.msra.gmra.mxu1 %vm654_vm4, %v5961_v52  ;;  %3951 = vmatmul.msk.f32.vlgmr.msra.gmra.mxu2 %vm654_vm4, %v5961_v52 }
 0x4b1   : > { %2813 = vmatpush.msrb.mxu3 %v2162_v39  ;;  %2833 = vmatpush.msrb.mxu0 %v2163_v53  ;;  %v2183_v53 = vperm.slane %v2167_v43, 1 }
 0x4b2   : > { %2853 = vmatpush.msrb.mxu1 %v2164_v32  ;;  %2873 = vmatpush.msrb.mxu2 %v2165_v10  ;;  %v2188_v10 = vperm.slane %v2167_v43, 6 }
 0x4b3   : > { %2814 = vmatpush.msrb.mxu3 %v2130_v29  ;;  %2834 = vmatpush.msrb.mxu0 %v2131_v36  ;;  %v2186_v29 = vperm.slane %v2167_v43, 4 }
 0x4b4   : > { %2854 = vmatpush.msrb.mxu1 %v2132_v27  ;;  %2874 = vmatpush.msrb.mxu2 %v2133_v63  ;;  %v2182_v27 = vperm.slane %v2167_v43, 0  ;;  %v2189_v63 = vperm.slane %v2167_v43, 7 }
 0x4b5   : > { %2815 = vmatpush.msrb.mxu3 %v2098_v15  ;;  %2835 = vmatpush.msrb.mxu0 %v2099_v2 }
 0x4b6   : > { %2855 = vmatpush.msrb.mxu1 %v2100_v49  ;;  %2875 = vmatpush.msrb.mxu2 %v2101_v37 }
 0x4b7   : > { %2816 = vmatpush.msrb.mxu3 %v2066_v5  ;;  %2836 = vmatpush.msrb.mxu0 %v2067_v54 }
 0x4b8   : > { %2856 = vmatpush.msrb.mxu1 %v2068_v58  ;;  %2876 = vmatpush.msrb.mxu2 %v2069_v3 }
 0x4b9   : > { %3952 = vmatmul.msk.f32.vlgmr.msrb.gmra.mxu3 %vm654_vm4, %v5961_v52  ;;  %3953 = vmatmul.msk.f32.vlgmr.msrb.gmra.mxu0 %vm654_vm4, %v5961_v52 }
 0x4ba   : > { %3954 = vmatmul.msk.f32.vlgmr.msrb.gmra.mxu1 %vm654_vm4, %v5961_v52  ;;  %3955 = vmatmul.msk.f32.vlgmr.msrb.gmra.mxu2 %vm654_vm4, %v5961_v52  ;;  %v2181_v52 = vperm.slane %v2166_v35, 7  ;;  %vm3003_vm4 = vcmask 884544  }
 0x4f8   : > { %v2278_v41 = vpop.f32.mrf.mxu0 }
 0x4f9   : > { %v2298_v28 = vpop.f32.mrf.mxu1  ;;  %v2279_v46 = vadd.f32 %v2278_v41, %v2175_v0 }
 0x4fa   : > { %v2299_v13 = vadd.f32 %v2298_v28, %v2176_v4 }
 0x4fb   : > { %v2889_v8 = vrot.slane %v2279_v46, 7 }
 0x4fc   : > { %v2890_v18 = vrot.slane %v2299_v13, 6 }
 0x4fe   : > { %v2258_v1 = vpop.f32.mrf.mxu3 }
 0x4ff   : > { %v2318_v21 = vpop.f32.mrf.mxu2  ;;  %v2259_v56 = vadd.f32 %v2258_v1, %v2174_v50 }
 0x500   : > { %v2358_v59 = vpop.f32.mrf.mxu0  ;;  %v2319_v25 = vadd.f32 %v2318_v21, %v2177_v44 }
 0x501   : > { %v2378_v60 = vpop.f32.mrf.mxu1  ;;  %v2359_v7 = vadd.f32 %v2358_v59, %v2179_v33  ;;  %v2897_v40 = vsel %vm2896_vm8, %v2259_v56, %v2889_v8  ;;  %v4740_v8 = vmov 0.0  }
 0x502   : > { %v2891_v23 = vrot.slane %v2319_v25, 5  ;;  %v2379_v11 = vadd.f32 %v2378_v60, %v2180_v47  ;;  %2993 = vst [vmem:[#allocation2 + $0x18] sm:$0xf0] %v4740_v8 }
 0x503   : > { %v2893_v45 = vrot.slane %v2359_v7, 3  ;;  %v2168_v7 = vld [vmem:[%s6730_s8 + $0x10] sm:$0xff]  ;;  %2994 = vst [vmem:[#allocation2 + $0x20] sm:$0xf0] %v4740_v8 }
 0x504   : > { %v2899_v61 = vsel %vm2898_vm9, %v2890_v18, %v2891_v23  ;;  %v2894_v30 = vrot.slane %v2379_v11, 2  ;;  %v2193_v23 = vperm.slane %v2168_v7, 3  ;;  %v2192_v11 = vperm.slane %v2168_v7, 2  ;;  %2990 = vst [vmem:[#allocation2] sm:$0xf0] %v4740_v8 }
 0x505   : > { %v2900_v16 = vsel %vm1860_vm6, %v2897_v40, %v2899_v61  ;;  %v2196_v56 = vperm.slane %v2168_v7, 6  ;;  %2991 = vst [vmem:[#allocation2 + $0x8] sm:$0xf0] %v4740_v8 }
 0x506   : > { %v2338_v9 = vpop.f32.mrf.mxu3  ;;  %2992 = vst [vmem:[#allocation2 + $0x10] sm:$0xf0] %v4740_v8 }
 0x507   : > { %v2339_v31 = vadd.f32 %v2338_v9, %v2178_v20  ;;  %v2398_v48 = vpop.f32.mrf.mxu2  ;;  %v2195_v9 = vperm.slane %v2168_v7, 5  ;;  %2995 = vst [vmem:[#allocation2 + $0x28] sm:$0xf0] %v4740_v8 }
 0x508   : > { %v2399_v62 = vadd.f32 %v2398_v48, %v2181_v52  ;;  %v2438_v51 = vpop.f32.mrf.mxu0  ;;  %2996 = vst [vmem:[#allocation2 + $0x30] sm:$0xf0] %v4740_v8 }
 0x509   : > { %v2892_v6 = vrot.slane %v2339_v31, 4  ;;  %v2458_v24 = vpop.f32.mrf.mxu1  ;;  %v2439_v2 = vadd.f32 %v2438_v51, %v2183_v53  ;;  %v2191_v31 = vperm.slane %v2168_v7, 1  ;;  %v2194_v51 = vperm.slane %v2168_v7, 4  ;;  %2997 = vst [vmem:[#allocation2 + $0x38] sm:$0xf0] %v4740_v8 }
 0x50a   : > { %v2895_v57 = vrot.slane %v2399_v62, 1  ;;  %v2459_v36 = vadd.f32 %v2458_v24, %v2184_v26  ;;  %v2197_v24 = vperm.slane %v2168_v7, 7  ;;  %3002 = vst.msk [vmem:[#allocation2 + $0x40] sm:$0xff] %vm3001_vm14, %v4740_v8 }
 0x50b   : > { %v2902_v22 = vsel %vm2901_vm10, %v2892_v6, %v2893_v45  ;;  %v2920_v44 = vrot.slane %v2439_v2, 7  ;;  %v2190_v6 = vperm.slane %v2168_v7, 0  ;;  %v2169_v2 = vld [vmem:[%s6730_s8 + $0x18] sm:$0xff]  ;;  %3004 = vst.msk [vmem:[#allocation2 + $0x78] sm:$0xff] %vm3003_vm4, %v4740_v8 }
 0x50c   : > { %v2904_v34 = vsel %vm2903_vm11, %v2894_v30, %v2895_v57  ;;  %v2921_v3 = vrot.slane %v2459_v36, 6 }
 0x50d   : > { %v2906_v42 = vsel %vm2905_vm12, %v2902_v22, %v2904_v34 }
 0x50e   : > { %v2908_v55 = vsel %vm2907_vm13, %v2900_v16, %v2906_v42  ;;  %v2418_v19 = vpop.f32.mrf.mxu3 }
 0x50f   : > { %2910 = vst [vmem:[#allocation2] ss:$8 sm:$0xf] %v2908_v55  ;;  %v2478_v38 = vpop.f32.mrf.mxu2  ;;  %v2419_v41 = vadd.f32 %v2418_v19, %v2182_v27 }
 0x510   : > { %2911 = vst [vmem:[#allocation2] ss:$8 sm:$0xf0] %v2908_v55  ;;  %v2518_v12 = vpop.f32.mrf.mxu0  ;;  %v2479_v32 = vadd.f32 %v2478_v38, %v2185_v14 }
 0x511   : > { %v2538_v39 = vpop.f32.mrf.mxu1  ;;  %v2519_v15 = vadd.f32 %v2518_v12, %v2187_v17  ;;  %v2927_v25 = vsel %vm2896_vm8, %v2419_v41, %v2920_v44 }
 0x512   : > { %v2922_v49 = vrot.slane %v2479_v32, 5  ;;  %v2539_v37 = vadd.f32 %v2538_v39, %v2188_v10 }
 0x513   : > { %v2924_v35 = vrot.slane %v2519_v15, 3 }
 0x514   : > { %v2928_v21 = vsel %vm2898_vm9, %v2921_v3, %v2922_v49  ;;  %v2925_v4 = vrot.slane %v2539_v37, 2  ;;  %v2201_v37 = vperm.slane %v2169_v2, 3 }
 0x515   : > { %v2929_v20 = vsel %vm1860_vm6, %v2927_v25, %v2928_v21  ;;  %v2198_v21 = vperm.slane %v2169_v2, 0 }
 0x516   : > { %v2498_v5 = vpop.f32.mrf.mxu3 }
 0x517   : > { %v2499_v54 = vadd.f32 %v2498_v5, %v2186_v29  ;;  %v2558_v58 = vpop.f32.mrf.mxu2  ;;  %v2200_v5 = vperm.slane %v2169_v2, 2 }
 0x518   : > { %v2559_v28 = vadd.f32 %v2558_v58, %v2189_v63  ;;  %v2598_v33 = vpop.f32.mrf.mxu0  ;;  %v2199_v58 = vperm.slane %v2169_v2, 1 }
 0x519   : > { %v2923_v1 = vrot.slane %v2499_v54, 4  ;;  %v2618_v0 = vpop.f32.mrf.mxu1  ;;  %v2599_v30 = vadd.f32 %v2598_v33, %v2191_v31  ;;  %v2203_v54 = vperm.slane %v2169_v2, 5 }
 0x51a   : > { %v2926_v59 = vrot.slane %v2559_v28, 1  ;;  %v2619_v45 = vadd.f32 %v2618_v0, %v2192_v11  ;;  %v2204_v28 = vperm.slane %v2169_v2, 6 }
 0x51b   : > { %v2930_v60 = vsel %vm2901_vm10, %v2923_v1, %v2924_v35  ;;  %v2946_v38 = vrot.slane %v2599_v30, 7  ;;  %v2202_v1 = vperm.slane %v2169_v2, 4 }
 0x51c   : > { %v2931_v47 = vsel %vm2903_vm11, %v2925_v4, %v2926_v59  ;;  %v2947_v42 = vrot.slane %v2619_v45, 6  ;;  %v2205_v4 = vperm.slane %v2169_v2, 7  ;;  %v2998_v2 = vld [vmem:[%s6731_s9] sm:$0xff] }
 0x51d   : > { %v2932_v13 = vsel %vm2905_vm12, %v2930_v60, %v2931_v47 }
 0x51e   : > { %v2933_v50 = vsel %vm2907_vm13, %v2929_v20, %v2932_v13  ;;  %v2578_v52 = vpop.f32.mrf.mxu3 }
 0x51f   : > { %2936 = vst [vmem:[#allocation2 + $0x1] ss:$8 sm:$0xf] %v2933_v50  ;;  %v2638_v46 = vpop.f32.mrf.mxu2  ;;  %v2579_v43 = vadd.f32 %v2578_v52, %v2190_v6 }
 0x520   : > { %2937 = vst [vmem:[#allocation2 + $0x1] ss:$8 sm:$0xf0] %v2933_v50  ;;  %v2639_v48 = vadd.f32 %v2638_v46, %v2193_v23 }
 0x521   : > { %v2953_v53 = vsel %vm2896_vm8, %v2579_v43, %v2946_v38  ;;  %v2999_v43 = vld [vmem:[%s6732_s10] sm:$0xff] }
 0x522   : > { %v2678_v18 = vpop.f32.mrf.mxu0  ;;  %v2948_v57 = vrot.slane %v2639_v48, 5 }
 0x523   : > { %v2698_v62 = vpop.f32.mrf.mxu1  ;;  %v2679_v61 = vadd.f32 %v2678_v18, %v2195_v9 }
 0x524   : > { %v2699_v22 = vadd.f32 %v2698_v62, %v2196_v56  ;;  %v2954_v26 = vsel %vm2898_vm9, %v2947_v42, %v2948_v57 }
 0x525   : > { %v2950_v19 = vrot.slane %v2679_v61, 3  ;;  %v2955_v29 = vsel %vm1860_vm6, %v2953_v53, %v2954_v26 }
 0x526   : > { %v2951_v12 = vrot.slane %v2699_v22, 2 }
 0x528   : > { %v2658_v40 = vpop.f32.mrf.mxu3 }
 0x529   : > { %v2659_v34 = vadd.f32 %v2658_v40, %v2194_v51  ;;  %v2718_v16 = vpop.f32.mrf.mxu2 }
 0x52a   : > { %v2719_v55 = vadd.f32 %v2718_v16, %v2197_v24 }
 0x52b   : > { %v2949_v14 = vrot.slane %v2659_v34, 4 }
 0x52c   : > { %v2952_v17 = vrot.slane %v2719_v55, 1  ;;  %v2758_v10 = vpop.f32.mrf.mxu0 }
 0x52d   : > { %v2956_v39 = vsel %vm2901_vm10, %v2949_v14, %v2950_v19  ;;  %v2778_v27 = vpop.f32.mrf.mxu1  ;;  %v2759_v33 = vadd.f32 %v2758_v10, %v2199_v58 }
 0x52e   : > { %v2957_v32 = vsel %vm2903_vm11, %v2951_v12, %v2952_v17  ;;  %v2779_v44 = vadd.f32 %v2778_v27, %v2200_v5 }
 0x52f   : > { %v2958_v36 = vsel %vm2905_vm12, %v2956_v39, %v2957_v32  ;;  %v2972_v23 = vrot.slane %v2759_v33, 7 }
 0x530   : > { %v2959_v63 = vsel %vm2907_vm13, %v2955_v29, %v2958_v36  ;;  %v2973_v13 = vrot.slane %v2779_v44, 6 }
 0x531   : > { %2962 = vst [vmem:[#allocation2 + $0x2] ss:$8 sm:$0xf] %v2959_v63 }
 0x532   : > { %2963 = vst [vmem:[#allocation2 + $0x2] ss:$8 sm:$0xf0] %v2959_v63  ;;  %v2738_v15 = vpop.f32.mrf.mxu3 }
 0x533   : > { %v2798_v49 = vpop.f32.mrf.mxu2  ;;  %v2739_v50 = vadd.f32 %v2738_v15, %v2198_v21 }
 0x534   : > { %v2799_v3 = vadd.f32 %v2798_v49, %v2201_v37 }
 0x535   : > { %v2979_v18 = vsel %vm2896_vm8, %v2739_v50, %v2972_v23 }
 0x536   : > { %v2838_v41 = vpop.f32.mrf.mxu0  ;;  %v2974_v60 = vrot.slane %v2799_v3, 5 }
 0x537   : > { %v2858_v35 = vpop.f32.mrf.mxu1  ;;  %v2839_v59 = vadd.f32 %v2838_v41, %v2203_v54 }
 0x538   : > { %v2859_v0 = vadd.f32 %v2858_v35, %v2204_v28  ;;  %v2980_v11 = vsel %vm2898_vm9, %v2973_v13, %v2974_v60 }
 0x539   : > { %v2976_v7 = vrot.slane %v2839_v59, 3  ;;  %v2981_v62 = vsel %vm1860_vm6, %v2979_v18, %v2980_v11  ;;  %vm3418_vm6 = vcmask 326656  }
 0x53a   : > { %v2977_v9 = vrot.slane %v2859_v0, 2 }
 0x53c   : > { %v2818_v25 = vpop.f32.mrf.mxu3 }
 0x53d   : > { %v2819_v47 = vadd.f32 %v2818_v25, %v2202_v1  ;;  %v2878_v20 = vpop.f32.mrf.mxu2 }
 0x53e   : > { %v2879_v52 = vadd.f32 %v2878_v20, %v2205_v4 }
 0x53f   : > { %v2975_v46 = vrot.slane %v2819_v47, 4 }
 0x540   : > { %v2978_v31 = vrot.slane %v2879_v52, 1 }
 0x541   : > { %v2982_v48 = vsel %vm2901_vm10, %v2975_v46, %v2976_v7 }
 0x542   : > { %v2983_v56 = vsel %vm2903_vm11, %v2977_v9, %v2978_v31 }
 0x543   : > { %v2984_v51 = vsel %vm2905_vm12, %v2982_v48, %v2983_v56 }
 0x544   : > { %v2985_v45 = vsel %vm2907_vm13, %v2981_v62, %v2984_v51 }
 0x545   : > { %2988 = vst [vmem:[#allocation2 + $0x3] ss:$8 sm:$0xf] %v2985_v45 }
 0x546   : > { %2989 = vst [vmem:[#allocation2 + $0x3] ss:$8 sm:$0xf0] %v2985_v45 }
 0x54c   : > { %v3008_v6 = vld [vmem:[#allocation2 + $0x18] sm:$0xff]  ;;  %v3005_v24 = vld [vmem:[#allocation2] sm:$0xff]  ;;  %v6363_v61 = vld [vmem:[#allocation2 + $0x8] sm:$0xff] }
 0x54d   : > { %v3009_v30 = vld [vmem:[#allocation2 + $0x20] sm:$0xff]  ;;  %v4516_v57 = vpack.i.bf16 %v6363_v61, %v3005_v24  ;;  %v6369_v40 = vld [vmem:[#allocation2 + $0x28] sm:$0xff]  ;;  %v3007_v34 = vld [vmem:[#allocation2 + $0x10] sm:$0xff] }
 0x54e   : > { %v4521_v22 = vpack.i.bf16 %v3009_v30, %v3008_v6  ;;  %v6376_v16 = vld [vmem:[#allocation2 + $0x38] sm:$0xff]  ;;  %v6382_v42 = vld [vmem:[#allocation2 + $0x30] sm:$0xff] }
 0x54f   : > { %4517 = vrot.lane.b32.xlu2 %v4516_v57, %s4735_s23  ;;  %4512 = vrot.lane.b32.xlu1 %v4516_v57, %s4733_s21 }
 0x550   : > { %4522 = vrot.lane.b32.xlu0 %v4521_v22, %s4733_s21 }
 0x557   : > { %4527 = vrot.lane.b32.xlu2 %v4521_v22, %s4735_s23  ;;  %3062 = vrot.lane.b32.xlu1 %v6369_v40, %s4733_s21 }
 0x558   : > { %3031 = vrot.lane.b32.xlu0 %v6369_v40, %s4735_s23 }
 0x55f   : > { %3025 = vrot.lane.b32.xlu2 %v3007_v34, %s4735_s23  ;;  %3056 = vrot.lane.b32.xlu1 %v3007_v34, %s4733_s21 }
 0x560   : > { %3066 = vrot.lane.b32.xlu0 %v6376_v16, %s4733_s21 }
 0x567   : > { %3064 = vrot.lane.b32.xlu2 %v6382_v42, %s4733_s21  ;;  %3035 = vrot.lane.b32.xlu1 %v6376_v16, %s4735_s23 }
 0x568   : > { %3033 = vrot.lane.b32.xlu0 %v6382_v42, %s4735_s23 }
 0x56f   : > { %3085 = vperm.xlu1 %4470, %v2999_v43  }
 0x5a9   : > { %v4518_v55 = vpop.permute.xlu2 %4517 }
 0x5aa   : > { %v4520_v38 = vunpack.i.h.bf16 %v4518_v55  ;;  %v4519_v26 = vunpack.i.l.bf16 %v4518_v55 }
 0x5ac   : > { %v3037_v63 = vsel %vm509_vm3, %v4519_v26, %v4520_v38 }
 0x5b1   : > { %v4528_v19 = vpop.permute.xlu2 %4527 }
 0x5b2   : > { %v4530_v53 = vunpack.i.h.bf16 %v4528_v19  ;;  %v4529_v32 = vunpack.i.l.bf16 %v4528_v19 }
 0x5b4   : > { %v3040_v15 = vsel %vm509_vm3, %v4529_v32, %v4530_v53 }
 0x5b9   : > { %v3026_v58 = vpop.permute.xlu2 %3025 }
 0x5ba   : > { %v3038_v1 = vsel %vm509_vm3, %v4520_v38, %v3026_v58  ;;  %v3039_v44 = vsel %vm509_vm3, %v3026_v58, %v4529_v32 }
 0x5c1   : > { %v4513_v14 = vpop.permute.xlu1 %4512  ;;  %v3065_v21 = vpop.permute.xlu2 %3064 }
 0x5c2   : > { %v4523_v12 = vpop.permute.xlu0 %4522  ;;  %v4515_v17 = vunpack.i.h.bf16 %v4513_v14  ;;  %v4514_v39 = vunpack.i.l.bf16 %v4513_v14 }
 0x5c3   : > { %v4525_v10 = vunpack.i.h.bf16 %v4523_v12  ;;  %v4524_v29 = vunpack.i.l.bf16 %v4523_v12 }
 0x5c4   : > { %v3068_v36 = vsel %vm550_vm2, %v4514_v39, %v4515_v17 }
 0x5c5   : > { %3104 = vmatpush.msra.mxu3 %v3068_v36  ;;  %v3071_v27 = vsel %vm550_vm2, %v4524_v29, %v4525_v10 }
 0x5c6   : > { %3164 = vmatpush.msra.mxu2 %v3071_v27 }
 0x5c7   : > { %3105 = vmatpush.msra.mxu3 %v3037_v63 }
 0x5c8   : > { %3165 = vmatpush.msra.mxu2 %v3040_v15 }
 0x5c9   : > { %v3063_v49 = vpop.permute.xlu1 %3062  ;;  %3106 = vmatpush.msra.mxu3 %v3005_v24 }
 0x5ca   : > { %v3032_v37 = vpop.permute.xlu0 %3031  ;;  %3166 = vmatpush.msra.mxu2 %v3008_v6  ;;  %v3072_v5 = vsel %vm550_vm2, %v4525_v10, %v3063_v49  ;;  %3956 = vmatmul.msk.f32.vlgmr.msra.gmra.mxu3 %vm1559_vm5, %v2998_v2  ;;  %v3073_v4 = vsel %vm550_vm2, %v3063_v49, %v3065_v21 }
 0x5cb   : > { %3959 = vmatmul.msk.f32.vlgmr.msra.gmra.mxu2 %vm1559_vm5, %v2998_v2  ;;  %3184 = vmatpush.msrb.mxu3 %v3072_v5  ;;  %v3041_v54 = vsel %vm509_vm3, %v4530_v53, %v3032_v37 }
 0x5cd   : > { %3185 = vmatpush.msrb.mxu3 %v3041_v54 }
 0x5cf   : > { %3186 = vmatpush.msrb.mxu3 %v3009_v30 }
 0x5d1   : > { %v3057_v3 = vpop.permute.xlu1 %3056 }
 0x5d2   : > { %v3067_v41 = vpop.permute.xlu0 %3066  ;;  %v3069_v28 = vsel %vm550_vm2, %v4515_v17, %v3057_v3  ;;  %v3070_v35 = vsel %vm550_vm2, %v3057_v3, %v4524_v29  ;;  %3960 = vmatmul.msk.f32.vlgmr.msrb.gmra.mxu3 %vm1559_vm5, %v2998_v2 }
 0x5d3   : > { %3244 = vmatpush.msrb.mxu2 %v3067_v41  ;;  %3124 = vmatpush.msra.mxu0 %v3069_v28  ;;  %v3074_v59 = vsel %vm550_vm2, %v3065_v21, %v3067_v41 }
 0x5d4   : > { %3144 = vmatpush.msra.mxu1 %v3070_v35 }
 0x5d5   : > { %3125 = vmatpush.msra.mxu0 %v3038_v1 }
 0x5d6   : > { %3145 = vmatpush.msra.mxu1 %v3039_v44 }
 0x5d7   : > { %3126 = vmatpush.msra.mxu0 %v6363_v61 }
 0x5d8   : > { %3146 = vmatpush.msra.mxu1 %v3007_v34  ;;  %3957 = vmatmul.msk.f32.vlgmr.msra.gmra.mxu0 %vm1559_vm5, %v2998_v2 }
 0x5d9   : > { %3958 = vmatmul.msk.f32.vlgmr.msra.gmra.mxu1 %vm1559_vm5, %v2998_v2  ;;  %3204 = vmatpush.msrb.mxu0 %v3073_v4  ;;  %v3036_v33 = vpop.permute.xlu1 %3035 }
 0x5da   : > { %3224 = vmatpush.msrb.mxu1 %v3074_v59  ;;  %v3034_v60 = vpop.permute.xlu0 %3033  ;;  %3245 = vmatpush.msrb.mxu2 %v3036_v33 }
 0x5db   : > { %v3042_v0 = vsel %vm509_vm3, %v3032_v37, %v3034_v60  ;;  %v3043_v25 = vsel %vm509_vm3, %v3034_v60, %v3036_v33  ;;  %v3314_v37 = vld [vmem:[%s6734_s12 + $0x10] sm:$0xff] }
 0x5dc   : > { %3205 = vmatpush.msrb.mxu0 %v3042_v0  ;;  %3225 = vmatpush.msrb.mxu1 %v3043_v25 }
 0x5dd   : > { %3246 = vmatpush.msrb.mxu2 %v6376_v16 }
 0x5de   : > { %3206 = vmatpush.msrb.mxu0 %v6369_v40  ;;  %3226 = vmatpush.msrb.mxu1 %v6382_v42 }
 0x5df   : > { %3963 = vmatmul.msk.f32.vlgmr.msrb.gmra.mxu2 %vm1559_vm5, %v2998_v2 }
 0x5e0   : > { %3961 = vmatmul.msk.f32.vlgmr.msrb.gmra.mxu0 %vm1559_vm5, %v2998_v2 }
 0x5e1   : > { %3962 = vmatmul.msk.f32.vlgmr.msrb.gmra.mxu1 %vm1559_vm5, %v2998_v2  ;;  %v3086_v47 = vpop.permute.xlu1 %3085  ;;  %vm3306_vm5 = vcmask 850944  }
 0x64d   : > { %v3108_v20 = vpop.f32.mrf.mxu3 }
 0x64e   : > { %v3109_v13 = vadd.f32 %v3108_v20, %v3086_v47  ;;  %v3168_v52 = vpop.f32.mrf.mxu2 }
 0x64f   : > { %v3169_v7 = vadd.f32 %v3168_v52, %v3086_v47 }
 0x650   : > { %v3251_v50 = vmax.f32 %v3109_v13, 0.0 }
 0x651   : > { %v3254_v31 = vmax.f32 %v3169_v7, 0.0 }
 0x652   : > { %3267 = vrot.lane.b32.xlu2 %v3251_v50, %s4741_s28 }
 0x655   : > { %v3128_v46 = vpop.f32.mrf.mxu0  ;;  %v3188_v56 = vpop.f32.mrf.mxu3 }
 0x656   : > { %v3129_v23 = vadd.f32 %v3128_v46, %v3086_v47  ;;  %v3148_v11 = vpop.f32.mrf.mxu1  ;;  %v3189_v62 = vadd.f32 %v3188_v56, %v3086_v47 }
 0x657   : > { %v3149_v9 = vadd.f32 %v3148_v11, %v3086_v47 }
 0x658   : > { %v3252_v48 = vmax.f32 %v3129_v23, 0.0  ;;  %v3255_v61 = vmax.f32 %v3189_v62, 0.0  ;;  %v6506_v23 = vld [vmem:[%s6733_s11] sm:$0xff] }
 0x659   : > { %v3253_v18 = vmax.f32 %v3149_v9, 0.0 }
 0x65a   : > { %3269 = vrot.lane.b32.xlu0 %v3252_v48, %s4741_s28  ;;  %3273 = vrot.lane.b32.xlu2 %v3254_v31, %s4741_s28 }
 0x65b   : > { %3271 = vrot.lane.b32.xlu1 %v3253_v18, %s4741_s28 }
 0x65d   : > { %v3208_v51 = vpop.f32.mrf.mxu0 }
 0x65e   : > { %v3209_v45 = vadd.f32 %v3208_v51, %v3086_v47  ;;  %v3228_v6 = vpop.f32.mrf.mxu1 }
 0x65f   : > { %v3229_v24 = vadd.f32 %v3228_v6, %v3086_v47 }
 0x660   : > { %v3256_v30 = vmax.f32 %v3209_v45, 0.0 }
 0x661   : > { %v3257_v57 = vmax.f32 %v3229_v24, 0.0 }
 0x662   : > { %v3248_v22 = vpop.f32.mrf.mxu2  ;;  %3275 = vrot.lane.b32.xlu0 %v3255_v61, %s4741_s28 }
 0x663   : > { %3277 = vrot.lane.b32.xlu1 %v3256_v30, %s4741_s28  ;;  %3279 = vrot.lane.b32.xlu2 %v3257_v57, %s4741_s28  ;;  %v3249_v40 = vadd.f32 %v3248_v22, %v3086_v47  ;;  %v6521_v57 = vld [vmem:[%s6733_s11 + $0x8] sm:$0xff] }
 0x665   : > { %v3258_v34 = vmax.f32 %v3249_v40, 0.0 }
 0x66a   : > { %3281 = vrot.lane.b32.xlu0 %v3258_v34, %s4741_s28 }
 0x6ac   : > { %v3268_v16 = vpop.permute.xlu2 %3267 }
 0x6ad   : > { %3299 = vst.msk [vmem:[#allocation2 + $0x40] sm:$0xff] %vm3298_vm15, %v3268_v16 }
 0x6b4   : > { %v3274_v42 = vpop.permute.xlu2 %3273  ;;  %v6428_v14 = vld [vmem:[#allocation2 + $0x40] sm:$0xff] }
 0x6bd   : > { %v3280_v17 = vpop.permute.xlu2 %3279 }
 0x6cc   : > { %v3270_v43 = vpop.permute.xlu0 %3269 }
 0x6cd   : > { %v3272_v55 = vpop.permute.xlu1 %3271  ;;  %v6426_v19 = vsel %vm3001_vm14, %v3268_v16, %v3270_v43  ;;  %v3313_v16 = vld [vmem:[%s6734_s12 + $0x8] sm:$0xff] }
 0x6ce   : > { %v6431_v38 = vsel %vm3001_vm14, %v3272_v55, %v3274_v42  ;;  %v6434_v26 = vsel %vm3001_vm14, %v3270_v43, %v3272_v55  ;;  %v4541_v12 = vpack.i.bf16 %v6426_v19, %v6428_v14 }
 0x6d0   : > { %4542 = vrot.lane.b32.xlu2 %v4541_v12, %s4733_s21  ;;  %4537 = vrot.lane.b32.xlu0 %v4541_v12, %s4734_s22 }
 0x6d1   : > { %4532 = vrot.lane.b32.xlu1 %v4541_v12, %s4736_s24 }
 0x6d4   : > { %v3276_v8 = vpop.permute.xlu0 %3275 }
 0x6d5   : > { %v3278_v39 = vpop.permute.xlu1 %3277  ;;  %v6442_v53 = vsel %vm3001_vm14, %v3274_v42, %v3276_v8 }
 0x6d6   : > { %v6445_v32 = vsel %vm3001_vm14, %v3278_v39, %v3280_v17  ;;  %v6448_v10 = vsel %vm3001_vm14, %v3276_v8, %v3278_v39  ;;  %v4561_v29 = vpack.i.bf16 %v6442_v53, %v6431_v38  ;;  %v4571_v63 = vpack.i.bf16 %v6442_v53, %v6434_v26  ;;  %v6540_v8 = vld [vmem:[%s6733_s11 + $0x10] sm:$0xff] }
 0x6d7   : > { %v4596_v49 = vpack.i.bf16 %v6448_v10, %v6442_v53 }
 0x6d8   : > { %4562 = vrot.lane.b32.xlu0 %v4561_v29, %s4733_s21  ;;  %4552 = vrot.lane.b32.xlu2 %v4561_v29, %s4736_s24 }
 0x6d9   : > { %4547 = vrot.lane.b32.xlu1 %v4541_v12, %s4735_s23 }
 0x6dc   : > { %v3282_v36 = vpop.permute.xlu0 %3281 }
 0x6dd   : > { %v3289_v27 = vsel %vm3001_vm14, %v3280_v17, %v3282_v36 }
 0x6de   : > { %3307 = vst.msk [vmem:[#allocation2 + $0x78] sm:$0xff] %vm3306_vm5, %v3289_v27 }
 0x6e0   : > { %4572 = vrot.lane.b32.xlu0 %v4571_v63, %s4736_s24  ;;  %4567 = vrot.lane.b32.xlu2 %v4561_v29, %s4735_s23 }
 0x6e1   : > { %4557 = vrot.lane.b32.xlu1 %v4561_v29, %s4734_s22 }
 0x6e5   : > { %v6467_v15 = vld [vmem:[#allocation2 + $0x78] sm:$0xff] }
 0x6e6   : > { %v4586_v2 = vpack.i.bf16 %v6467_v15, %v6448_v10 }
 0x6e8   : > { %3330 = vrot.lane.b32.xlu0 %v6434_v26, %s4735_s23  ;;  %3348 = vrot.lane.b32.xlu2 %v6434_v26, %s4733_s21 }
 0x6e9   : > { %4577 = vrot.lane.b32.xlu1 %v4571_v63, %s4734_s22 }
 0x6f0   : > { %4587 = vrot.lane.b32.xlu2 %v4586_v2, %s4734_s22  ;;  %3652 = vrot.lane.b32.xlu0 %v6445_v32, %s4736_s24 }
 0x6f1   : > { %4582 = vrot.lane.b32.xlu1 %v4586_v2, %s4736_s24 }
 0x6f8   : > { %4597 = vrot.lane.b32.xlu2 %v4596_v49, %s4735_s23  ;;  %4592 = vrot.lane.b32.xlu0 %v4596_v49, %s4733_s21 }
 0x6f9   : > { %3624 = vrot.lane.b32.xlu1 %v6467_v15, %s4733_s21 }
 0x700   : > { %3637 = vrot.lane.b32.xlu2 %v6445_v32, %s4734_s22  ;;  %3622 = vrot.lane.b32.xlu0 %v6445_v32, %s4733_s21 }
 0x701   : > { %3609 = vrot.lane.b32.xlu1 %v6467_v15, %s4735_s23 }
 0x708   : > { %3405 = vperm.xlu0 %4602, %v3313_v16  }
 0x709   : > { %3607 = vrot.lane.b32.xlu1 %v6445_v32, %s4735_s23  ;;  %s6647_s23 = scalar_lea.vmem %s6735_s13, %s3998_s17 }
 0x711   : > { %3410 = vperm.xlu1 %4470, %v3314_v37  }
 0x72a   : > { %v6492_v5 = vpop.permute.xlu2 %4542 }
 0x72b   : > { %v4545_v33 = vunpack.i.h.bf16 %v6492_v5  ;;  %v4544_v60 = vunpack.i.l.bf16 %v6492_v5 }
 0x72d   : > { %v3354_v13 = vsel %vm550_vm2, %v4544_v60, %v4545_v33 }
 0x732   : > { %v4553_v54 = vpop.permute.xlu2 %4552 }
 0x733   : > { %v4555_v58 = vunpack.i.h.bf16 %v4553_v54  ;;  %v4554_v3 = vunpack.i.l.bf16 %v4553_v54 }
 0x735   : > { %v3393_v41 = vsel %vm632_vm1, %v4554_v3, %v4555_v58 }
 0x736   : > { %3529 = vmatpush.msra.mxu2 %v3393_v41 }
 0x73a   : > { %v6495_v28 = vpop.permute.xlu2 %4567 }
 0x73b   : > { %v4570_v24 = vunpack.i.h.bf16 %v6495_v28  ;;  %v4569_v61 = vunpack.i.l.bf16 %v6495_v28  ;;  %v6565_v28 = vld [vmem:[%s6733_s11 + $0x18] sm:$0x3] }
 0x73d   : > { %v3339_v34 = vsel %vm509_vm3, %v4569_v61, %v4570_v24 }
 0x742   : > { %v4538_v35 = vpop.permute.xlu0 %4537  ;;  %v3349_v25 = vpop.permute.xlu2 %3348 }
 0x743   : > { %v4533_v1 = vpop.permute.xlu1 %4532  ;;  %v4540_v44 = vunpack.i.h.bf16 %v4538_v35  ;;  %v4539_v21 = vunpack.i.l.bf16 %v4538_v35  ;;  %v3355_v17 = vsel %vm550_vm2, %v4545_v33, %v3349_v25 }
 0x744   : > { %v4535_v4 = vunpack.i.h.bf16 %v4533_v1  ;;  %v4534_v59 = vunpack.i.l.bf16 %v4533_v1 }
 0x745   : > { %v3372_v47 = vsel %vm591_vm0, %v4539_v21, %v4540_v44  ;;  %v3312_v21 = vld [vmem:[%s6734_s12] sm:$0xff] }
 0x746   : > { %v3390_v0 = vsel %vm632_vm1, %v4534_v59, %v4535_v4  ;;  %3400 = vperm.xlu2 %4601, %v3312_v21  }
 0x747   : > { %3442 = vmatpush.msra.mxu3 %v3390_v0 }
 0x749   : > { %3443 = vmatpush.msra.mxu3 %v3372_v47 }
 0x74a   : > { %v4563_v20 = vpop.permute.xlu0 %4562  ;;  %v6509_v11 = vpop.permute.xlu2 %4587 }
 0x74b   : > { %v4548_v50 = vpop.permute.xlu1 %4547  ;;  %3444 = vmatpush.msra.mxu3 %v3354_v13  ;;  %v4565_v18 = vunpack.i.h.bf16 %v4563_v20  ;;  %v4564_v56 = vunpack.i.l.bf16 %v4563_v20  ;;  %v4589_v5 = vunpack.i.l.bf16 %v6509_v11 }
 0x74c   : > { %v4550_v52 = vunpack.i.h.bf16 %v4548_v50  ;;  %v4549_v7 = vunpack.i.l.bf16 %v4548_v50 }
 0x74d   : > { %v3357_v22 = vsel %vm550_vm2, %v4564_v56, %v4565_v18  ;;  %v3356_v39 = vsel %vm550_vm2, %v3349_v25, %v4564_v56 }
 0x74e   : > { %v3336_v46 = vsel %vm509_vm3, %v4549_v7, %v4550_v52 }
 0x74f   : > { %3445 = vmatpush.msra.mxu3 %v3336_v46 }
 0x751   : > { %3446 = vmatpush.msra.mxu3 %v6428_v14 }
 0x752   : > { %3964 = vmatmul.msk.f32.vlgmr.msra.gmra.mxu3 %vm3418_vm6, %v6506_v23  ;;  %v4573_v9 = vpop.permute.xlu0 %4572  ;;  %v6530_v43 = vpop.permute.xlu2 %4597 }
 0x753   : > { %v4574_v31 = vunpack.i.l.bf16 %v4573_v9  ;;  %v4558_v48 = vpop.permute.xlu1 %4557  ;;  %v4575_v63 = vunpack.i.h.bf16 %v4573_v9  ;;  %v4600_v60 = vunpack.i.h.bf16 %v6530_v43  ;;  %v4599_v0 = vunpack.i.l.bf16 %v6530_v43 }
 0x754   : > { %v4560_v62 = vunpack.i.h.bf16 %v4558_v48  ;;  %v4559_v51 = vunpack.i.l.bf16 %v4558_v48 }
 0x755   : > { %v3391_v45 = vsel %vm632_vm1, %v4535_v4, %v4574_v31  ;;  %v3392_v6 = vsel %vm632_vm1, %v4574_v31, %v4554_v3  ;;  %v3611_v47 = vsel %vm509_vm3, %v4599_v0, %v4600_v60 }
 0x756   : > { %3471 = vmatpush.msra.mxu0 %v3391_v45  ;;  %3500 = vmatpush.msra.mxu1 %v3392_v6  ;;  %v3375_v30 = vsel %vm591_vm0, %v4559_v51, %v4560_v62 }
 0x757   : > { %3530 = vmatpush.msra.mxu2 %v3375_v30 }
 0x759   : > { %3531 = vmatpush.msra.mxu2 %v3357_v22 }
 0x75a   : > { %3965 = vmatmul.msk.f32.gmra.mxu3 %vm3418_vm6, %v6521_v57  ;;  %v3331_v40 = vpop.permute.xlu0 %3330  ;;  %v3638_v54 = vpop.permute.xlu2 %3637 }
 0x75b   : > { %v4578_v42 = vpop.permute.xlu1 %4577  ;;  %3532 = vmatpush.msra.mxu2 %v3339_v34  ;;  %v3337_v29 = vsel %vm509_vm3, %v4550_v52, %v3331_v40  ;;  %v3338_v36 = vsel %vm509_vm3, %v3331_v40, %v4569_v61  ;;  %v3642_v35 = vsel %vm591_vm0, %v4589_v5, %v3638_v54 }
 0x75c   : > { %v4579_v55 = vunpack.i.l.bf16 %v4578_v42  ;;  %v4580_v2 = vunpack.i.h.bf16 %v4578_v42 }
 0x75d   : > { %3533 = vmatpush.msra.mxu2 %v6431_v38 }
 0x75e   : > { %3976 = vmatmul.msk.f32.vlgmr.msra.gmra.mxu2 %vm3418_vm6, %v6506_v23  ;;  %v3373_v14 = vsel %vm591_vm0, %v4540_v44, %v4579_v55  ;;  %v3374_v12 = vsel %vm591_vm0, %v4579_v55, %v4559_v51 }
 0x75f   : > { %3472 = vmatpush.msra.mxu0 %v3373_v14  ;;  %3501 = vmatpush.msra.mxu1 %v3374_v12 }
 0x761   : > { %3473 = vmatpush.msra.mxu0 %v3355_v17  ;;  %3502 = vmatpush.msra.mxu1 %v3356_v39 }
 0x762   : > { %3966 = vmatmul.msk.f32.gmra.mxu3 %vm3418_vm6, %v6540_v8  ;;  %v3653_v38 = vpop.permute.xlu0 %3652 }
 0x763   : > { %v4583_v27 = vpop.permute.xlu1 %4582  ;;  %3474 = vmatpush.msra.mxu0 %v3337_v29  ;;  %3503 = vmatpush.msra.mxu1 %v3338_v36 }
 0x764   : > { %v4585_v49 = vunpack.i.h.bf16 %v4583_v27  ;;  %v4584_v37 = vunpack.i.l.bf16 %v4583_v27 }
 0x765   : > { %3475 = vmatpush.msra.mxu0 %v6426_v19  ;;  %3504 = vmatpush.msra.mxu1 %v6434_v26  ;;  %v4590_v19 = vunpack.i.h.bf16 %v6509_v11  ;;  %v3641_v26 = vsel %vm591_vm0, %v4580_v2, %v4589_v5 }
 0x766   : > { %v3657_v58 = vsel %vm632_vm1, %v4584_v37, %v3653_v38  ;;  %v3658_v3 = vsel %vm632_vm1, %v3653_v38, %v4585_v49  ;;  %3968 = vmatmul.msk.f32.vlgmr.msra.gmra.mxu0 %vm3418_vm6, %v6506_v23  ;;  %3972 = vmatmul.msk.f32.vlgmr.msra.gmra.mxu1 %vm3418_vm6, %v6506_v23  ;;  %v3656_v41 = vsel %vm632_vm1, %v4575_v63, %v4584_v37 }
 0x767   : > { %3977 = vmatmul.msk.f32.gmra.mxu2 %vm3418_vm6, %v6521_v57  ;;  %3674 = vmatpush.msrb.mxu3 %v3656_v41  ;;  %v3643_v1 = vsel %vm591_vm0, %v3638_v54, %v4590_v19  ;;  %vm3826_vm0 = vcmask 844800  }
 0x768   : > { %3761 = vmatpush.msrb.mxu2 %v4585_v49  ;;  %3703 = vmatpush.msrb.mxu0 %v3657_v58 }
 0x769   : > { %3732 = vmatpush.msrb.mxu1 %v3658_v3  ;;  %3675 = vmatpush.msrb.mxu3 %v3641_v26 }
 0x76a   : > { %3762 = vmatpush.msrb.mxu2 %v4590_v19  ;;  %3704 = vmatpush.msrb.mxu0 %v3642_v35  ;;  %v4593_v44 = vpop.permute.xlu0 %4592 }
 0x76b   : > { %3733 = vmatpush.msrb.mxu1 %v3643_v1  ;;  %v3625_v4 = vpop.permute.xlu1 %3624  ;;  %v4595_v59 = vunpack.i.h.bf16 %v4593_v44  ;;  %v4594_v33 = vunpack.i.l.bf16 %v4593_v44  ;;  %3967 = vmatmul.msk.f32.gmra.mxu3 %vm3418_vm6, %v6565_v28 }
 0x76c   : > { %3763 = vmatpush.msrb.mxu2 %v3625_v4 }
 0x76d   : > { %v3626_v25 = vsel %vm550_vm2, %v4594_v33, %v4595_v59 }
 0x76e   : > { %3969 = vmatmul.msk.f32.gmra.mxu0 %vm3418_vm6, %v6521_v57  ;;  %3973 = vmatmul.msk.f32.gmra.mxu1 %vm3418_vm6, %v6521_v57 }
 0x76f   : > { %3978 = vmatmul.msk.f32.gmra.mxu2 %vm3418_vm6, %v6540_v8  ;;  %3676 = vmatpush.msrb.mxu3 %v3626_v25 }
 0x771   : > { %3677 = vmatpush.msrb.mxu3 %v3611_v47 }
 0x772   : > { %v3623_v20 = vpop.permute.xlu0 %3622 }
 0x773   : > { %v3610_v13 = vpop.permute.xlu1 %3609  ;;  %3678 = vmatpush.msrb.mxu3 %v6442_v53  ;;  %v3627_v50 = vsel %vm550_vm2, %v4595_v59, %v3623_v20  ;;  %v3628_v52 = vsel %vm550_vm2, %v3623_v20, %v3625_v4 }
 0x774   : > { %3980 = vmatmul.msk.f32.vlgmr.msrb.gmra.mxu3 %vm3418_vm6, %v6506_v23  ;;  %3764 = vmatpush.msrb.mxu2 %v3610_v13 }
 0x775   : > { %3705 = vmatpush.msrb.mxu0 %v3627_v50  ;;  %3734 = vmatpush.msrb.mxu1 %v3628_v52 }
 0x776   : > { %3970 = vmatmul.msk.f32.gmra.mxu0 %vm3418_vm6, %v6540_v8  ;;  %3974 = vmatmul.msk.f32.gmra.mxu1 %vm3418_vm6, %v6540_v8 }
 0x777   : > { %3979 = vmatmul.msk.f32.gmra.mxu2 %vm3418_vm6, %v6565_v28 }
 0x778   : > { %3765 = vmatpush.msrb.mxu2 %v6467_v15  ;;  %v3315_v15 = vld [vmem:[%s6734_s12 + $0x18] sm:$0x3] }
 0x779   : > { %3415 = vperm.xlu2 %4601, %v3315_v15  }
 0x77a   : > { %v6640_v9 = vpop.permute.xlu0 %3405 }
 0x77b   : > { %v3608_v53 = vpop.permute.xlu1 %3607 }
 0x77c   : > { %3981 = vmatmul.msk.f32.gmra.mxu3 %vm3418_vm6, %v6521_v57  ;;  %v3612_v7 = vsel %vm509_vm3, %v4600_v60, %v3608_v53  ;;  %v3613_v46 = vsel %vm509_vm3, %v3608_v53, %v3610_v13 }
 0x77d   : > { %3706 = vmatpush.msrb.mxu0 %v3612_v7  ;;  %3735 = vmatpush.msrb.mxu1 %v3613_v46 }
 0x77e   : > { %3971 = vmatmul.msk.f32.gmra.mxu0 %vm3418_vm6, %v6565_v28  ;;  %3975 = vmatmul.msk.f32.gmra.mxu1 %vm3418_vm6, %v6565_v28 }
 0x77f   : > { %3992 = vmatmul.msk.f32.vlgmr.msrb.gmra.mxu2 %vm3418_vm6, %v6506_v23  ;;  %3707 = vmatpush.msrb.mxu0 %v6448_v10 }
 0x780   : > { %3736 = vmatpush.msrb.mxu1 %v6445_v32 }
 0x784   : > { %3982 = vmatmul.msk.f32.gmra.mxu3 %vm3418_vm6, %v6540_v8 }
 0x786   : > { %3984 = vmatmul.msk.f32.vlgmr.msrb.gmra.mxu0 %vm3418_vm6, %v6506_v23  ;;  %3988 = vmatmul.msk.f32.vlgmr.msrb.gmra.mxu1 %vm3418_vm6, %v6506_v23 }
 0x787   : > { %3993 = vmatmul.msk.f32.gmra.mxu2 %vm3418_vm6, %v6521_v57 }
 0x78c   : > { %3983 = vmatmul.msk.f32.gmra.mxu3 %vm3418_vm6, %v6565_v28 }
 0x78e   : > { %3985 = vmatmul.msk.f32.gmra.mxu0 %vm3418_vm6, %v6521_v57  ;;  %3989 = vmatmul.msk.f32.gmra.mxu1 %vm3418_vm6, %v6521_v57  ;;  %v6654_v57 = vpop.permute.xlu1 %3410 }
 0x78f   : > { %3994 = vmatmul.msk.f32.gmra.mxu2 %vm3418_vm6, %v6540_v8 }
 0x796   : > { %3986 = vmatmul.msk.f32.gmra.mxu0 %vm3418_vm6, %v6540_v8  ;;  %3990 = vmatmul.msk.f32.gmra.mxu1 %vm3418_vm6, %v6540_v8 }
 0x797   : > { %3995 = vmatmul.msk.f32.gmra.mxu2 %vm3418_vm6, %v6565_v28 }
 0x79e   : > { %3987 = vmatmul.msk.f32.gmra.mxu0 %vm3418_vm6, %v6565_v28  ;;  %3991 = vmatmul.msk.f32.gmra.mxu1 %vm3418_vm6, %v6565_v28 }
 0x7a0   : > { %v6637_v32 = vpop.permute.xlu2 %3400 }
 0x7d3   : > { %v6661_v29 = vpop.permute.xlu2 %3415 }
 0x7d5   : > { %v3448_v10 = vpop.f32.mrf.mxu3 }
 0x7d6   : > { %v3449_v23 = vadd.f32 %v3448_v10, %v6637_v32 }
 0x7d8   : > { %v3547_v11 = vmax.f32 %v3449_v23, 0.0 }
 0x7da   : > { %4603 = vtanh.f32 %v3547_v11 }
 0x7dd   : > { %v3451_v31 = vpop.f32.mrf.mxu3 }
 0x7de   : > { %v3452_v48 = vadd.f32 %v3451_v31, %v6640_v9 }
 0x7e0   : > { %v4604_v18 = vpop.eup %4603  ;;  %v3551_v56 = vmax.f32 %v3452_v48, 0.0 }
 0x7e1   : > { %v3535_v62 = vpop.f32.mrf.mxu2  ;;  %3579 = vst [vmem:[%s6647_s23] sm:$0xff] %v4604_v18 }
 0x7e2   : > { %v3536_v51 = vadd.f32 %v3535_v62, %v6637_v32  ;;  %4605 = vtanh.f32 %v3551_v56 }
 0x7e3   : > { %v3477_v45 = vpop.f32.mrf.mxu0  ;;  %v3506_v6 = vpop.f32.mrf.mxu1 }
 0x7e4   : > { %v3478_v24 = vadd.f32 %v3477_v45, %v6637_v32  ;;  %v3507_v61 = vadd.f32 %v3506_v6, %v6637_v32  ;;  %v3550_v30 = vmax.f32 %v3536_v51, 0.0 }
 0x7e5   : > { %v3454_v22 = vpop.f32.mrf.mxu3 }
 0x7e6   : > { %v3455_v40 = vadd.f32 %v3454_v22, %v6654_v57  ;;  %v3548_v34 = vmax.f32 %v3478_v24, 0.0  ;;  %v3549_v16 = vmax.f32 %v3507_v61, 0.0  ;;  %4607 = vtanh.f32 %v3550_v30 }
 0x7e8   : > { %v4606_v42 = vpop.eup %4605  ;;  %v3555_v43 = vmax.f32 %v3455_v40, 0.0  ;;  %4609 = vtanh.f32 %v3548_v34 }
 0x7e9   : > { %4611 = vtanh.f32 %v3549_v16  ;;  %3583 = vst [vmem:[%s6647_s23 + $0x40] sm:$0xff] %v4606_v42 }
 0x7ea   : > { %4613 = vtanh.f32 %v3555_v43  ;;  %v3538_v55 = vpop.f32.mrf.mxu2 }
 0x7eb   : > { %v3480_v14 = vpop.f32.mrf.mxu0  ;;  %v3509_v12 = vpop.f32.mrf.mxu1  ;;  %v3539_v8 = vadd.f32 %v3538_v55, %v6640_v9 }
 0x7ec   : > { %v4608_v17 = vpop.eup %4607  ;;  %v3481_v39 = vadd.f32 %v3480_v14, %v6640_v9  ;;  %v3510_v38 = vadd.f32 %v3509_v12, %v6640_v9 }
 0x7ed   : > { %3582 = vst [vmem:[%s6647_s23 + $0x18] sm:$0xff] %v4608_v17  ;;  %v3554_v36 = vmax.f32 %v3539_v8, 0.0 }
 0x7ee   : > { %v4610_v27 = vpop.eup %4609  ;;  %v3457_v63 = vpop.f32.mrf.mxu3  ;;  %v3552_v2 = vmax.f32 %v3481_v39, 0.0  ;;  %v3553_v49 = vmax.f32 %v3510_v38, 0.0 }
 0x7ef   : > { %v4612_v37 = vpop.eup %4611  ;;  %3580 = vst [vmem:[%s6647_s23 + $0x8] sm:$0xff] %v4610_v27  ;;  %4615 = vtanh.f32 %v3554_v36  ;;  %v3458_v5 = vadd.f32 %v3457_v63, %v6661_v29 }
 0x7f0   : > { %v4614_v54 = vpop.eup %4613  ;;  %3581 = vst [vmem:[%s6647_s23 + $0x10] sm:$0xff] %v4612_v37  ;;  %4617 = vtanh.f32 %v3552_v2 }
 0x7f1   : > { %3587 = vst [vmem:[%s6647_s23 + $0x80] sm:$0xff] %v4614_v54  ;;  %4619 = vtanh.f32 %v3553_v49  ;;  %v3559_v58 = vmax.f32 %v3458_v5, 0.0 }
 0x7f2   : > { %v3541_v3 = vpop.f32.mrf.mxu2 }
 0x7f3   : > { %v3542_v41 = vadd.f32 %v3541_v3, %v6654_v57  ;;  %v3483_v19 = vpop.f32.mrf.mxu0  ;;  %v3512_v26 = vpop.f32.mrf.mxu1  ;;  %4621 = vtanh.f32 %v3559_v58 }
 0x7f4   : > { %v3484_v28 = vadd.f32 %v3483_v19, %v6654_v57  ;;  %v3513_v35 = vadd.f32 %v3512_v26, %v6654_v57 }
 0x7f5   : > { %v4616_v1 = vpop.eup %4615  ;;  %v3558_v44 = vmax.f32 %v3542_v41, 0.0 }
 0x7f6   : > { %v4618_v21 = vpop.eup %4617  ;;  %3586 = vst [vmem:[%s6647_s23 + $0x58] sm:$0xff] %v4616_v1  ;;  %v3556_v4 = vmax.f32 %v3484_v28, 0.0  ;;  %v3557_v59 = vmax.f32 %v3513_v35, 0.0 }
 0x7f7   : > { %v4620_v33 = vpop.eup %4619  ;;  %4623 = vtanh.f32 %v3558_v44  ;;  %3584 = vst [vmem:[%s6647_s23 + $0x48] sm:$0xff] %v4618_v21  ;;  %v3680_v60 = vpop.f32.mrf.mxu3 }
 0x7f8   : > { %3585 = vst [vmem:[%s6647_s23 + $0x50] sm:$0xff] %v4620_v33  ;;  %4625 = vtanh.f32 %v3556_v4  ;;  %v3681_v0 = vadd.f32 %v3680_v60, %v6637_v32 }
 0x7f9   : > { %v4622_v25 = vpop.eup %4621  ;;  %4627 = vtanh.f32 %v3557_v59 }
 0x7fa   : > { %v3779_v47 = vmax.f32 %v3681_v0, 0.0  ;;  %v3544_v20 = vpop.f32.mrf.mxu2  ;;  %3591 = vst [vmem:[%s6647_s23 + $0xc0] sm:$0x3] %v4622_v25 }
 0x7fb   : > { %v3486_v13 = vpop.f32.mrf.mxu0  ;;  %v3515_v50 = vpop.f32.mrf.mxu1  ;;  %v3545_v52 = vadd.f32 %v3544_v20, %v6661_v29 }
 0x7fc   : > { %4629 = vtanh.f32 %v3779_v47  ;;  %v3487_v53 = vadd.f32 %v3486_v13, %v6661_v29  ;;  %v3516_v7 = vadd.f32 %v3515_v50, %v6661_v29 }
 0x7fd   : > { %v4624_v46 = vpop.eup %4623  ;;  %v3562_v15 = vmax.f32 %v3545_v52, 0.0 }
 0x7fe   : > { %v4626_v10 = vpop.eup %4625  ;;  %3590 = vst [vmem:[%s6647_s23 + $0x98] sm:$0xff] %v4624_v46  ;;  %v3560_v23 = vmax.f32 %v3487_v53, 0.0  ;;  %v3561_v11 = vmax.f32 %v3516_v7, 0.0 }
 0x7ff   : > { %v4628_v31 = vpop.eup %4627  ;;  %3588 = vst [vmem:[%s6647_s23 + $0x88] sm:$0xff] %v4626_v10  ;;  %v3683_v48 = vpop.f32.mrf.mxu3  ;;  %4631 = vtanh.f32 %v3562_v15 }
 0x800   : > { %3589 = vst [vmem:[%s6647_s23 + $0x90] sm:$0xff] %v4628_v31  ;;  %v3684_v18 = vadd.f32 %v3683_v48, %v6640_v9  ;;  %4633 = vtanh.f32 %v3560_v23 }
 0x801   : > { %4635 = vtanh.f32 %v3561_v11 }
 0x802   : > { %v4630_v56 = vpop.eup %4629  ;;  %v3783_v62 = vmax.f32 %v3684_v18, 0.0  ;;  %v3767_v51 = vpop.f32.mrf.mxu2 }
 0x803   : > { %3811 = vst [vmem:[%s6647_s23 + $0x20] sm:$0xff] %v4630_v56  ;;  %v3768_v45 = vadd.f32 %v3767_v51, %v6637_v32  ;;  %v3709_v6 = vpop.f32.mrf.mxu0  ;;  %v3738_v24 = vpop.f32.mrf.mxu1 }
 0x804   : > { %4637 = vtanh.f32 %v3783_v62  ;;  %v3710_v61 = vadd.f32 %v3709_v6, %v6637_v32  ;;  %v3739_v30 = vadd.f32 %v3738_v24, %v6637_v32 }
 0x805   : > { %v4632_v22 = vpop.eup %4631  ;;  %v3782_v40 = vmax.f32 %v3768_v45, 0.0 }
 0x806   : > { %v4634_v34 = vpop.eup %4633  ;;  %3594 = vst [vmem:[%s6647_s23 + $0xd8] sm:$0x3] %v4632_v22  ;;  %v3780_v16 = vmax.f32 %v3710_v61, 0.0  ;;  %v3781_v42 = vmax.f32 %v3739_v30, 0.0 }
 0x807   : > { %v4636_v43 = vpop.eup %4635  ;;  %4639 = vtanh.f32 %v3782_v40  ;;  %3592 = vst [vmem:[%s6647_s23 + $0xc8] sm:$0x3] %v4634_v34  ;;  %v3686_v55 = vpop.f32.mrf.mxu3 }
 0x808   : > { %3593 = vst [vmem:[%s6647_s23 + $0xd0] sm:$0x3] %v4636_v43  ;;  %4641 = vtanh.f32 %v3780_v16  ;;  %v3687_v14 = vadd.f32 %v3686_v55, %v6654_v57 }
 0x809   : > { %4643 = vtanh.f32 %v3781_v42 }
 0x80a   : > { %v4638_v12 = vpop.eup %4637  ;;  %v3787_v8 = vmax.f32 %v3687_v14, 0.0  ;;  %v3770_v32 = vpop.f32.mrf.mxu2 }
 0x80b   : > { %3815 = vst [vmem:[%s6647_s23 + $0x60] sm:$0xff] %v4638_v12  ;;  %v3771_v17 = vadd.f32 %v3770_v32, %v6640_v9  ;;  %v3712_v39 = vpop.f32.mrf.mxu0  ;;  %v3741_v38 = vpop.f32.mrf.mxu1 }
 0x80c   : > { %4645 = vtanh.f32 %v3787_v8  ;;  %v3713_v36 = vadd.f32 %v3712_v39, %v6640_v9  ;;  %v3742_v27 = vadd.f32 %v3741_v38, %v6640_v9 }
 0x80d   : > { %v4640_v63 = vpop.eup %4639  ;;  %v3786_v2 = vmax.f32 %v3771_v17, 0.0 }
 0x80e   : > { %v4642_v49 = vpop.eup %4641  ;;  %3814 = vst.msk [vmem:[%s6647_s23 + $0x38] sm:$0xff] %vm3306_vm5, %v4640_v63  ;;  %v3784_v37 = vmax.f32 %v3713_v36, 0.0  ;;  %v3785_v5 = vmax.f32 %v3742_v27, 0.0 }
 0x80f   : > { %v4644_v54 = vpop.eup %4643  ;;  %3812 = vst [vmem:[%s6647_s23 + $0x28] sm:$0xff] %v4642_v49  ;;  %4647 = vtanh.f32 %v3786_v2  ;;  %v3689_v58 = vpop.f32.mrf.mxu3 }
 0x810   : > { %3813 = vst [vmem:[%s6647_s23 + $0x30] sm:$0xff] %v4644_v54  ;;  %4649 = vtanh.f32 %v3784_v37  ;;  %v3690_v3 = vadd.f32 %v3689_v58, %v6661_v29 }
 0x811   : > { %4651 = vtanh.f32 %v3785_v5 }
 0x812   : > { %v4646_v41 = vpop.eup %4645  ;;  %v3773_v9 = vpop.f32.mrf.mxu2  ;;  %v3791_v19 = vmax.f32 %v3690_v3, 0.0 }
 0x813   : > { %3819 = vst [vmem:[%s6647_s23 + $0xa0] sm:$0xff] %v4646_v41  ;;  %v3774_v26 = vadd.f32 %v3773_v9, %v6654_v57  ;;  %v3715_v28 = vpop.f32.mrf.mxu0  ;;  %v3744_v35 = vpop.f32.mrf.mxu1 }
 0x814   : > { %v3716_v1 = vadd.f32 %v3715_v28, %v6654_v57  ;;  %v3745_v44 = vadd.f32 %v3744_v35, %v6654_v57  ;;  %4653 = vtanh.f32 %v3791_v19 }
 0x815   : > { %v4648_v21 = vpop.eup %4647  ;;  %v3790_v4 = vmax.f32 %v3774_v26, 0.0 }
 0x816   : > { %v4650_v59 = vpop.eup %4649  ;;  %3818 = vst.msk [vmem:[%s6647_s23 + $0x78] sm:$0xff] %vm3306_vm5, %v4648_v21  ;;  %v3788_v33 = vmax.f32 %v3716_v1, 0.0  ;;  %v3789_v60 = vmax.f32 %v3745_v44, 0.0 }
 0x817   : > { %v4652_v0 = vpop.eup %4651  ;;  %3816 = vst [vmem:[%s6647_s23 + $0x68] sm:$0xff] %v4650_v59  ;;  %4655 = vtanh.f32 %v3790_v4 }
 0x818   : > { %3817 = vst [vmem:[%s6647_s23 + $0x70] sm:$0xff] %v4652_v0  ;;  %4657 = vtanh.f32 %v3788_v33 }
 0x819   : > { %4659 = vtanh.f32 %v3789_v60 }
 0x81a   : > { %v4654_v25 = vpop.eup %4653  ;;  %v3776_v47 = vpop.f32.mrf.mxu2 }
 0x81b   : > { %3823 = vst [vmem:[%s6647_s23 + $0xe0] sm:$0x3] %v4654_v25  ;;  %v3777_v57 = vadd.f32 %v3776_v47, %v6661_v29  ;;  %v3718_v20 = vpop.f32.mrf.mxu0  ;;  %v3747_v13 = vpop.f32.mrf.mxu1 }
 0x81c   : > { %v3719_v50 = vadd.f32 %v3718_v20, %v6661_v29  ;;  %v3748_v52 = vadd.f32 %v3747_v13, %v6661_v29 }
 0x81d   : > { %v4656_v53 = vpop.eup %4655  ;;  %v3794_v7 = vmax.f32 %v3777_v57, 0.0 }
 0x81e   : > { %v4658_v46 = vpop.eup %4657  ;;  %3822 = vst.msk [vmem:[%s6647_s23 + $0xb8] sm:$0xff] %vm3306_vm5, %v4656_v53  ;;  %v3792_v15 = vmax.f32 %v3719_v50, 0.0  ;;  %v3793_v10 = vmax.f32 %v3748_v52, 0.0 }
 0x81f   : > { %v4660_v23 = vpop.eup %4659  ;;  %3820 = vst [vmem:[%s6647_s23 + $0xa8] sm:$0xff] %v4658_v46  ;;  %4661 = vtanh.f32 %v3794_v7 }
 0x820   : > { %3821 = vst [vmem:[%s6647_s23 + $0xb0] sm:$0xff] %v4660_v23  ;;  %4663 = vtanh.f32 %v3792_v15 }
 0x821   : > { %4665 = vtanh.f32 %v3793_v10 }
 0x825   : > { %v4662_v11 = vpop.eup %4661 }
 0x826   : > { %v4664_v31 = vpop.eup %4663  ;;  %3827 = vst.msk [vmem:[%s6647_s23 + $0xf8] sm:$0x3] %vm3826_vm0, %v4662_v11 }
 0x827   : > { %v4666_v29 = vpop.eup %4665  ;;  %3824 = vst [vmem:[%s6647_s23 + $0xe8] sm:$0x3] %v4664_v31 }
 0x828   : > { %3825 = vst [vmem:[%s6647_s23 + $0xf0] sm:$0x3] %v4666_v29 }
 0x829 PF: > { %s24_s25 = sadd.s32 1, %s4728_s25  }
 0x82a   : > { %p21_p7 = scmp.ge.s32.totalorder %s24_s25, 4  }
 0x82c   :  { %23 = sbr.rel (!%p21_p7) target bundleno = 1 (0x1), region = 111 }
 0x831   :  { %3849 = vsyncpa [#allocation4], 1 }
 0x832   :  { %3851 = vsyncpa [#allocation4 + $0x1], 1 }

</bundles_post_ra>
